<compile_context>
chip_gen: v6e
topology: v6e:2x2x1
jax: 0.10.0
libtpu: 0.0.40
codegen_flags: <defaults>
</compile_context>

<pallas_src>
import jax
import jax.numpy as jnp
from jax.experimental import pallas as pl
from jax.experimental.pallas import tpu as pltpu


# ----------------------------------------------------------------------------
# Fused Pallas kernel
# ----------------------------------------------------------------------------
def _build_att_gnn_kernel(dims, offs, s_offs):
    """dims: ((Fin, C),)*3; offs: name -> (row_off, rows, cols) into the packed VMEM array;
    s_offs: per layer (we_off, coef_off, awe_off) into the 1-D SMEM scalar vector."""

    def kernel(x_ref, mbias_ref, ea_ref, pool_ref, p_ref, s_ref, out_ref):
        def blk(name):
            o, r, c = offs[name]
            return p_ref[o:o + r, :c]          # static slice of the packed param array

        # O(N^2) arrays: upconvert bf16 -> f32 once, reused by all three layers.
        mbias = mbias_ref[...].astype(jnp.float32)   # 0 on edges, -1e30 off-edge
        ea = ea_ref[...].astype(jnp.float32)

        # eval-mode BatchNorm folded to scale/shift on the host: x * scale + shift
        bn = blk("bn")
        h = x_ref[...] * bn[0:1, :] + bn[1:2, :]

        for l, (_fin, C) in enumerate(dims, start=1):
            w = blk("w%d" % l)        # [Fin, 2C] = (Wl | Wr)
            wlT = blk("wlT%d" % l)    # [C, Fin]  = Wl^T
            vec = blk("vec%d" % l)    # [4, C]    = (bl ; br ; bias ; 0.2*att)
            cols = blk("cols%d" % l)  # [C, 2]    = (bl^T | 0.2*att^T)

            # merged l/r projection: one MXU matmul
            xh = jnp.dot(h, w, preferred_element_type=jnp.float32)   # [N, 2C]
            xl = xh[:, :C] + vec[0:1, :]                             # source proj [N, C]
            xr = xh[:, C:] + vec[1:2, :]                             # target proj [N, C]

            # xl^T directly from Wl^T (contract over features) -> lane-dense [C, N]
            xlT = jax.lax.dot_general(
                wlT, h, (((1,), (1,)), ((), ())),
                preferred_element_type=jnp.float32) + cols[:, 0:1]

            # linear part of att . LeakyReLU (0.2 factor folded into 0.2*att on the host):
            #   0.2*(att.xl)[j] + 0.2*(att.xr)[i] + 0.2*(att.We)*ea[i,j]
            lin_row = jnp.sum(xlT * cols[:, 1:2], axis=0, keepdims=True)   # [1, N]
            lin_col = jnp.sum(xr * vec[3:4, :], axis=1, keepdims=True)     # [N, 1]
            we_off, coef_off, awe_off = s_offs[l - 1]
            scores = mbias + lin_row + lin_col + s_ref[awe_off] * ea       # [N, N]

            # rectified part: sum_c 0.8*att_c * relu(xl[j,c] + xr[i,c] + ea[i,j]*We_c)
            for c in range(C):                                             # small static C
                t = xlT[c:c + 1, :] + xr[:, c:c + 1] + ea * s_ref[we_off + c]
                scores = scores + s_ref[coef_off + c] * jnp.maximum(t, 0.0)

            # softmax over incoming edges j (axis 1); off-edge entries carry -1e30 and
            # underflow to exactly 0 after the row-max subtraction.
            scores = scores - jnp.max(scores, axis=1, keepdims=True)
            p = jnp.exp(scores)
            denom = jnp.maximum(jnp.sum(p, axis=1, keepdims=True), 1e-20)
            alpha = p * (1.0 / denom)            # exact reciprocal of [N,1]: O(N) cost only

            # aggregate + output bias + fused ReLU
            h = jnp.maximum(
                jnp.dot(alpha, xl, preferred_element_type=jnp.float32) + vec[2:3, :], 0.0)

        # global_mean_pool (as matmul) -> Linear -> softmax(dim=1)
        lin = blk("lin")                          # [F3+1, f_final] = (W ; b)
        f3 = dims[-1][1]
        pooled = jnp.dot(pool_ref[...], h, preferred_element_type=jnp.float32)     # [B, F3]
        logits = (jnp.dot(pooled, lin[:f3, :], preferred_element_type=jnp.float32)
                  + lin[f3:f3 + 1, :])
        logits = logits - jnp.max(logits, axis=1, keepdims=True)
        e = jnp.exp(logits)
        out_ref[...] = e / jnp.sum(e, axis=1, keepdims=True)      # tiny [B, f_final]; exact

    return kernel


# ----------------------------------------------------------------------------
# Wrapper
# ----------------------------------------------------------------------------
def att_gnn_forward(x, adj, ea, pool_mat, params):
    N = x.shape[0]
    B = pool_mat.shape[0]
    f_final = params["lin"]["W"].shape[1]

    # additive softmax mask + bf16 edge attributes (O(N^2) arrays -> half the HBM traffic)
    mask_bias = jnp.where(adj > 0, 0.0, -1e30).astype(jnp.bfloat16)
    ea_bf = ea.astype(jnp.bfloat16)

    # eval-mode BatchNorm folded to scale/shift
    bn = params["bn"]
    scale = bn["gamma"] / jnp.sqrt(bn["var"] + 1e-5)
    shift = bn["beta"] - bn["mean"] * scale

    # ---- pack every small parameter into ONE VMEM array + ONE 1-D SMEM vector ----------
    blocks, offs = [], {}
    rows = 0

    def add(name, arr):
        nonlocal rows
        arr = jnp.asarray(arr, jnp.float32)
        offs[name] = (rows, arr.shape[0], arr.shape[1])
        blocks.append((rows, arr))
        rows += -(-arr.shape[0] // 8) * 8        # keep every block's row offset 8-aligned

    add("bn", jnp.concatenate([scale, shift], axis=0))                     # [2, F0]

    dims, s_parts, s_meta, awe = [], [], [], []
    s_len = 0
    for l, name in enumerate(("conv1", "conv2", "conv3"), start=1):
        p = params[name]
        fin, C = p["Wl"].shape
        dims.append((fin, C))
        add("w%d" % l, jnp.concatenate([p["Wl"], p["Wr"]], axis=1))        # [Fin, 2C]
        add("wlT%d" % l, p["Wl"].T)                                        # [C, Fin]
        add("vec%d" % l, jnp.concatenate(
            [p["bl"], p["br"], p["bias"], 0.2 * p["att"]], axis=0))        # [4, C]
        add("cols%d" % l, jnp.concatenate(
            [p["bl"].T, 0.2 * p["att"].T], axis=1))                        # [C, 2]
        s_parts += [p["We"][0], 0.8 * p["att"][0]]                         # per-channel scalars
        s_meta.append((s_len, s_len + C))
        s_len += 2 * C
        awe.append(0.2 * jnp.sum(p["att"] * p["We"]))                      # 0.2 * att . We
    add("lin", jnp.concatenate([params["lin"]["W"], params["lin"]["b"]], axis=0))

    s_offs = tuple((wo, co, s_len + i) for i, (wo, co) in enumerate(s_meta))
    s_vec = jnp.concatenate([jnp.concatenate(s_parts), jnp.stack(awe)]).astype(jnp.float32)

    width = max(a.shape[1] for _, a in blocks)
    P = jnp.zeros((rows, width), jnp.float32)
    for off, arr in blocks:
        P = P.at[off:off + arr.shape[0], :arr.shape[1]].set(arr)

    kern = _build_att_gnn_kernel(tuple(dims), dict(offs), s_offs)

    vmem = pl.BlockSpec(memory_space=pltpu.MemorySpace.VMEM)
    smem = pl.BlockSpec(memory_space=pltpu.MemorySpace.SMEM)

    # Rough cost hint for the XLA scheduler around the custom call.
    n2 = N * N
    flops = 0
    for fin, C in dims:
        flops += 2 * N * fin * 3 * C            # merged projection + xl^T
        flops += (6 * C + 12) * n2              # channel loop + mask/softmax prologue
        flops += 2 * n2 * C                     # alpha @ xl
    flops += 2 * B * N * dims[-1][1] + 2 * B * dims[-1][1] * f_final
    cost = pl.CostEstimate(
        flops=int(flops),
        transcendentals=int(3 * n2 + B * f_final),
        bytes_accessed=int(x.size * 4 + 2 * 2 * n2 + pool_mat.size * 4
                           + P.size * 4 + s_vec.size * 4 + B * f_final * 4))

    # Scoped-VMEM budget: raise above the default scoped limit (16 MiB on v5e, 32 MiB on
    # v6e/v7x) but stay inside physical VMEM (64 MiB on v7x, 128 MiB on v5e/v6e).
    try:
        phys_vmem = int(pltpu.get_tpu_info().vmem_capacity_bytes)
    except Exception:                            # conservative fallback = v7x (smallest VMEM)
        phys_vmem = 64 * 1024 * 1024
    vmem_limit = int(min(max(10 * n2 * 4 + (4 << 20), 32 * 1024 * 1024),
                         int(phys_vmem * 0.9)))

    # TODO(synk): for N large enough that the fused [N,N] working set no longer fits
    # (~N>1.1-1.6k on v7x's 64 MiB, ~2.3k on v6e), split into per-layer pallas_calls with a
    # grid over destination-row tiles (BlockSpec((tm, N)) for mask/ea, tm >= 512, N a multiple
    # of 128, dimension_semantics=("parallel",) so both v7x TensorCores run) — unnecessary at
    # these shapes.
    return pl.pallas_call(
        kern,
        out_shape=jax.ShapeDtypeStruct((B, f_final), jnp.float32),
        in_specs=[vmem, vmem, vmem, vmem, vmem, smem],
        out_specs=vmem,
        compiler_params=pltpu.CompilerParams(vmem_limit_bytes=vmem_limit),
        cost_estimate=cost,
    )(x, mask_bias, ea_bf, pool_mat, P, s_vec)


# ----------------------------------------------------------------------------
# Pure-JAX reference (same dense formulation) for correctness checking
# ----------------------------------------------------------------------------
def _gat_layer_ref(h, p, adj, ea):
    xl = h @ p["Wl"] + p["bl"]
    xr = h @ p["Wr"] + p["br"]
    u = xl[None, :, :] + xr[:, None, :] + ea[:, :, None] * p["We"][0][None, None, :]
    s = jnp.sum(p["att"][0][None, None, :] * jax.nn.leaky_relu(u, 0.2), axis=-1)
    s = jnp.where(adj > 0, s, -1e30)
    alpha = jax.nn.softmax(s, axis=1)
    return jax.nn.relu(alpha @ xl + p["bias"])


def att_gnn_reference(x, adj, ea, pool_mat, params):
    bn = params["bn"]
    h = (x - bn["mean"]) / jnp.sqrt(bn["var"] + 1e-5) * bn["gamma"] + bn["beta"]
    for name in ("conv1", "conv2", "conv3"):
        h = _gat_layer_ref(h, params[name], adj, ea)
    pooled = pool_mat @ h
    return jax.nn.softmax(pooled @ params["lin"]["W"] + params["lin"]["b"], axis=1)


# ----------------------------------------------------------------------------
# Deterministic parameter / input construction
# ----------------------------------------------------------------------------
def glorot(key, shape):
    fan_in, fan_out = shape
    lim = (6.0 / (fan_in + fan_out)) ** 0.5
    return jax.random.uniform(key, shape, jnp.float32, -lim, lim)


def make_gat_params(key, fin, fout):
    ks = jax.random.split(key, 6)
    return {
        "Wl": glorot(ks[0], (fin, fout)),
        "bl": jnp.zeros((1, fout), jnp.float32),
        "Wr": glorot(ks[1], (fin, fout)),
        "br": jnp.zeros((1, fout), jnp.float32),
        "We": glorot(ks[2], (1, fout)),          # lin_edge, edge_dim = 1
        "att": glorot(ks[3], (1, fout)),         # attention vector a
        "bias": jnp.zeros((1, fout), jnp.float32),
    }


if __name__ == "__main__":
    # Small shapes consistent with the module.
    N = 16            # total nodes (2 graphs of 8 nodes)
    B = 2             # number of graphs in the batch
    num_of_feat, f_1, f_2, f_3, f_final = 8, 16, 16, 8, 2

    key = jax.random.PRNGKey(0)
    (k_x, k_adj, k_ea, k_c1, k_c2, k_c3, k_lin) = jax.random.split(key, 7)

    # Node features.
    x = jax.random.normal(k_x, (N, num_of_feat), jnp.float32)

    # Densified graph: adj[i, j] = 1 iff edge j -> i; euclid edge attr per edge.
    adj_rand = jax.random.bernoulli(k_adj, 0.3, (N, N)).astype(jnp.float32)
    adj_rand = adj_rand * (1.0 - jnp.eye(N, dtype=jnp.float32))
    ea_rand = jax.random.uniform(k_ea, (N, N), jnp.float32) * adj_rand

    # add_self_loops(fill_value='mean'): self-loop attr = mean of incoming edge attrs.
    deg = jnp.sum(adj_rand, axis=1)
    self_attr = jnp.where(deg > 0, jnp.sum(ea_rand, axis=1) / jnp.maximum(deg, 1.0), 0.0)
    adj = adj_rand + jnp.eye(N, dtype=jnp.float32)
    ea = ea_rand + jnp.diag(self_attr)

    # Graph membership: nodes 0..7 -> graph 0, 8..15 -> graph 1.
    batch = jnp.concatenate([jnp.zeros((N // 2,), jnp.int32),
                             jnp.ones((N // 2,), jnp.int32)])
    one_hot = (batch[None, :] == jnp.arange(B)[:, None]).astype(jnp.float32)
    pool_mat = one_hot / jnp.sum(one_hot, axis=1, keepdims=True)     # [B, N]

    params = {
        "bn": {  # eval-mode BatchNorm1d(num_of_feat) with default init
            "gamma": jnp.ones((1, num_of_feat), jnp.float32),
            "beta": jnp.zeros((1, num_of_feat), jnp.float32),
            "mean": jnp.zeros((1, num_of_feat), jnp.float32),
            "var": jnp.ones((1, num_of_feat), jnp.float32),
        },
        "conv1": make_gat_params(k_c1, num_of_feat, f_1),
        "conv2": make_gat_params(k_c2, f_1, f_2),
        "conv3": make_gat_params(k_c3, f_2, f_3),
        "lin": {
            "W": glorot(k_lin, (f_3, f_final)),
            "b": jnp.zeros((1, f_final), jnp.float32),
        },
    }

    # TODO(synk): dropout(training=True) path not implemented; eval-mode (identity) only.
    out = att_gnn_forward(x, adj, ea, pool_mat, params)
    out = jax.block_until_ready(out)

    # Reference sees the same bf16-rounded edge attributes the kernel consumes.
    ea_q = ea.astype(jnp.bfloat16).astype(jnp.float32)
    ref = att_gnn_reference(x, adj, ea_q, pool_mat, params)

    assert out.shape == (B, f_final)
    assert bool(jnp.all(jnp.isfinite(out)))
    assert bool(jnp.allclose(jnp.sum(out, axis=1), 1.0, atol=1e-5))   # softmax rows sum to 1
    assert bool(jnp.allclose(out, ref, atol=2e-3, rtol=2e-2))         # matches pure-JAX ref
    print("KERNEL_OK")
</pallas_src>

<mosaic_0001>
module attributes {stable_mosaic.version = 11 : i64} {
  func.func @kernel(%arg0: memref<16x8xf32, #tpu.memory_space<vmem>>, %arg1: memref<16x16xbf16, #tpu.memory_space<vmem>>, %arg2: memref<16x16xbf16, #tpu.memory_space<vmem>>, %arg3: memref<2x16xf32, #tpu.memory_space<vmem>>, %arg4: memref<168x32xf32, #tpu.memory_space<vmem>>, %arg5: memref<83xf32, #tpu.memory_space<smem>>, %arg6: memref<2x2xf32, #tpu.memory_space<vmem>>) attributes {dimension_semantics = [], scalar_prefetch = 0 : i64, scratch_operands = 0 : i64, tpu.core_type = #tpu.core_type<tc>} {
    %c0 = arith.constant 0 : index
    %c0_0 = arith.constant 0 : index
    %0 = vector.load %arg1[%c0, %c0_0] : memref<16x16xbf16, #tpu.memory_space<vmem>>, vector<16x16xbf16>
    %1 = arith.extf %0 : vector<16x16xbf16> to vector<16x16xf32>
    %c0_1 = arith.constant 0 : index
    %c0_2 = arith.constant 0 : index
    %2 = vector.load %arg2[%c0_1, %c0_2] : memref<16x16xbf16, #tpu.memory_space<vmem>>, vector<16x16xbf16>
    %3 = arith.extf %2 : vector<16x16xbf16> to vector<16x16xf32>
    %c0_3 = arith.constant 0 : index
    %c0_4 = arith.constant 0 : index
    %4 = vector.load %arg4[%c0_3, %c0_4] : memref<168x32xf32, #tpu.memory_space<vmem>>, vector<2x8xf32>
    %c0_5 = arith.constant 0 : index
    %c0_6 = arith.constant 0 : index
    %5 = vector.load %arg0[%c0_5, %c0_6] : memref<16x8xf32, #tpu.memory_space<vmem>>, vector<16x8xf32>
    %6 = vector.extract_strided_slice %4 {offsets = [0, 0], sizes = [1, 8], strides = [1, 1]} : vector<2x8xf32> to vector<1x8xf32>
    %7 = vector.broadcast %6 : vector<1x8xf32> to vector<16x8xf32>
    %8 = arith.mulf %5, %7 : vector<16x8xf32>
    %9 = vector.extract_strided_slice %4 {offsets = [1, 0], sizes = [1, 8], strides = [1, 1]} : vector<2x8xf32> to vector<1x8xf32>
    %10 = vector.broadcast %9 : vector<1x8xf32> to vector<16x8xf32>
    %11 = arith.addf %8, %10 : vector<16x8xf32>
    %c8 = arith.constant 8 : index
    %c0_7 = arith.constant 0 : index
    %12 = vector.load %arg4[%c8, %c0_7] : memref<168x32xf32, #tpu.memory_space<vmem>>, vector<8x32xf32>
    %c16 = arith.constant 16 : index
    %c0_8 = arith.constant 0 : index
    %13 = vector.load %arg4[%c16, %c0_8] : memref<168x32xf32, #tpu.memory_space<vmem>>, vector<16x8xf32>
    %c32 = arith.constant 32 : index
    %c0_9 = arith.constant 0 : index
    %14 = vector.load %arg4[%c32, %c0_9] : memref<168x32xf32, #tpu.memory_space<vmem>>, vector<4x16xf32>
    %c40 = arith.constant 40 : index
    %c0_10 = arith.constant 0 : index
    %15 = vector.load %arg4[%c40, %c0_10] : memref<168x32xf32, #tpu.memory_space<vmem>>, vector<16x2xf32>
    %cst = arith.constant dense<0.000000e+00> : vector<16x32xf32>
    %16 = tpu.matmul %11, %12, %cst {dimension_numbers = #tpu.dot_dimension_numbers<[1], [0], [0], [1], [0, 0, 1, 1], [], []>} : vector<16x8xf32>, vector<8x32xf32>, vector<16x32xf32> -> vector<16x32xf32>
    %17 = vector.extract_strided_slice %16 {offsets = [0, 0], sizes = [16, 16], strides = [1, 1]} : vector<16x32xf32> to vector<16x16xf32>
    %18 = vector.extract_strided_slice %14 {offsets = [0, 0], sizes = [1, 16], strides = [1, 1]} : vector<4x16xf32> to vector<1x16xf32>
    %19 = vector.broadcast %18 : vector<1x16xf32> to vector<16x16xf32>
    %20 = arith.addf %17, %19 : vector<16x16xf32>
    %21 = vector.extract_strided_slice %16 {offsets = [0, 16], sizes = [16, 16], strides = [1, 1]} : vector<16x32xf32> to vector<16x16xf32>
    %22 = vector.extract_strided_slice %14 {offsets = [1, 0], sizes = [1, 16], strides = [1, 1]} : vector<4x16xf32> to vector<1x16xf32>
    %23 = vector.broadcast %22 : vector<1x16xf32> to vector<16x16xf32>
    %24 = arith.addf %21, %23 : vector<16x16xf32>
    %cst_11 = arith.constant dense<0.000000e+00> : vector<16x16xf32>
    %25 = tpu.matmul %13, %11, %cst_11 {dimension_numbers = #tpu.dot_dimension_numbers<[1], [1], [0], [0], [0, 0, 1, 0], [], []>} : vector<16x8xf32>, vector<16x8xf32>, vector<16x16xf32> -> vector<16x16xf32>
    %26 = vector.extract_strided_slice %15 {offsets = [0, 0], sizes = [16, 1], strides = [1, 1]} : vector<16x2xf32> to vector<16x1xf32>
    %27 = vector.broadcast %26 : vector<16x1xf32> to vector<16x16xf32>
    %28 = arith.addf %25, %27 : vector<16x16xf32>
    %29 = vector.extract_strided_slice %15 {offsets = [0, 1], sizes = [16, 1], strides = [1, 1]} : vector<16x2xf32> to vector<16x1xf32>
    %30 = vector.broadcast %29 : vector<16x1xf32> to vector<16x16xf32>
    %31 = arith.mulf %28, %30 : vector<16x16xf32>
    %cst_12 = arith.constant dense<0.000000e+00> : vector<16xf32>
    %32 = vector.multi_reduction <add>, %31, %cst_12 [0] : vector<16x16xf32> to vector<16xf32>
    %33 = vector.shape_cast %32 : vector<16xf32> to vector<1x16xf32>
    %34 = vector.extract_strided_slice %14 {offsets = [3, 0], sizes = [1, 16], strides = [1, 1]} : vector<4x16xf32> to vector<1x16xf32>
    %35 = vector.broadcast %34 : vector<1x16xf32> to vector<16x16xf32>
    %36 = arith.mulf %24, %35 : vector<16x16xf32>
    %cst_13 = arith.constant dense<0.000000e+00> : vector<16xf32>
    %37 = vector.multi_reduction <add>, %36, %cst_13 [1] : vector<16x16xf32> to vector<16xf32>
    %38 = vector.shape_cast %37 : vector<16xf32> to vector<16x1xf32>
    %39 = vector.broadcast %33 : vector<1x16xf32> to vector<16x16xf32>
    %40 = arith.addf %1, %39 : vector<16x16xf32>
    %41 = vector.broadcast %38 : vector<16x1xf32> to vector<16x16xf32>
    %42 = arith.addf %40, %41 : vector<16x16xf32>
    %c80 = arith.constant 80 : index
    %43 = memref.load %arg5[%c80] : memref<83xf32, #tpu.memory_space<smem>>
    %44 = vector.broadcast %43 : f32 to vector<16x16xf32>
    %45 = arith.mulf %44, %3 : vector<16x16xf32>
    %46 = arith.addf %42, %45 : vector<16x16xf32>
    %47 = vector.extract_strided_slice %28 {offsets = [0, 0], sizes = [1, 16], strides = [1, 1]} : vector<16x16xf32> to vector<1x16xf32>
    %48 = vector.extract_strided_slice %24 {offsets = [0, 0], sizes = [16, 1], strides = [1, 1]} : vector<16x16xf32> to vector<16x1xf32>
    %49 = vector.broadcast %47 : vector<1x16xf32> to vector<16x16xf32>
    %50 = vector.broadcast %48 : vector<16x1xf32> to vector<16x16xf32>
    %51 = arith.addf %49, %50 : vector<16x16xf32>
    %c0_14 = arith.constant 0 : index
    %52 = memref.load %arg5[%c0_14] : memref<83xf32, #tpu.memory_space<smem>>
    %53 = vector.broadcast %52 : f32 to vector<16x16xf32>
    %54 = arith.mulf %3, %53 : vector<16x16xf32>
    %55 = arith.addf %51, %54 : vector<16x16xf32>
    %c16_15 = arith.constant 16 : index
    %56 = memref.load %arg5[%c16_15] : memref<83xf32, #tpu.memory_space<smem>>
    %cst_16 = arith.constant 0.000000e+00 : f32
    %57 = vector.broadcast %cst_16 : f32 to vector<16x16xf32>
    %58 = arith.maximumf %55, %57 : vector<16x16xf32>
    %59 = vector.broadcast %56 : f32 to vector<16x16xf32>
    %60 = arith.mulf %59, %58 : vector<16x16xf32>
    %61 = arith.addf %46, %60 : vector<16x16xf32>
    %62 = vector.extract_strided_slice %28 {offsets = [1, 0], sizes = [1, 16], strides = [1, 1]} : vector<16x16xf32> to vector<1x16xf32>
    %63 = vector.extract_strided_slice %24 {offsets = [0, 1], sizes = [16, 1], strides = [1, 1]} : vector<16x16xf32> to vector<16x1xf32>
    %64 = vector.broadcast %62 : vector<1x16xf32> to vector<16x16xf32>
    %65 = vector.broadcast %63 : vector<16x1xf32> to vector<16x16xf32>
    %66 = arith.addf %64, %65 : vector<16x16xf32>
    %c1 = arith.constant 1 : index
    %67 = memref.load %arg5[%c1] : memref<83xf32, #tpu.memory_space<smem>>
    %68 = vector.broadcast %67 : f32 to vector<16x16xf32>
    %69 = arith.mulf %3, %68 : vector<16x16xf32>
    %70 = arith.addf %66, %69 : vector<16x16xf32>
    %c17 = arith.constant 17 : index
    %71 = memref.load %arg5[%c17] : memref<83xf32, #tpu.memory_space<smem>>
    %cst_17 = arith.constant 0.000000e+00 : f32
    %72 = vector.broadcast %cst_17 : f32 to vector<16x16xf32>
    %73 = arith.maximumf %70, %72 : vector<16x16xf32>
    %74 = vector.broadcast %71 : f32 to vector<16x16xf32>
    %75 = arith.mulf %74, %73 : vector<16x16xf32>
    %76 = arith.addf %61, %75 : vector<16x16xf32>
    %77 = vector.extract_strided_slice %28 {offsets = [2, 0], sizes = [1, 16], strides = [1, 1]} : vector<16x16xf32> to vector<1x16xf32>
    %78 = vector.extract_strided_slice %24 {offsets = [0, 2], sizes = [16, 1], strides = [1, 1]} : vector<16x16xf32> to vector<16x1xf32>
    %79 = vector.broadcast %77 : vector<1x16xf32> to vector<16x16xf32>
    %80 = vector.broadcast %78 : vector<16x1xf32> to vector<16x16xf32>
    %81 = arith.addf %79, %80 : vector<16x16xf32>
    %c2 = arith.constant 2 : index
    %82 = memref.load %arg5[%c2] : memref<83xf32, #tpu.memory_space<smem>>
    %83 = vector.broadcast %82 : f32 to vector<16x16xf32>
    %84 = arith.mulf %3, %83 : vector<16x16xf32>
    %85 = arith.addf %81, %84 : vector<16x16xf32>
    %c18 = arith.constant 18 : index
    %86 = memref.load %arg5[%c18] : memref<83xf32, #tpu.memory_space<smem>>
    %cst_18 = arith.constant 0.000000e+00 : f32
    %87 = vector.broadcast %cst_18 : f32 to vector<16x16xf32>
    %88 = arith.maximumf %85, %87 : vector<16x16xf32>
    %89 = vector.broadcast %86 : f32 to vector<16x16xf32>
    %90 = arith.mulf %89, %88 : vector<16x16xf32>
    %91 = arith.addf %76, %90 : vector<16x16xf32>
    %92 = vector.extract_strided_slice %28 {offsets = [3, 0], sizes = [1, 16], strides = [1, 1]} : vector<16x16xf32> to vector<1x16xf32>
    %93 = vector.extract_strided_slice %24 {offsets = [0, 3], sizes = [16, 1], strides = [1, 1]} : vector<16x16xf32> to vector<16x1xf32>
    %94 = vector.broadcast %92 : vector<1x16xf32> to vector<16x16xf32>
    %95 = vector.broadcast %93 : vector<16x1xf32> to vector<16x16xf32>
    %96 = arith.addf %94, %95 : vector<16x16xf32>
    %c3 = arith.constant 3 : index
    %97 = memref.load %arg5[%c3] : memref<83xf32, #tpu.memory_space<smem>>
    %98 = vector.broadcast %97 : f32 to vector<16x16xf32>
    %99 = arith.mulf %3, %98 : vector<16x16xf32>
    %100 = arith.addf %96, %99 : vector<16x16xf32>
    %c19 = arith.constant 19 : index
    %101 = memref.load %arg5[%c19] : memref<83xf32, #tpu.memory_space<smem>>
    %cst_19 = arith.constant 0.000000e+00 : f32
    %102 = vector.broadcast %cst_19 : f32 to vector<16x16xf32>
    %103 = arith.maximumf %100, %102 : vector<16x16xf32>
    %104 = vector.broadcast %101 : f32 to vector<16x16xf32>
    %105 = arith.mulf %104, %103 : vector<16x16xf32>
    %106 = arith.addf %91, %105 : vector<16x16xf32>
    %107 = vector.extract_strided_slice %28 {offsets = [4, 0], sizes = [1, 16], strides = [1, 1]} : vector<16x16xf32> to vector<1x16xf32>
    %108 = vector.extract_strided_slice %24 {offsets = [0, 4], sizes = [16, 1], strides = [1, 1]} : vector<16x16xf32> to vector<16x1xf32>
    %109 = vector.broadcast %107 : vector<1x16xf32> to vector<16x16xf32>
    %110 = vector.broadcast %108 : vector<16x1xf32> to vector<16x16xf32>
    %111 = arith.addf %109, %110 : vector<16x16xf32>
    %c4 = arith.constant 4 : index
    %112 = memref.load %arg5[%c4] : memref<83xf32, #tpu.memory_space<smem>>
    %113 = vector.broadcast %112 : f32 to vector<16x16xf32>
    %114 = arith.mulf %3, %113 : vector<16x16xf32>
    %115 = arith.addf %111, %114 : vector<16x16xf32>
    %c20 = arith.constant 20 : index
    %116 = memref.load %arg5[%c20] : memref<83xf32, #tpu.memory_space<smem>>
    %cst_20 = arith.constant 0.000000e+00 : f32
    %117 = vector.broadcast %cst_20 : f32 to vector<16x16xf32>
    %118 = arith.maximumf %115, %117 : vector<16x16xf32>
    %119 = vector.broadcast %116 : f32 to vector<16x16xf32>
    %120 = arith.mulf %119, %118 : vector<16x16xf32>
    %121 = arith.addf %106, %120 : vector<16x16xf32>
    %122 = vector.extract_strided_slice %28 {offsets = [5, 0], sizes = [1, 16], strides = [1, 1]} : vector<16x16xf32> to vector<1x16xf32>
    %123 = vector.extract_strided_slice %24 {offsets = [0, 5], sizes = [16, 1], strides = [1, 1]} : vector<16x16xf32> to vector<16x1xf32>
    %124 = vector.broadcast %122 : vector<1x16xf32> to vector<16x16xf32>
    %125 = vector.broadcast %123 : vector<16x1xf32> to vector<16x16xf32>
    %126 = arith.addf %124, %125 : vector<16x16xf32>
    %c5 = arith.constant 5 : index
    %127 = memref.load %arg5[%c5] : memref<83xf32, #tpu.memory_space<smem>>
    %128 = vector.broadcast %127 : f32 to vector<16x16xf32>
    %129 = arith.mulf %3, %128 : vector<16x16xf32>
    %130 = arith.addf %126, %129 : vector<16x16xf32>
    %c21 = arith.constant 21 : index
    %131 = memref.load %arg5[%c21] : memref<83xf32, #tpu.memory_space<smem>>
    %cst_21 = arith.constant 0.000000e+00 : f32
    %132 = vector.broadcast %cst_21 : f32 to vector<16x16xf32>
    %133 = arith.maximumf %130, %132 : vector<16x16xf32>
    %134 = vector.broadcast %131 : f32 to vector<16x16xf32>
    %135 = arith.mulf %134, %133 : vector<16x16xf32>
    %136 = arith.addf %121, %135 : vector<16x16xf32>
    %137 = vector.extract_strided_slice %28 {offsets = [6, 0], sizes = [1, 16], strides = [1, 1]} : vector<16x16xf32> to vector<1x16xf32>
    %138 = vector.extract_strided_slice %24 {offsets = [0, 6], sizes = [16, 1], strides = [1, 1]} : vector<16x16xf32> to vector<16x1xf32>
    %139 = vector.broadcast %137 : vector<1x16xf32> to vector<16x16xf32>
    %140 = vector.broadcast %138 : vector<16x1xf32> to vector<16x16xf32>
    %141 = arith.addf %139, %140 : vector<16x16xf32>
    %c6 = arith.constant 6 : index
    %142 = memref.load %arg5[%c6] : memref<83xf32, #tpu.memory_space<smem>>
    %143 = vector.broadcast %142 : f32 to vector<16x16xf32>
    %144 = arith.mulf %3, %143 : vector<16x16xf32>
    %145 = arith.addf %141, %144 : vector<16x16xf32>
    %c22 = arith.constant 22 : index
    %146 = memref.load %arg5[%c22] : memref<83xf32, #tpu.memory_space<smem>>
    %cst_22 = arith.constant 0.000000e+00 : f32
    %147 = vector.broadcast %cst_22 : f32 to vector<16x16xf32>
    %148 = arith.maximumf %145, %147 : vector<16x16xf32>
    %149 = vector.broadcast %146 : f32 to vector<16x16xf32>
    %150 = arith.mulf %149, %148 : vector<16x16xf32>
    %151 = arith.addf %136, %150 : vector<16x16xf32>
    %152 = vector.extract_strided_slice %28 {offsets = [7, 0], sizes = [1, 16], strides = [1, 1]} : vector<16x16xf32> to vector<1x16xf32>
    %153 = vector.extract_strided_slice %24 {offsets = [0, 7], sizes = [16, 1], strides = [1, 1]} : vector<16x16xf32> to vector<16x1xf32>
    %154 = vector.broadcast %152 : vector<1x16xf32> to vector<16x16xf32>
    %155 = vector.broadcast %153 : vector<16x1xf32> to vector<16x16xf32>
    %156 = arith.addf %154, %155 : vector<16x16xf32>
    %c7 = arith.constant 7 : index
    %157 = memref.load %arg5[%c7] : memref<83xf32, #tpu.memory_space<smem>>
    %158 = vector.broadcast %157 : f32 to vector<16x16xf32>
    %159 = arith.mulf %3, %158 : vector<16x16xf32>
    %160 = arith.addf %156, %159 : vector<16x16xf32>
    %c23 = arith.constant 23 : index
    %161 = memref.load %arg5[%c23] : memref<83xf32, #tpu.memory_space<smem>>
    %cst_23 = arith.constant 0.000000e+00 : f32
    %162 = vector.broadcast %cst_23 : f32 to vector<16x16xf32>
    %163 = arith.maximumf %160, %162 : vector<16x16xf32>
    %164 = vector.broadcast %161 : f32 to vector<16x16xf32>
    %165 = arith.mulf %164, %163 : vector<16x16xf32>
    %166 = arith.addf %151, %165 : vector<16x16xf32>
    %167 = vector.extract_strided_slice %28 {offsets = [8, 0], sizes = [1, 16], strides = [1, 1]} : vector<16x16xf32> to vector<1x16xf32>
    %168 = vector.extract_strided_slice %24 {offsets = [0, 8], sizes = [16, 1], strides = [1, 1]} : vector<16x16xf32> to vector<16x1xf32>
    %169 = vector.broadcast %167 : vector<1x16xf32> to vector<16x16xf32>
    %170 = vector.broadcast %168 : vector<16x1xf32> to vector<16x16xf32>
    %171 = arith.addf %169, %170 : vector<16x16xf32>
    %c8_24 = arith.constant 8 : index
    %172 = memref.load %arg5[%c8_24] : memref<83xf32, #tpu.memory_space<smem>>
    %173 = vector.broadcast %172 : f32 to vector<16x16xf32>
    %174 = arith.mulf %3, %173 : vector<16x16xf32>
    %175 = arith.addf %171, %174 : vector<16x16xf32>
    %c24 = arith.constant 24 : index
    %176 = memref.load %arg5[%c24] : memref<83xf32, #tpu.memory_space<smem>>
    %cst_25 = arith.constant 0.000000e+00 : f32
    %177 = vector.broadcast %cst_25 : f32 to vector<16x16xf32>
    %178 = arith.maximumf %175, %177 : vector<16x16xf32>
    %179 = vector.broadcast %176 : f32 to vector<16x16xf32>
    %180 = arith.mulf %179, %178 : vector<16x16xf32>
    %181 = arith.addf %166, %180 : vector<16x16xf32>
    %182 = vector.extract_strided_slice %28 {offsets = [9, 0], sizes = [1, 16], strides = [1, 1]} : vector<16x16xf32> to vector<1x16xf32>
    %183 = vector.extract_strided_slice %24 {offsets = [0, 9], sizes = [16, 1], strides = [1, 1]} : vector<16x16xf32> to vector<16x1xf32>
    %184 = vector.broadcast %182 : vector<1x16xf32> to vector<16x16xf32>
    %185 = vector.broadcast %183 : vector<16x1xf32> to vector<16x16xf32>
    %186 = arith.addf %184, %185 : vector<16x16xf32>
    %c9 = arith.constant 9 : index
    %187 = memref.load %arg5[%c9] : memref<83xf32, #tpu.memory_space<smem>>
    %188 = vector.broadcast %187 : f32 to vector<16x16xf32>
    %189 = arith.mulf %3, %188 : vector<16x16xf32>
    %190 = arith.addf %186, %189 : vector<16x16xf32>
    %c25 = arith.constant 25 : index
    %191 = memref.load %arg5[%c25] : memref<83xf32, #tpu.memory_space<smem>>
    %cst_26 = arith.constant 0.000000e+00 : f32
    %192 = vector.broadcast %cst_26 : f32 to vector<16x16xf32>
    %193 = arith.maximumf %190, %192 : vector<16x16xf32>
    %194 = vector.broadcast %191 : f32 to vector<16x16xf32>
    %195 = arith.mulf %194, %193 : vector<16x16xf32>
    %196 = arith.addf %181, %195 : vector<16x16xf32>
    %197 = vector.extract_strided_slice %28 {offsets = [10, 0], sizes = [1, 16], strides = [1, 1]} : vector<16x16xf32> to vector<1x16xf32>
    %198 = vector.extract_strided_slice %24 {offsets = [0, 10], sizes = [16, 1], strides = [1, 1]} : vector<16x16xf32> to vector<16x1xf32>
    %199 = vector.broadcast %197 : vector<1x16xf32> to vector<16x16xf32>
    %200 = vector.broadcast %198 : vector<16x1xf32> to vector<16x16xf32>
    %201 = arith.addf %199, %200 : vector<16x16xf32>
    %c10 = arith.constant 10 : index
    %202 = memref.load %arg5[%c10] : memref<83xf32, #tpu.memory_space<smem>>
    %203 = vector.broadcast %202 : f32 to vector<16x16xf32>
    %204 = arith.mulf %3, %203 : vector<16x16xf32>
    %205 = arith.addf %201, %204 : vector<16x16xf32>
    %c26 = arith.constant 26 : index
    %206 = memref.load %arg5[%c26] : memref<83xf32, #tpu.memory_space<smem>>
    %cst_27 = arith.constant 0.000000e+00 : f32
    %207 = vector.broadcast %cst_27 : f32 to vector<16x16xf32>
    %208 = arith.maximumf %205, %207 : vector<16x16xf32>
    %209 = vector.broadcast %206 : f32 to vector<16x16xf32>
    %210 = arith.mulf %209, %208 : vector<16x16xf32>
    %211 = arith.addf %196, %210 : vector<16x16xf32>
    %212 = vector.extract_strided_slice %28 {offsets = [11, 0], sizes = [1, 16], strides = [1, 1]} : vector<16x16xf32> to vector<1x16xf32>
    %213 = vector.extract_strided_slice %24 {offsets = [0, 11], sizes = [16, 1], strides = [1, 1]} : vector<16x16xf32> to vector<16x1xf32>
    %214 = vector.broadcast %212 : vector<1x16xf32> to vector<16x16xf32>
    %215 = vector.broadcast %213 : vector<16x1xf32> to vector<16x16xf32>
    %216 = arith.addf %214, %215 : vector<16x16xf32>
    %c11 = arith.constant 11 : index
    %217 = memref.load %arg5[%c11] : memref<83xf32, #tpu.memory_space<smem>>
    %218 = vector.broadcast %217 : f32 to vector<16x16xf32>
    %219 = arith.mulf %3, %218 : vector<16x16xf32>
    %220 = arith.addf %216, %219 : vector<16x16xf32>
    %c27 = arith.constant 27 : index
    %221 = memref.load %arg5[%c27] : memref<83xf32, #tpu.memory_space<smem>>
    %cst_28 = arith.constant 0.000000e+00 : f32
    %222 = vector.broadcast %cst_28 : f32 to vector<16x16xf32>
    %223 = arith.maximumf %220, %222 : vector<16x16xf32>
    %224 = vector.broadcast %221 : f32 to vector<16x16xf32>
    %225 = arith.mulf %224, %223 : vector<16x16xf32>
    %226 = arith.addf %211, %225 : vector<16x16xf32>
    %227 = vector.extract_strided_slice %28 {offsets = [12, 0], sizes = [1, 16], strides = [1, 1]} : vector<16x16xf32> to vector<1x16xf32>
    %228 = vector.extract_strided_slice %24 {offsets = [0, 12], sizes = [16, 1], strides = [1, 1]} : vector<16x16xf32> to vector<16x1xf32>
    %229 = vector.broadcast %227 : vector<1x16xf32> to vector<16x16xf32>
    %230 = vector.broadcast %228 : vector<16x1xf32> to vector<16x16xf32>
    %231 = arith.addf %229, %230 : vector<16x16xf32>
    %c12 = arith.constant 12 : index
    %232 = memref.load %arg5[%c12] : memref<83xf32, #tpu.memory_space<smem>>
    %233 = vector.broadcast %232 : f32 to vector<16x16xf32>
    %234 = arith.mulf %3, %233 : vector<16x16xf32>
    %235 = arith.addf %231, %234 : vector<16x16xf32>
    %c28 = arith.constant 28 : index
    %236 = memref.load %arg5[%c28] : memref<83xf32, #tpu.memory_space<smem>>
    %cst_29 = arith.constant 0.000000e+00 : f32
    %237 = vector.broadcast %cst_29 : f32 to vector<16x16xf32>
    %238 = arith.maximumf %235, %237 : vector<16x16xf32>
    %239 = vector.broadcast %236 : f32 to vector<16x16xf32>
    %240 = arith.mulf %239, %238 : vector<16x16xf32>
    %241 = arith.addf %226, %240 : vector<16x16xf32>
    %242 = vector.extract_strided_slice %28 {offsets = [13, 0], sizes = [1, 16], strides = [1, 1]} : vector<16x16xf32> to vector<1x16xf32>
    %243 = vector.extract_strided_slice %24 {offsets = [0, 13], sizes = [16, 1], strides = [1, 1]} : vector<16x16xf32> to vector<16x1xf32>
    %244 = vector.broadcast %242 : vector<1x16xf32> to vector<16x16xf32>
    %245 = vector.broadcast %243 : vector<16x1xf32> to vector<16x16xf32>
    %246 = arith.addf %244, %245 : vector<16x16xf32>
    %c13 = arith.constant 13 : index
    %247 = memref.load %arg5[%c13] : memref<83xf32, #tpu.memory_space<smem>>
    %248 = vector.broadcast %247 : f32 to vector<16x16xf32>
    %249 = arith.mulf %3, %248 : vector<16x16xf32>
    %250 = arith.addf %246, %249 : vector<16x16xf32>
    %c29 = arith.constant 29 : index
    %251 = memref.load %arg5[%c29] : memref<83xf32, #tpu.memory_space<smem>>
    %cst_30 = arith.constant 0.000000e+00 : f32
    %252 = vector.broadcast %cst_30 : f32 to vector<16x16xf32>
    %253 = arith.maximumf %250, %252 : vector<16x16xf32>
    %254 = vector.broadcast %251 : f32 to vector<16x16xf32>
    %255 = arith.mulf %254, %253 : vector<16x16xf32>
    %256 = arith.addf %241, %255 : vector<16x16xf32>
    %257 = vector.extract_strided_slice %28 {offsets = [14, 0], sizes = [1, 16], strides = [1, 1]} : vector<16x16xf32> to vector<1x16xf32>
    %258 = vector.extract_strided_slice %24 {offsets = [0, 14], sizes = [16, 1], strides = [1, 1]} : vector<16x16xf32> to vector<16x1xf32>
    %259 = vector.broadcast %257 : vector<1x16xf32> to vector<16x16xf32>
    %260 = vector.broadcast %258 : vector<16x1xf32> to vector<16x16xf32>
    %261 = arith.addf %259, %260 : vector<16x16xf32>
    %c14 = arith.constant 14 : index
    %262 = memref.load %arg5[%c14] : memref<83xf32, #tpu.memory_space<smem>>
    %263 = vector.broadcast %262 : f32 to vector<16x16xf32>
    %264 = arith.mulf %3, %263 : vector<16x16xf32>
    %265 = arith.addf %261, %264 : vector<16x16xf32>
    %c30 = arith.constant 30 : index
    %266 = memref.load %arg5[%c30] : memref<83xf32, #tpu.memory_space<smem>>
    %cst_31 = arith.constant 0.000000e+00 : f32
    %267 = vector.broadcast %cst_31 : f32 to vector<16x16xf32>
    %268 = arith.maximumf %265, %267 : vector<16x16xf32>
    %269 = vector.broadcast %266 : f32 to vector<16x16xf32>
    %270 = arith.mulf %269, %268 : vector<16x16xf32>
    %271 = arith.addf %256, %270 : vector<16x16xf32>
    %272 = vector.extract_strided_slice %28 {offsets = [15, 0], sizes = [1, 16], strides = [1, 1]} : vector<16x16xf32> to vector<1x16xf32>
    %273 = vector.extract_strided_slice %24 {offsets = [0, 15], sizes = [16, 1], strides = [1, 1]} : vector<16x16xf32> to vector<16x1xf32>
    %274 = vector.broadcast %272 : vector<1x16xf32> to vector<16x16xf32>
    %275 = vector.broadcast %273 : vector<16x1xf32> to vector<16x16xf32>
    %276 = arith.addf %274, %275 : vector<16x16xf32>
    %c15 = arith.constant 15 : index
    %277 = memref.load %arg5[%c15] : memref<83xf32, #tpu.memory_space<smem>>
    %278 = vector.broadcast %277 : f32 to vector<16x16xf32>
    %279 = arith.mulf %3, %278 : vector<16x16xf32>
    %280 = arith.addf %276, %279 : vector<16x16xf32>
    %c31 = arith.constant 31 : index
    %281 = memref.load %arg5[%c31] : memref<83xf32, #tpu.memory_space<smem>>
    %cst_32 = arith.constant 0.000000e+00 : f32
    %282 = vector.broadcast %cst_32 : f32 to vector<16x16xf32>
    %283 = arith.maximumf %280, %282 : vector<16x16xf32>
    %284 = vector.broadcast %281 : f32 to vector<16x16xf32>
    %285 = arith.mulf %284, %283 : vector<16x16xf32>
    %286 = arith.addf %271, %285 : vector<16x16xf32>
    %cst_33 = arith.constant dense<0xFF800000> : vector<16xf32>
    %287 = vector.multi_reduction <maximumf>, %286, %cst_33 [1] : vector<16x16xf32> to vector<16xf32>
    %288 = vector.shape_cast %287 : vector<16xf32> to vector<16x1xf32>
    %289 = vector.broadcast %288 : vector<16x1xf32> to vector<16x16xf32>
    %290 = arith.subf %286, %289 : vector<16x16xf32>
    %291 = math.exp %290 : vector<16x16xf32>
    %cst_34 = arith.constant dense<0.000000e+00> : vector<16xf32>
    %292 = vector.multi_reduction <add>, %291, %cst_34 [1] : vector<16x16xf32> to vector<16xf32>
    %293 = vector.shape_cast %292 : vector<16xf32> to vector<16x1xf32>
    %cst_35 = arith.constant 9.99999968E-21 : f32
    %294 = vector.broadcast %cst_35 : f32 to vector<16x1xf32>
    %295 = arith.maximumf %293, %294 : vector<16x1xf32>
    %cst_36 = arith.constant 1.000000e+00 : f32
    %296 = vector.broadcast %cst_36 : f32 to vector<16x1xf32>
    %297 = arith.divf %296, %295 : vector<16x1xf32>
    %298 = vector.broadcast %297 : vector<16x1xf32> to vector<16x16xf32>
    %299 = arith.mulf %291, %298 : vector<16x16xf32>
    %cst_37 = arith.constant dense<0.000000e+00> : vector<16x16xf32>
    %300 = tpu.matmul %299, %20, %cst_37 {dimension_numbers = #tpu.dot_dimension_numbers<[1], [0], [0], [1], [0, 0, 1, 1], [], []>} : vector<16x16xf32>, vector<16x16xf32>, vector<16x16xf32> -> vector<16x16xf32>
    %301 = vector.extract_strided_slice %14 {offsets = [2, 0], sizes = [1, 16], strides = [1, 1]} : vector<4x16xf32> to vector<1x16xf32>
    %302 = vector.broadcast %301 : vector<1x16xf32> to vector<16x16xf32>
    %303 = arith.addf %300, %302 : vector<16x16xf32>
    %cst_38 = arith.constant 0.000000e+00 : f32
    %304 = vector.broadcast %cst_38 : f32 to vector<16x16xf32>
    %305 = arith.maximumf %303, %304 : vector<16x16xf32>
    %c56 = arith.constant 56 : index
    %c0_39 = arith.constant 0 : index
    %306 = vector.load %arg4[%c56, %c0_39] : memref<168x32xf32, #tpu.memory_space<vmem>>, vector<16x32xf32>
    %c72 = arith.constant 72 : index
    %c0_40 = arith.constant 0 : index
    %307 = vector.load %arg4[%c72, %c0_40] : memref<168x32xf32, #tpu.memory_space<vmem>>, vector<16x16xf32>
    %c88 = arith.constant 88 : index
    %c0_41 = arith.constant 0 : index
    %308 = vector.load %arg4[%c88, %c0_41] : memref<168x32xf32, #tpu.memory_space<vmem>>, vector<4x16xf32>
    %c96 = arith.constant 96 : index
    %c0_42 = arith.constant 0 : index
    %309 = vector.load %arg4[%c96, %c0_42] : memref<168x32xf32, #tpu.memory_space<vmem>>, vector<16x2xf32>
    %cst_43 = arith.constant dense<0.000000e+00> : vector<16x32xf32>
    %310 = tpu.matmul %305, %306, %cst_43 {dimension_numbers = #tpu.dot_dimension_numbers<[1], [0], [0], [1], [0, 0, 1, 1], [], []>} : vector<16x16xf32>, vector<16x32xf32>, vector<16x32xf32> -> vector<16x32xf32>
    %311 = vector.extract_strided_slice %310 {offsets = [0, 0], sizes = [16, 16], strides = [1, 1]} : vector<16x32xf32> to vector<16x16xf32>
    %312 = vector.extract_strided_slice %308 {offsets = [0, 0], sizes = [1, 16], strides = [1, 1]} : vector<4x16xf32> to vector<1x16xf32>
    %313 = vector.broadcast %312 : vector<1x16xf32> to vector<16x16xf32>
    %314 = arith.addf %311, %313 : vector<16x16xf32>
    %315 = vector.extract_strided_slice %310 {offsets = [0, 16], sizes = [16, 16], strides = [1, 1]} : vector<16x32xf32> to vector<16x16xf32>
    %316 = vector.extract_strided_slice %308 {offsets = [1, 0], sizes = [1, 16], strides = [1, 1]} : vector<4x16xf32> to vector<1x16xf32>
    %317 = vector.broadcast %316 : vector<1x16xf32> to vector<16x16xf32>
    %318 = arith.addf %315, %317 : vector<16x16xf32>
    %cst_44 = arith.constant dense<0.000000e+00> : vector<16x16xf32>
    %319 = tpu.matmul %307, %305, %cst_44 {dimension_numbers = #tpu.dot_dimension_numbers<[1], [1], [0], [0], [0, 0, 1, 0], [], []>} : vector<16x16xf32>, vector<16x16xf32>, vector<16x16xf32> -> vector<16x16xf32>
    %320 = vector.extract_strided_slice %309 {offsets = [0, 0], sizes = [16, 1], strides = [1, 1]} : vector<16x2xf32> to vector<16x1xf32>
    %321 = vector.broadcast %320 : vector<16x1xf32> to vector<16x16xf32>
    %322 = arith.addf %319, %321 : vector<16x16xf32>
    %323 = vector.extract_strided_slice %309 {offsets = [0, 1], sizes = [16, 1], strides = [1, 1]} : vector<16x2xf32> to vector<16x1xf32>
    %324 = vector.broadcast %323 : vector<16x1xf32> to vector<16x16xf32>
    %325 = arith.mulf %322, %324 : vector<16x16xf32>
    %cst_45 = arith.constant dense<0.000000e+00> : vector<16xf32>
    %326 = vector.multi_reduction <add>, %325, %cst_45 [0] : vector<16x16xf32> to vector<16xf32>
    %327 = vector.shape_cast %326 : vector<16xf32> to vector<1x16xf32>
    %328 = vector.extract_strided_slice %308 {offsets = [3, 0], sizes = [1, 16], strides = [1, 1]} : vector<4x16xf32> to vector<1x16xf32>
    %329 = vector.broadcast %328 : vector<1x16xf32> to vector<16x16xf32>
    %330 = arith.mulf %318, %329 : vector<16x16xf32>
    %cst_46 = arith.constant dense<0.000000e+00> : vector<16xf32>
    %331 = vector.multi_reduction <add>, %330, %cst_46 [1] : vector<16x16xf32> to vector<16xf32>
    %332 = vector.shape_cast %331 : vector<16xf32> to vector<16x1xf32>
    %333 = vector.broadcast %327 : vector<1x16xf32> to vector<16x16xf32>
    %334 = arith.addf %1, %333 : vector<16x16xf32>
    %335 = vector.broadcast %332 : vector<16x1xf32> to vector<16x16xf32>
    %336 = arith.addf %334, %335 : vector<16x16xf32>
    %c81 = arith.constant 81 : index
    %337 = memref.load %arg5[%c81] : memref<83xf32, #tpu.memory_space<smem>>
    %338 = vector.broadcast %337 : f32 to vector<16x16xf32>
    %339 = arith.mulf %338, %3 : vector<16x16xf32>
    %340 = arith.addf %336, %339 : vector<16x16xf32>
    %341 = vector.extract_strided_slice %322 {offsets = [0, 0], sizes = [1, 16], strides = [1, 1]} : vector<16x16xf32> to vector<1x16xf32>
    %342 = vector.extract_strided_slice %318 {offsets = [0, 0], sizes = [16, 1], strides = [1, 1]} : vector<16x16xf32> to vector<16x1xf32>
    %343 = vector.broadcast %341 : vector<1x16xf32> to vector<16x16xf32>
    %344 = vector.broadcast %342 : vector<16x1xf32> to vector<16x16xf32>
    %345 = arith.addf %343, %344 : vector<16x16xf32>
    %c32_47 = arith.constant 32 : index
    %346 = memref.load %arg5[%c32_47] : memref<83xf32, #tpu.memory_space<smem>>
    %347 = vector.broadcast %346 : f32 to vector<16x16xf32>
    %348 = arith.mulf %3, %347 : vector<16x16xf32>
    %349 = arith.addf %345, %348 : vector<16x16xf32>
    %c48 = arith.constant 48 : index
    %350 = memref.load %arg5[%c48] : memref<83xf32, #tpu.memory_space<smem>>
    %cst_48 = arith.constant 0.000000e+00 : f32
    %351 = vector.broadcast %cst_48 : f32 to vector<16x16xf32>
    %352 = arith.maximumf %349, %351 : vector<16x16xf32>
    %353 = vector.broadcast %350 : f32 to vector<16x16xf32>
    %354 = arith.mulf %353, %352 : vector<16x16xf32>
    %355 = arith.addf %340, %354 : vector<16x16xf32>
    %356 = vector.extract_strided_slice %322 {offsets = [1, 0], sizes = [1, 16], strides = [1, 1]} : vector<16x16xf32> to vector<1x16xf32>
    %357 = vector.extract_strided_slice %318 {offsets = [0, 1], sizes = [16, 1], strides = [1, 1]} : vector<16x16xf32> to vector<16x1xf32>
    %358 = vector.broadcast %356 : vector<1x16xf32> to vector<16x16xf32>
    %359 = vector.broadcast %357 : vector<16x1xf32> to vector<16x16xf32>
    %360 = arith.addf %358, %359 : vector<16x16xf32>
    %c33 = arith.constant 33 : index
    %361 = memref.load %arg5[%c33] : memref<83xf32, #tpu.memory_space<smem>>
    %362 = vector.broadcast %361 : f32 to vector<16x16xf32>
    %363 = arith.mulf %3, %362 : vector<16x16xf32>
    %364 = arith.addf %360, %363 : vector<16x16xf32>
    %c49 = arith.constant 49 : index
    %365 = memref.load %arg5[%c49] : memref<83xf32, #tpu.memory_space<smem>>
    %cst_49 = arith.constant 0.000000e+00 : f32
    %366 = vector.broadcast %cst_49 : f32 to vector<16x16xf32>
    %367 = arith.maximumf %364, %366 : vector<16x16xf32>
    %368 = vector.broadcast %365 : f32 to vector<16x16xf32>
    %369 = arith.mulf %368, %367 : vector<16x16xf32>
    %370 = arith.addf %355, %369 : vector<16x16xf32>
    %371 = vector.extract_strided_slice %322 {offsets = [2, 0], sizes = [1, 16], strides = [1, 1]} : vector<16x16xf32> to vector<1x16xf32>
    %372 = vector.extract_strided_slice %318 {offsets = [0, 2], sizes = [16, 1], strides = [1, 1]} : vector<16x16xf32> to vector<16x1xf32>
    %373 = vector.broadcast %371 : vector<1x16xf32> to vector<16x16xf32>
    %374 = vector.broadcast %372 : vector<16x1xf32> to vector<16x16xf32>
    %375 = arith.addf %373, %374 : vector<16x16xf32>
    %c34 = arith.constant 34 : index
    %376 = memref.load %arg5[%c34] : memref<83xf32, #tpu.memory_space<smem>>
    %377 = vector.broadcast %376 : f32 to vector<16x16xf32>
    %378 = arith.mulf %3, %377 : vector<16x16xf32>
    %379 = arith.addf %375, %378 : vector<16x16xf32>
    %c50 = arith.constant 50 : index
    %380 = memref.load %arg5[%c50] : memref<83xf32, #tpu.memory_space<smem>>
    %cst_50 = arith.constant 0.000000e+00 : f32
    %381 = vector.broadcast %cst_50 : f32 to vector<16x16xf32>
    %382 = arith.maximumf %379, %381 : vector<16x16xf32>
    %383 = vector.broadcast %380 : f32 to vector<16x16xf32>
    %384 = arith.mulf %383, %382 : vector<16x16xf32>
    %385 = arith.addf %370, %384 : vector<16x16xf32>
    %386 = vector.extract_strided_slice %322 {offsets = [3, 0], sizes = [1, 16], strides = [1, 1]} : vector<16x16xf32> to vector<1x16xf32>
    %387 = vector.extract_strided_slice %318 {offsets = [0, 3], sizes = [16, 1], strides = [1, 1]} : vector<16x16xf32> to vector<16x1xf32>
    %388 = vector.broadcast %386 : vector<1x16xf32> to vector<16x16xf32>
    %389 = vector.broadcast %387 : vector<16x1xf32> to vector<16x16xf32>
    %390 = arith.addf %388, %389 : vector<16x16xf32>
    %c35 = arith.constant 35 : index
    %391 = memref.load %arg5[%c35] : memref<83xf32, #tpu.memory_space<smem>>
    %392 = vector.broadcast %391 : f32 to vector<16x16xf32>
    %393 = arith.mulf %3, %392 : vector<16x16xf32>
    %394 = arith.addf %390, %393 : vector<16x16xf32>
    %c51 = arith.constant 51 : index
    %395 = memref.load %arg5[%c51] : memref<83xf32, #tpu.memory_space<smem>>
    %cst_51 = arith.constant 0.000000e+00 : f32
    %396 = vector.broadcast %cst_51 : f32 to vector<16x16xf32>
    %397 = arith.maximumf %394, %396 : vector<16x16xf32>
    %398 = vector.broadcast %395 : f32 to vector<16x16xf32>
    %399 = arith.mulf %398, %397 : vector<16x16xf32>
    %400 = arith.addf %385, %399 : vector<16x16xf32>
    %401 = vector.extract_strided_slice %322 {offsets = [4, 0], sizes = [1, 16], strides = [1, 1]} : vector<16x16xf32> to vector<1x16xf32>
    %402 = vector.extract_strided_slice %318 {offsets = [0, 4], sizes = [16, 1], strides = [1, 1]} : vector<16x16xf32> to vector<16x1xf32>
    %403 = vector.broadcast %401 : vector<1x16xf32> to vector<16x16xf32>
    %404 = vector.broadcast %402 : vector<16x1xf32> to vector<16x16xf32>
    %405 = arith.addf %403, %404 : vector<16x16xf32>
    %c36 = arith.constant 36 : index
    %406 = memref.load %arg5[%c36] : memref<83xf32, #tpu.memory_space<smem>>
    %407 = vector.broadcast %406 : f32 to vector<16x16xf32>
    %408 = arith.mulf %3, %407 : vector<16x16xf32>
    %409 = arith.addf %405, %408 : vector<16x16xf32>
    %c52 = arith.constant 52 : index
    %410 = memref.load %arg5[%c52] : memref<83xf32, #tpu.memory_space<smem>>
    %cst_52 = arith.constant 0.000000e+00 : f32
    %411 = vector.broadcast %cst_52 : f32 to vector<16x16xf32>
    %412 = arith.maximumf %409, %411 : vector<16x16xf32>
    %413 = vector.broadcast %410 : f32 to vector<16x16xf32>
    %414 = arith.mulf %413, %412 : vector<16x16xf32>
    %415 = arith.addf %400, %414 : vector<16x16xf32>
    %416 = vector.extract_strided_slice %322 {offsets = [5, 0], sizes = [1, 16], strides = [1, 1]} : vector<16x16xf32> to vector<1x16xf32>
    %417 = vector.extract_strided_slice %318 {offsets = [0, 5], sizes = [16, 1], strides = [1, 1]} : vector<16x16xf32> to vector<16x1xf32>
    %418 = vector.broadcast %416 : vector<1x16xf32> to vector<16x16xf32>
    %419 = vector.broadcast %417 : vector<16x1xf32> to vector<16x16xf32>
    %420 = arith.addf %418, %419 : vector<16x16xf32>
    %c37 = arith.constant 37 : index
    %421 = memref.load %arg5[%c37] : memref<83xf32, #tpu.memory_space<smem>>
    %422 = vector.broadcast %421 : f32 to vector<16x16xf32>
    %423 = arith.mulf %3, %422 : vector<16x16xf32>
    %424 = arith.addf %420, %423 : vector<16x16xf32>
    %c53 = arith.constant 53 : index
    %425 = memref.load %arg5[%c53] : memref<83xf32, #tpu.memory_space<smem>>
    %cst_53 = arith.constant 0.000000e+00 : f32
    %426 = vector.broadcast %cst_53 : f32 to vector<16x16xf32>
    %427 = arith.maximumf %424, %426 : vector<16x16xf32>
    %428 = vector.broadcast %425 : f32 to vector<16x16xf32>
    %429 = arith.mulf %428, %427 : vector<16x16xf32>
    %430 = arith.addf %415, %429 : vector<16x16xf32>
    %431 = vector.extract_strided_slice %322 {offsets = [6, 0], sizes = [1, 16], strides = [1, 1]} : vector<16x16xf32> to vector<1x16xf32>
    %432 = vector.extract_strided_slice %318 {offsets = [0, 6], sizes = [16, 1], strides = [1, 1]} : vector<16x16xf32> to vector<16x1xf32>
    %433 = vector.broadcast %431 : vector<1x16xf32> to vector<16x16xf32>
    %434 = vector.broadcast %432 : vector<16x1xf32> to vector<16x16xf32>
    %435 = arith.addf %433, %434 : vector<16x16xf32>
    %c38 = arith.constant 38 : index
    %436 = memref.load %arg5[%c38] : memref<83xf32, #tpu.memory_space<smem>>
    %437 = vector.broadcast %436 : f32 to vector<16x16xf32>
    %438 = arith.mulf %3, %437 : vector<16x16xf32>
    %439 = arith.addf %435, %438 : vector<16x16xf32>
    %c54 = arith.constant 54 : index
    %440 = memref.load %arg5[%c54] : memref<83xf32, #tpu.memory_space<smem>>
    %cst_54 = arith.constant 0.000000e+00 : f32
    %441 = vector.broadcast %cst_54 : f32 to vector<16x16xf32>
    %442 = arith.maximumf %439, %441 : vector<16x16xf32>
    %443 = vector.broadcast %440 : f32 to vector<16x16xf32>
    %444 = arith.mulf %443, %442 : vector<16x16xf32>
    %445 = arith.addf %430, %444 : vector<16x16xf32>
    %446 = vector.extract_strided_slice %322 {offsets = [7, 0], sizes = [1, 16], strides = [1, 1]} : vector<16x16xf32> to vector<1x16xf32>
    %447 = vector.extract_strided_slice %318 {offsets = [0, 7], sizes = [16, 1], strides = [1, 1]} : vector<16x16xf32> to vector<16x1xf32>
    %448 = vector.broadcast %446 : vector<1x16xf32> to vector<16x16xf32>
    %449 = vector.broadcast %447 : vector<16x1xf32> to vector<16x16xf32>
    %450 = arith.addf %448, %449 : vector<16x16xf32>
    %c39 = arith.constant 39 : index
    %451 = memref.load %arg5[%c39] : memref<83xf32, #tpu.memory_space<smem>>
    %452 = vector.broadcast %451 : f32 to vector<16x16xf32>
    %453 = arith.mulf %3, %452 : vector<16x16xf32>
    %454 = arith.addf %450, %453 : vector<16x16xf32>
    %c55 = arith.constant 55 : index
    %455 = memref.load %arg5[%c55] : memref<83xf32, #tpu.memory_space<smem>>
    %cst_55 = arith.constant 0.000000e+00 : f32
    %456 = vector.broadcast %cst_55 : f32 to vector<16x16xf32>
    %457 = arith.maximumf %454, %456 : vector<16x16xf32>
    %458 = vector.broadcast %455 : f32 to vector<16x16xf32>
    %459 = arith.mulf %458, %457 : vector<16x16xf32>
    %460 = arith.addf %445, %459 : vector<16x16xf32>
    %461 = vector.extract_strided_slice %322 {offsets = [8, 0], sizes = [1, 16], strides = [1, 1]} : vector<16x16xf32> to vector<1x16xf32>
    %462 = vector.extract_strided_slice %318 {offsets = [0, 8], sizes = [16, 1], strides = [1, 1]} : vector<16x16xf32> to vector<16x1xf32>
    %463 = vector.broadcast %461 : vector<1x16xf32> to vector<16x16xf32>
    %464 = vector.broadcast %462 : vector<16x1xf32> to vector<16x16xf32>
    %465 = arith.addf %463, %464 : vector<16x16xf32>
    %c40_56 = arith.constant 40 : index
    %466 = memref.load %arg5[%c40_56] : memref<83xf32, #tpu.memory_space<smem>>
    %467 = vector.broadcast %466 : f32 to vector<16x16xf32>
    %468 = arith.mulf %3, %467 : vector<16x16xf32>
    %469 = arith.addf %465, %468 : vector<16x16xf32>
    %c56_57 = arith.constant 56 : index
    %470 = memref.load %arg5[%c56_57] : memref<83xf32, #tpu.memory_space<smem>>
    %cst_58 = arith.constant 0.000000e+00 : f32
    %471 = vector.broadcast %cst_58 : f32 to vector<16x16xf32>
    %472 = arith.maximumf %469, %471 : vector<16x16xf32>
    %473 = vector.broadcast %470 : f32 to vector<16x16xf32>
    %474 = arith.mulf %473, %472 : vector<16x16xf32>
    %475 = arith.addf %460, %474 : vector<16x16xf32>
    %476 = vector.extract_strided_slice %322 {offsets = [9, 0], sizes = [1, 16], strides = [1, 1]} : vector<16x16xf32> to vector<1x16xf32>
    %477 = vector.extract_strided_slice %318 {offsets = [0, 9], sizes = [16, 1], strides = [1, 1]} : vector<16x16xf32> to vector<16x1xf32>
    %478 = vector.broadcast %476 : vector<1x16xf32> to vector<16x16xf32>
    %479 = vector.broadcast %477 : vector<16x1xf32> to vector<16x16xf32>
    %480 = arith.addf %478, %479 : vector<16x16xf32>
    %c41 = arith.constant 41 : index
    %481 = memref.load %arg5[%c41] : memref<83xf32, #tpu.memory_space<smem>>
    %482 = vector.broadcast %481 : f32 to vector<16x16xf32>
    %483 = arith.mulf %3, %482 : vector<16x16xf32>
    %484 = arith.addf %480, %483 : vector<16x16xf32>
    %c57 = arith.constant 57 : index
    %485 = memref.load %arg5[%c57] : memref<83xf32, #tpu.memory_space<smem>>
    %cst_59 = arith.constant 0.000000e+00 : f32
    %486 = vector.broadcast %cst_59 : f32 to vector<16x16xf32>
    %487 = arith.maximumf %484, %486 : vector<16x16xf32>
    %488 = vector.broadcast %485 : f32 to vector<16x16xf32>
    %489 = arith.mulf %488, %487 : vector<16x16xf32>
    %490 = arith.addf %475, %489 : vector<16x16xf32>
    %491 = vector.extract_strided_slice %322 {offsets = [10, 0], sizes = [1, 16], strides = [1, 1]} : vector<16x16xf32> to vector<1x16xf32>
    %492 = vector.extract_strided_slice %318 {offsets = [0, 10], sizes = [16, 1], strides = [1, 1]} : vector<16x16xf32> to vector<16x1xf32>
    %493 = vector.broadcast %491 : vector<1x16xf32> to vector<16x16xf32>
    %494 = vector.broadcast %492 : vector<16x1xf32> to vector<16x16xf32>
    %495 = arith.addf %493, %494 : vector<16x16xf32>
    %c42 = arith.constant 42 : index
    %496 = memref.load %arg5[%c42] : memref<83xf32, #tpu.memory_space<smem>>
    %497 = vector.broadcast %496 : f32 to vector<16x16xf32>
    %498 = arith.mulf %3, %497 : vector<16x16xf32>
    %499 = arith.addf %495, %498 : vector<16x16xf32>
    %c58 = arith.constant 58 : index
    %500 = memref.load %arg5[%c58] : memref<83xf32, #tpu.memory_space<smem>>
    %cst_60 = arith.constant 0.000000e+00 : f32
    %501 = vector.broadcast %cst_60 : f32 to vector<16x16xf32>
    %502 = arith.maximumf %499, %501 : vector<16x16xf32>
    %503 = vector.broadcast %500 : f32 to vector<16x16xf32>
    %504 = arith.mulf %503, %502 : vector<16x16xf32>
    %505 = arith.addf %490, %504 : vector<16x16xf32>
    %506 = vector.extract_strided_slice %322 {offsets = [11, 0], sizes = [1, 16], strides = [1, 1]} : vector<16x16xf32> to vector<1x16xf32>
    %507 = vector.extract_strided_slice %318 {offsets = [0, 11], sizes = [16, 1], strides = [1, 1]} : vector<16x16xf32> to vector<16x1xf32>
    %508 = vector.broadcast %506 : vector<1x16xf32> to vector<16x16xf32>
    %509 = vector.broadcast %507 : vector<16x1xf32> to vector<16x16xf32>
    %510 = arith.addf %508, %509 : vector<16x16xf32>
    %c43 = arith.constant 43 : index
    %511 = memref.load %arg5[%c43] : memref<83xf32, #tpu.memory_space<smem>>
    %512 = vector.broadcast %511 : f32 to vector<16x16xf32>
    %513 = arith.mulf %3, %512 : vector<16x16xf32>
    %514 = arith.addf %510, %513 : vector<16x16xf32>
    %c59 = arith.constant 59 : index
    %515 = memref.load %arg5[%c59] : memref<83xf32, #tpu.memory_space<smem>>
    %cst_61 = arith.constant 0.000000e+00 : f32
    %516 = vector.broadcast %cst_61 : f32 to vector<16x16xf32>
    %517 = arith.maximumf %514, %516 : vector<16x16xf32>
    %518 = vector.broadcast %515 : f32 to vector<16x16xf32>
    %519 = arith.mulf %518, %517 : vector<16x16xf32>
    %520 = arith.addf %505, %519 : vector<16x16xf32>
    %521 = vector.extract_strided_slice %322 {offsets = [12, 0], sizes = [1, 16], strides = [1, 1]} : vector<16x16xf32> to vector<1x16xf32>
    %522 = vector.extract_strided_slice %318 {offsets = [0, 12], sizes = [16, 1], strides = [1, 1]} : vector<16x16xf32> to vector<16x1xf32>
    %523 = vector.broadcast %521 : vector<1x16xf32> to vector<16x16xf32>
    %524 = vector.broadcast %522 : vector<16x1xf32> to vector<16x16xf32>
    %525 = arith.addf %523, %524 : vector<16x16xf32>
    %c44 = arith.constant 44 : index
    %526 = memref.load %arg5[%c44] : memref<83xf32, #tpu.memory_space<smem>>
    %527 = vector.broadcast %526 : f32 to vector<16x16xf32>
    %528 = arith.mulf %3, %527 : vector<16x16xf32>
    %529 = arith.addf %525, %528 : vector<16x16xf32>
    %c60 = arith.constant 60 : index
    %530 = memref.load %arg5[%c60] : memref<83xf32, #tpu.memory_space<smem>>
    %cst_62 = arith.constant 0.000000e+00 : f32
    %531 = vector.broadcast %cst_62 : f32 to vector<16x16xf32>
    %532 = arith.maximumf %529, %531 : vector<16x16xf32>
    %533 = vector.broadcast %530 : f32 to vector<16x16xf32>
    %534 = arith.mulf %533, %532 : vector<16x16xf32>
    %535 = arith.addf %520, %534 : vector<16x16xf32>
    %536 = vector.extract_strided_slice %322 {offsets = [13, 0], sizes = [1, 16], strides = [1, 1]} : vector<16x16xf32> to vector<1x16xf32>
    %537 = vector.extract_strided_slice %318 {offsets = [0, 13], sizes = [16, 1], strides = [1, 1]} : vector<16x16xf32> to vector<16x1xf32>
    %538 = vector.broadcast %536 : vector<1x16xf32> to vector<16x16xf32>
    %539 = vector.broadcast %537 : vector<16x1xf32> to vector<16x16xf32>
    %540 = arith.addf %538, %539 : vector<16x16xf32>
    %c45 = arith.constant 45 : index
    %541 = memref.load %arg5[%c45] : memref<83xf32, #tpu.memory_space<smem>>
    %542 = vector.broadcast %541 : f32 to vector<16x16xf32>
    %543 = arith.mulf %3, %542 : vector<16x16xf32>
    %544 = arith.addf %540, %543 : vector<16x16xf32>
    %c61 = arith.constant 61 : index
    %545 = memref.load %arg5[%c61] : memref<83xf32, #tpu.memory_space<smem>>
    %cst_63 = arith.constant 0.000000e+00 : f32
    %546 = vector.broadcast %cst_63 : f32 to vector<16x16xf32>
    %547 = arith.maximumf %544, %546 : vector<16x16xf32>
    %548 = vector.broadcast %545 : f32 to vector<16x16xf32>
    %549 = arith.mulf %548, %547 : vector<16x16xf32>
    %550 = arith.addf %535, %549 : vector<16x16xf32>
    %551 = vector.extract_strided_slice %322 {offsets = [14, 0], sizes = [1, 16], strides = [1, 1]} : vector<16x16xf32> to vector<1x16xf32>
    %552 = vector.extract_strided_slice %318 {offsets = [0, 14], sizes = [16, 1], strides = [1, 1]} : vector<16x16xf32> to vector<16x1xf32>
    %553 = vector.broadcast %551 : vector<1x16xf32> to vector<16x16xf32>
    %554 = vector.broadcast %552 : vector<16x1xf32> to vector<16x16xf32>
    %555 = arith.addf %553, %554 : vector<16x16xf32>
    %c46 = arith.constant 46 : index
    %556 = memref.load %arg5[%c46] : memref<83xf32, #tpu.memory_space<smem>>
    %557 = vector.broadcast %556 : f32 to vector<16x16xf32>
    %558 = arith.mulf %3, %557 : vector<16x16xf32>
    %559 = arith.addf %555, %558 : vector<16x16xf32>
    %c62 = arith.constant 62 : index
    %560 = memref.load %arg5[%c62] : memref<83xf32, #tpu.memory_space<smem>>
    %cst_64 = arith.constant 0.000000e+00 : f32
    %561 = vector.broadcast %cst_64 : f32 to vector<16x16xf32>
    %562 = arith.maximumf %559, %561 : vector<16x16xf32>
    %563 = vector.broadcast %560 : f32 to vector<16x16xf32>
    %564 = arith.mulf %563, %562 : vector<16x16xf32>
    %565 = arith.addf %550, %564 : vector<16x16xf32>
    %566 = vector.extract_strided_slice %322 {offsets = [15, 0], sizes = [1, 16], strides = [1, 1]} : vector<16x16xf32> to vector<1x16xf32>
    %567 = vector.extract_strided_slice %318 {offsets = [0, 15], sizes = [16, 1], strides = [1, 1]} : vector<16x16xf32> to vector<16x1xf32>
    %568 = vector.broadcast %566 : vector<1x16xf32> to vector<16x16xf32>
    %569 = vector.broadcast %567 : vector<16x1xf32> to vector<16x16xf32>
    %570 = arith.addf %568, %569 : vector<16x16xf32>
    %c47 = arith.constant 47 : index
    %571 = memref.load %arg5[%c47] : memref<83xf32, #tpu.memory_space<smem>>
    %572 = vector.broadcast %571 : f32 to vector<16x16xf32>
    %573 = arith.mulf %3, %572 : vector<16x16xf32>
    %574 = arith.addf %570, %573 : vector<16x16xf32>
    %c63 = arith.constant 63 : index
    %575 = memref.load %arg5[%c63] : memref<83xf32, #tpu.memory_space<smem>>
    %cst_65 = arith.constant 0.000000e+00 : f32
    %576 = vector.broadcast %cst_65 : f32 to vector<16x16xf32>
    %577 = arith.maximumf %574, %576 : vector<16x16xf32>
    %578 = vector.broadcast %575 : f32 to vector<16x16xf32>
    %579 = arith.mulf %578, %577 : vector<16x16xf32>
    %580 = arith.addf %565, %579 : vector<16x16xf32>
    %cst_66 = arith.constant dense<0xFF800000> : vector<16xf32>
    %581 = vector.multi_reduction <maximumf>, %580, %cst_66 [1] : vector<16x16xf32> to vector<16xf32>
    %582 = vector.shape_cast %581 : vector<16xf32> to vector<16x1xf32>
    %583 = vector.broadcast %582 : vector<16x1xf32> to vector<16x16xf32>
    %584 = arith.subf %580, %583 : vector<16x16xf32>
    %585 = math.exp %584 : vector<16x16xf32>
    %cst_67 = arith.constant dense<0.000000e+00> : vector<16xf32>
    %586 = vector.multi_reduction <add>, %585, %cst_67 [1] : vector<16x16xf32> to vector<16xf32>
    %587 = vector.shape_cast %586 : vector<16xf32> to vector<16x1xf32>
    %cst_68 = arith.constant 9.99999968E-21 : f32
    %588 = vector.broadcast %cst_68 : f32 to vector<16x1xf32>
    %589 = arith.maximumf %587, %588 : vector<16x1xf32>
    %cst_69 = arith.constant 1.000000e+00 : f32
    %590 = vector.broadcast %cst_69 : f32 to vector<16x1xf32>
    %591 = arith.divf %590, %589 : vector<16x1xf32>
    %592 = vector.broadcast %591 : vector<16x1xf32> to vector<16x16xf32>
    %593 = arith.mulf %585, %592 : vector<16x16xf32>
    %cst_70 = arith.constant dense<0.000000e+00> : vector<16x16xf32>
    %594 = tpu.matmul %593, %314, %cst_70 {dimension_numbers = #tpu.dot_dimension_numbers<[1], [0], [0], [1], [0, 0, 1, 1], [], []>} : vector<16x16xf32>, vector<16x16xf32>, vector<16x16xf32> -> vector<16x16xf32>
    %595 = vector.extract_strided_slice %308 {offsets = [2, 0], sizes = [1, 16], strides = [1, 1]} : vector<4x16xf32> to vector<1x16xf32>
    %596 = vector.broadcast %595 : vector<1x16xf32> to vector<16x16xf32>
    %597 = arith.addf %594, %596 : vector<16x16xf32>
    %cst_71 = arith.constant 0.000000e+00 : f32
    %598 = vector.broadcast %cst_71 : f32 to vector<16x16xf32>
    %599 = arith.maximumf %597, %598 : vector<16x16xf32>
    %c112 = arith.constant 112 : index
    %c0_72 = arith.constant 0 : index
    %600 = vector.load %arg4[%c112, %c0_72] : memref<168x32xf32, #tpu.memory_space<vmem>>, vector<16x16xf32>
    %c128 = arith.constant 128 : index
    %c0_73 = arith.constant 0 : index
    %601 = vector.load %arg4[%c128, %c0_73] : memref<168x32xf32, #tpu.memory_space<vmem>>, vector<8x16xf32>
    %c136 = arith.constant 136 : index
    %c0_74 = arith.constant 0 : index
    %602 = vector.load %arg4[%c136, %c0_74] : memref<168x32xf32, #tpu.memory_space<vmem>>, vector<4x8xf32>
    %c144 = arith.constant 144 : index
    %c0_75 = arith.constant 0 : index
    %603 = vector.load %arg4[%c144, %c0_75] : memref<168x32xf32, #tpu.memory_space<vmem>>, vector<8x2xf32>
    %cst_76 = arith.constant dense<0.000000e+00> : vector<16x16xf32>
    %604 = tpu.matmul %599, %600, %cst_76 {dimension_numbers = #tpu.dot_dimension_numbers<[1], [0], [0], [1], [0, 0, 1, 1], [], []>} : vector<16x16xf32>, vector<16x16xf32>, vector<16x16xf32> -> vector<16x16xf32>
    %605 = vector.extract_strided_slice %604 {offsets = [0, 0], sizes = [16, 8], strides = [1, 1]} : vector<16x16xf32> to vector<16x8xf32>
    %606 = vector.extract_strided_slice %602 {offsets = [0, 0], sizes = [1, 8], strides = [1, 1]} : vector<4x8xf32> to vector<1x8xf32>
    %607 = vector.broadcast %606 : vector<1x8xf32> to vector<16x8xf32>
    %608 = arith.addf %605, %607 : vector<16x8xf32>
    %609 = vector.extract_strided_slice %604 {offsets = [0, 8], sizes = [16, 8], strides = [1, 1]} : vector<16x16xf32> to vector<16x8xf32>
    %610 = vector.extract_strided_slice %602 {offsets = [1, 0], sizes = [1, 8], strides = [1, 1]} : vector<4x8xf32> to vector<1x8xf32>
    %611 = vector.broadcast %610 : vector<1x8xf32> to vector<16x8xf32>
    %612 = arith.addf %609, %611 : vector<16x8xf32>
    %cst_77 = arith.constant dense<0.000000e+00> : vector<8x16xf32>
    %613 = tpu.matmul %601, %599, %cst_77 {dimension_numbers = #tpu.dot_dimension_numbers<[1], [1], [0], [0], [0, 0, 1, 0], [], []>} : vector<8x16xf32>, vector<16x16xf32>, vector<8x16xf32> -> vector<8x16xf32>
    %614 = vector.extract_strided_slice %603 {offsets = [0, 0], sizes = [8, 1], strides = [1, 1]} : vector<8x2xf32> to vector<8x1xf32>
    %615 = vector.broadcast %614 : vector<8x1xf32> to vector<8x16xf32>
    %616 = arith.addf %613, %615 : vector<8x16xf32>
    %617 = vector.extract_strided_slice %603 {offsets = [0, 1], sizes = [8, 1], strides = [1, 1]} : vector<8x2xf32> to vector<8x1xf32>
    %618 = vector.broadcast %617 : vector<8x1xf32> to vector<8x16xf32>
    %619 = arith.mulf %616, %618 : vector<8x16xf32>
    %cst_78 = arith.constant dense<0.000000e+00> : vector<16xf32>
    %620 = vector.multi_reduction <add>, %619, %cst_78 [0] : vector<8x16xf32> to vector<16xf32>
    %621 = vector.shape_cast %620 : vector<16xf32> to vector<1x16xf32>
    %622 = vector.extract_strided_slice %602 {offsets = [3, 0], sizes = [1, 8], strides = [1, 1]} : vector<4x8xf32> to vector<1x8xf32>
    %623 = vector.broadcast %622 : vector<1x8xf32> to vector<16x8xf32>
    %624 = arith.mulf %612, %623 : vector<16x8xf32>
    %cst_79 = arith.constant dense<0.000000e+00> : vector<16xf32>
    %625 = vector.multi_reduction <add>, %624, %cst_79 [1] : vector<16x8xf32> to vector<16xf32>
    %626 = vector.shape_cast %625 : vector<16xf32> to vector<16x1xf32>
    %627 = vector.broadcast %621 : vector<1x16xf32> to vector<16x16xf32>
    %628 = arith.addf %1, %627 : vector<16x16xf32>
    %629 = vector.broadcast %626 : vector<16x1xf32> to vector<16x16xf32>
    %630 = arith.addf %628, %629 : vector<16x16xf32>
    %c82 = arith.constant 82 : index
    %631 = memref.load %arg5[%c82] : memref<83xf32, #tpu.memory_space<smem>>
    %632 = vector.broadcast %631 : f32 to vector<16x16xf32>
    %633 = arith.mulf %632, %3 : vector<16x16xf32>
    %634 = arith.addf %630, %633 : vector<16x16xf32>
    %635 = vector.extract_strided_slice %616 {offsets = [0, 0], sizes = [1, 16], strides = [1, 1]} : vector<8x16xf32> to vector<1x16xf32>
    %636 = vector.extract_strided_slice %612 {offsets = [0, 0], sizes = [16, 1], strides = [1, 1]} : vector<16x8xf32> to vector<16x1xf32>
    %637 = vector.broadcast %635 : vector<1x16xf32> to vector<16x16xf32>
    %638 = vector.broadcast %636 : vector<16x1xf32> to vector<16x16xf32>
    %639 = arith.addf %637, %638 : vector<16x16xf32>
    %c64 = arith.constant 64 : index
    %640 = memref.load %arg5[%c64] : memref<83xf32, #tpu.memory_space<smem>>
    %641 = vector.broadcast %640 : f32 to vector<16x16xf32>
    %642 = arith.mulf %3, %641 : vector<16x16xf32>
    %643 = arith.addf %639, %642 : vector<16x16xf32>
    %c72_80 = arith.constant 72 : index
    %644 = memref.load %arg5[%c72_80] : memref<83xf32, #tpu.memory_space<smem>>
    %cst_81 = arith.constant 0.000000e+00 : f32
    %645 = vector.broadcast %cst_81 : f32 to vector<16x16xf32>
    %646 = arith.maximumf %643, %645 : vector<16x16xf32>
    %647 = vector.broadcast %644 : f32 to vector<16x16xf32>
    %648 = arith.mulf %647, %646 : vector<16x16xf32>
    %649 = arith.addf %634, %648 : vector<16x16xf32>
    %650 = vector.extract_strided_slice %616 {offsets = [1, 0], sizes = [1, 16], strides = [1, 1]} : vector<8x16xf32> to vector<1x16xf32>
    %651 = vector.extract_strided_slice %612 {offsets = [0, 1], sizes = [16, 1], strides = [1, 1]} : vector<16x8xf32> to vector<16x1xf32>
    %652 = vector.broadcast %650 : vector<1x16xf32> to vector<16x16xf32>
    %653 = vector.broadcast %651 : vector<16x1xf32> to vector<16x16xf32>
    %654 = arith.addf %652, %653 : vector<16x16xf32>
    %c65 = arith.constant 65 : index
    %655 = memref.load %arg5[%c65] : memref<83xf32, #tpu.memory_space<smem>>
    %656 = vector.broadcast %655 : f32 to vector<16x16xf32>
    %657 = arith.mulf %3, %656 : vector<16x16xf32>
    %658 = arith.addf %654, %657 : vector<16x16xf32>
    %c73 = arith.constant 73 : index
    %659 = memref.load %arg5[%c73] : memref<83xf32, #tpu.memory_space<smem>>
    %cst_82 = arith.constant 0.000000e+00 : f32
    %660 = vector.broadcast %cst_82 : f32 to vector<16x16xf32>
    %661 = arith.maximumf %658, %660 : vector<16x16xf32>
    %662 = vector.broadcast %659 : f32 to vector<16x16xf32>
    %663 = arith.mulf %662, %661 : vector<16x16xf32>
    %664 = arith.addf %649, %663 : vector<16x16xf32>
    %665 = vector.extract_strided_slice %616 {offsets = [2, 0], sizes = [1, 16], strides = [1, 1]} : vector<8x16xf32> to vector<1x16xf32>
    %666 = vector.extract_strided_slice %612 {offsets = [0, 2], sizes = [16, 1], strides = [1, 1]} : vector<16x8xf32> to vector<16x1xf32>
    %667 = vector.broadcast %665 : vector<1x16xf32> to vector<16x16xf32>
    %668 = vector.broadcast %666 : vector<16x1xf32> to vector<16x16xf32>
    %669 = arith.addf %667, %668 : vector<16x16xf32>
    %c66 = arith.constant 66 : index
    %670 = memref.load %arg5[%c66] : memref<83xf32, #tpu.memory_space<smem>>
    %671 = vector.broadcast %670 : f32 to vector<16x16xf32>
    %672 = arith.mulf %3, %671 : vector<16x16xf32>
    %673 = arith.addf %669, %672 : vector<16x16xf32>
    %c74 = arith.constant 74 : index
    %674 = memref.load %arg5[%c74] : memref<83xf32, #tpu.memory_space<smem>>
    %cst_83 = arith.constant 0.000000e+00 : f32
    %675 = vector.broadcast %cst_83 : f32 to vector<16x16xf32>
    %676 = arith.maximumf %673, %675 : vector<16x16xf32>
    %677 = vector.broadcast %674 : f32 to vector<16x16xf32>
    %678 = arith.mulf %677, %676 : vector<16x16xf32>
    %679 = arith.addf %664, %678 : vector<16x16xf32>
    %680 = vector.extract_strided_slice %616 {offsets = [3, 0], sizes = [1, 16], strides = [1, 1]} : vector<8x16xf32> to vector<1x16xf32>
    %681 = vector.extract_strided_slice %612 {offsets = [0, 3], sizes = [16, 1], strides = [1, 1]} : vector<16x8xf32> to vector<16x1xf32>
    %682 = vector.broadcast %680 : vector<1x16xf32> to vector<16x16xf32>
    %683 = vector.broadcast %681 : vector<16x1xf32> to vector<16x16xf32>
    %684 = arith.addf %682, %683 : vector<16x16xf32>
    %c67 = arith.constant 67 : index
    %685 = memref.load %arg5[%c67] : memref<83xf32, #tpu.memory_space<smem>>
    %686 = vector.broadcast %685 : f32 to vector<16x16xf32>
    %687 = arith.mulf %3, %686 : vector<16x16xf32>
    %688 = arith.addf %684, %687 : vector<16x16xf32>
    %c75 = arith.constant 75 : index
    %689 = memref.load %arg5[%c75] : memref<83xf32, #tpu.memory_space<smem>>
    %cst_84 = arith.constant 0.000000e+00 : f32
    %690 = vector.broadcast %cst_84 : f32 to vector<16x16xf32>
    %691 = arith.maximumf %688, %690 : vector<16x16xf32>
    %692 = vector.broadcast %689 : f32 to vector<16x16xf32>
    %693 = arith.mulf %692, %691 : vector<16x16xf32>
    %694 = arith.addf %679, %693 : vector<16x16xf32>
    %695 = vector.extract_strided_slice %616 {offsets = [4, 0], sizes = [1, 16], strides = [1, 1]} : vector<8x16xf32> to vector<1x16xf32>
    %696 = vector.extract_strided_slice %612 {offsets = [0, 4], sizes = [16, 1], strides = [1, 1]} : vector<16x8xf32> to vector<16x1xf32>
    %697 = vector.broadcast %695 : vector<1x16xf32> to vector<16x16xf32>
    %698 = vector.broadcast %696 : vector<16x1xf32> to vector<16x16xf32>
    %699 = arith.addf %697, %698 : vector<16x16xf32>
    %c68 = arith.constant 68 : index
    %700 = memref.load %arg5[%c68] : memref<83xf32, #tpu.memory_space<smem>>
    %701 = vector.broadcast %700 : f32 to vector<16x16xf32>
    %702 = arith.mulf %3, %701 : vector<16x16xf32>
    %703 = arith.addf %699, %702 : vector<16x16xf32>
    %c76 = arith.constant 76 : index
    %704 = memref.load %arg5[%c76] : memref<83xf32, #tpu.memory_space<smem>>
    %cst_85 = arith.constant 0.000000e+00 : f32
    %705 = vector.broadcast %cst_85 : f32 to vector<16x16xf32>
    %706 = arith.maximumf %703, %705 : vector<16x16xf32>
    %707 = vector.broadcast %704 : f32 to vector<16x16xf32>
    %708 = arith.mulf %707, %706 : vector<16x16xf32>
    %709 = arith.addf %694, %708 : vector<16x16xf32>
    %710 = vector.extract_strided_slice %616 {offsets = [5, 0], sizes = [1, 16], strides = [1, 1]} : vector<8x16xf32> to vector<1x16xf32>
    %711 = vector.extract_strided_slice %612 {offsets = [0, 5], sizes = [16, 1], strides = [1, 1]} : vector<16x8xf32> to vector<16x1xf32>
    %712 = vector.broadcast %710 : vector<1x16xf32> to vector<16x16xf32>
    %713 = vector.broadcast %711 : vector<16x1xf32> to vector<16x16xf32>
    %714 = arith.addf %712, %713 : vector<16x16xf32>
    %c69 = arith.constant 69 : index
    %715 = memref.load %arg5[%c69] : memref<83xf32, #tpu.memory_space<smem>>
    %716 = vector.broadcast %715 : f32 to vector<16x16xf32>
    %717 = arith.mulf %3, %716 : vector<16x16xf32>
    %718 = arith.addf %714, %717 : vector<16x16xf32>
    %c77 = arith.constant 77 : index
    %719 = memref.load %arg5[%c77] : memref<83xf32, #tpu.memory_space<smem>>
    %cst_86 = arith.constant 0.000000e+00 : f32
    %720 = vector.broadcast %cst_86 : f32 to vector<16x16xf32>
    %721 = arith.maximumf %718, %720 : vector<16x16xf32>
    %722 = vector.broadcast %719 : f32 to vector<16x16xf32>
    %723 = arith.mulf %722, %721 : vector<16x16xf32>
    %724 = arith.addf %709, %723 : vector<16x16xf32>
    %725 = vector.extract_strided_slice %616 {offsets = [6, 0], sizes = [1, 16], strides = [1, 1]} : vector<8x16xf32> to vector<1x16xf32>
    %726 = vector.extract_strided_slice %612 {offsets = [0, 6], sizes = [16, 1], strides = [1, 1]} : vector<16x8xf32> to vector<16x1xf32>
    %727 = vector.broadcast %725 : vector<1x16xf32> to vector<16x16xf32>
    %728 = vector.broadcast %726 : vector<16x1xf32> to vector<16x16xf32>
    %729 = arith.addf %727, %728 : vector<16x16xf32>
    %c70 = arith.constant 70 : index
    %730 = memref.load %arg5[%c70] : memref<83xf32, #tpu.memory_space<smem>>
    %731 = vector.broadcast %730 : f32 to vector<16x16xf32>
    %732 = arith.mulf %3, %731 : vector<16x16xf32>
    %733 = arith.addf %729, %732 : vector<16x16xf32>
    %c78 = arith.constant 78 : index
    %734 = memref.load %arg5[%c78] : memref<83xf32, #tpu.memory_space<smem>>
    %cst_87 = arith.constant 0.000000e+00 : f32
    %735 = vector.broadcast %cst_87 : f32 to vector<16x16xf32>
    %736 = arith.maximumf %733, %735 : vector<16x16xf32>
    %737 = vector.broadcast %734 : f32 to vector<16x16xf32>
    %738 = arith.mulf %737, %736 : vector<16x16xf32>
    %739 = arith.addf %724, %738 : vector<16x16xf32>
    %740 = vector.extract_strided_slice %616 {offsets = [7, 0], sizes = [1, 16], strides = [1, 1]} : vector<8x16xf32> to vector<1x16xf32>
    %741 = vector.extract_strided_slice %612 {offsets = [0, 7], sizes = [16, 1], strides = [1, 1]} : vector<16x8xf32> to vector<16x1xf32>
    %742 = vector.broadcast %740 : vector<1x16xf32> to vector<16x16xf32>
    %743 = vector.broadcast %741 : vector<16x1xf32> to vector<16x16xf32>
    %744 = arith.addf %742, %743 : vector<16x16xf32>
    %c71 = arith.constant 71 : index
    %745 = memref.load %arg5[%c71] : memref<83xf32, #tpu.memory_space<smem>>
    %746 = vector.broadcast %745 : f32 to vector<16x16xf32>
    %747 = arith.mulf %3, %746 : vector<16x16xf32>
    %748 = arith.addf %744, %747 : vector<16x16xf32>
    %c79 = arith.constant 79 : index
    %749 = memref.load %arg5[%c79] : memref<83xf32, #tpu.memory_space<smem>>
    %cst_88 = arith.constant 0.000000e+00 : f32
    %750 = vector.broadcast %cst_88 : f32 to vector<16x16xf32>
    %751 = arith.maximumf %748, %750 : vector<16x16xf32>
    %752 = vector.broadcast %749 : f32 to vector<16x16xf32>
    %753 = arith.mulf %752, %751 : vector<16x16xf32>
    %754 = arith.addf %739, %753 : vector<16x16xf32>
    %cst_89 = arith.constant dense<0xFF800000> : vector<16xf32>
    %755 = vector.multi_reduction <maximumf>, %754, %cst_89 [1] : vector<16x16xf32> to vector<16xf32>
    %756 = vector.shape_cast %755 : vector<16xf32> to vector<16x1xf32>
    %757 = vector.broadcast %756 : vector<16x1xf32> to vector<16x16xf32>
    %758 = arith.subf %754, %757 : vector<16x16xf32>
    %759 = math.exp %758 : vector<16x16xf32>
    %cst_90 = arith.constant dense<0.000000e+00> : vector<16xf32>
    %760 = vector.multi_reduction <add>, %759, %cst_90 [1] : vector<16x16xf32> to vector<16xf32>
    %761 = vector.shape_cast %760 : vector<16xf32> to vector<16x1xf32>
    %cst_91 = arith.constant 9.99999968E-21 : f32
    %762 = vector.broadcast %cst_91 : f32 to vector<16x1xf32>
    %763 = arith.maximumf %761, %762 : vector<16x1xf32>
    %cst_92 = arith.constant 1.000000e+00 : f32
    %764 = vector.broadcast %cst_92 : f32 to vector<16x1xf32>
    %765 = arith.divf %764, %763 : vector<16x1xf32>
    %766 = vector.broadcast %765 : vector<16x1xf32> to vector<16x16xf32>
    %767 = arith.mulf %759, %766 : vector<16x16xf32>
    %cst_93 = arith.constant dense<0.000000e+00> : vector<16x8xf32>
    %768 = tpu.matmul %767, %608, %cst_93 {dimension_numbers = #tpu.dot_dimension_numbers<[1], [0], [0], [1], [0, 0, 1, 1], [], []>} : vector<16x16xf32>, vector<16x8xf32>, vector<16x8xf32> -> vector<16x8xf32>
    %769 = vector.extract_strided_slice %602 {offsets = [2, 0], sizes = [1, 8], strides = [1, 1]} : vector<4x8xf32> to vector<1x8xf32>
    %770 = vector.broadcast %769 : vector<1x8xf32> to vector<16x8xf32>
    %771 = arith.addf %768, %770 : vector<16x8xf32>
    %cst_94 = arith.constant 0.000000e+00 : f32
    %772 = vector.broadcast %cst_94 : f32 to vector<16x8xf32>
    %773 = arith.maximumf %771, %772 : vector<16x8xf32>
    %c152 = arith.constant 152 : index
    %c0_95 = arith.constant 0 : index
    %774 = vector.load %arg4[%c152, %c0_95] : memref<168x32xf32, #tpu.memory_space<vmem>>, vector<9x2xf32>
    %c0_96 = arith.constant 0 : index
    %c0_97 = arith.constant 0 : index
    %775 = vector.load %arg3[%c0_96, %c0_97] : memref<2x16xf32, #tpu.memory_space<vmem>>, vector<2x16xf32>
    %cst_98 = arith.constant dense<0.000000e+00> : vector<2x8xf32>
    %776 = tpu.matmul %775, %773, %cst_98 {dimension_numbers = #tpu.dot_dimension_numbers<[1], [0], [0], [1], [0, 0, 1, 1], [], []>} : vector<2x16xf32>, vector<16x8xf32>, vector<2x8xf32> -> vector<2x8xf32>
    %777 = vector.extract_strided_slice %774 {offsets = [0, 0], sizes = [8, 2], strides = [1, 1]} : vector<9x2xf32> to vector<8x2xf32>
    %cst_99 = arith.constant dense<0.000000e+00> : vector<2x2xf32>
    %778 = tpu.matmul %776, %777, %cst_99 {dimension_numbers = #tpu.dot_dimension_numbers<[1], [0], [0], [1], [0, 0, 1, 1], [], []>} : vector<2x8xf32>, vector<8x2xf32>, vector<2x2xf32> -> vector<2x2xf32>
    %779 = vector.extract_strided_slice %774 {offsets = [8, 0], sizes = [1, 2], strides = [1, 1]} : vector<9x2xf32> to vector<1x2xf32>
    %780 = vector.broadcast %779 : vector<1x2xf32> to vector<2x2xf32>
    %781 = arith.addf %778, %780 : vector<2x2xf32>
    %cst_100 = arith.constant dense<0xFF800000> : vector<2xf32>
    %782 = vector.multi_reduction <maximumf>, %781, %cst_100 [1] : vector<2x2xf32> to vector<2xf32>
    %783 = vector.shape_cast %782 : vector<2xf32> to vector<2x1xf32>
    %784 = vector.broadcast %783 : vector<2x1xf32> to vector<2x2xf32>
    %785 = arith.subf %781, %784 : vector<2x2xf32>
    %786 = math.exp %785 : vector<2x2xf32>
    %cst_101 = arith.constant dense<0.000000e+00> : vector<2xf32>
    %787 = vector.multi_reduction <add>, %786, %cst_101 [1] : vector<2x2xf32> to vector<2xf32>
    %788 = vector.shape_cast %787 : vector<2xf32> to vector<2x1xf32>
    %789 = vector.broadcast %788 : vector<2x1xf32> to vector<2x2xf32>
    %790 = arith.divf %786, %789 : vector<2x2xf32>
    %c0_102 = arith.constant 0 : index
    %c0_103 = arith.constant 0 : index
    %791 = vector.load %arg6[%c0_102, %c0_103] : memref<2x2xf32, #tpu.memory_space<vmem>>, vector<2x2xf32>
    tpu.vector_store %arg6[%c0_102, %c0_103], %790 {strides = array<i32>} : memref<2x2xf32, #tpu.memory_space<vmem>>, vector<2x2xf32>,
    return
  }
}

</mosaic_0001>

<bundles_post_ra>
// kernel: tpu_custom_call.1
= control target key start
LH: loop header
LB: loop body
LE: loop exit
PB: predicated region body
PF: predicated region fallthrough
CT: control target
= control target key end

     0   :  { %s4360_s0 = inlined_call_operand.vmem [shape: f32[16,8], index: 0, kind: input, shape index: {}]   ;;  %s4361_s1 = inlined_call_operand.vmem [shape: bf16[16,16], index: 1, kind: input, shape index: {}]   ;;  %s4362_s2 = inlined_call_operand.vmem [shape: bf16[16,16], index: 2, kind: input, shape index: {}]   ;;  %s4363_s3 = inlined_call_operand.vmem [shape: f32[2,16], index: 3, kind: input, shape index: {}]   ;;  %s4364_s4 = inlined_call_operand.vmem [shape: f32[168,32], index: 4, kind: input, shape index: {}]   ;;  %s4365_s5 = inlined_call_operand.vmem [shape: f32[83], index: 5, kind: input, shape index: {}]   ;;  %s4366_s6 = inlined_call_operand.hbm [shape: f32[2,2], index: 6, kind: output, shape index: {}]  }
   0x1   :  { %4458 = sst [smem:[#allocation18_spill]] %s4363_s3 }
   0x2   :  { %4459 = sst [smem:[#allocation19_spill]] %s4364_s4 }
   0x3   :  { %4460 = sst [smem:[#allocation20_spill]] %s4366_s6 }
   0x4   :  { %11 = vsyncpa [#allocation4], 0 }
   0x5   :  { %12 = vsyncpa [#allocation3], 0  ;;  %s29_s23 = sshll.u32 %s4365_s5, 4  ;;  %s30_s23 = int_to_ptr.vmem [resolvable:$true] %s29_s23 }
   0x6   :  { %s2802_s24 = scalar_lea.vmem %s30_s23, 16  ;;  %p2807_p1 = scmp.lt.s32.totalorder %s30_s23, %s30_s23 }
   0x7   :  { %p2803_p0 = scmp.ne.s32.totalorder %s30_s23, %s2802_s24  ;;  %p2808_p2 = scmp.lt.s32.totalorder %s2802_s24, %s2802_s24 }
   0x9   :  { %p2809_p3 = por %p2808_p2, %p2807_p1 }
   0xb   :  { %p2810_p4 = pnand %p2809_p3, %p2803_p0 }
   0xd   :  { %2813 = shalt.err (!%p2810_p4)
}
   0xe   :  { %s2838_s25 = smov [#allocation2]  }
   0xf   :  { %32 = dma.vmem_to_smem %s30_s23, 16, %s2838_s25, [#allocation4]  }
  0x10   :  { %2834 = dma.done.wait [#allocation4], 16  }
  0x11   :  { %2835 = vsyncadd [#allocation4], 4294967280 }
  0x12   :  { %36 = sfence }
  0x13   :  { %v60_v0 = vld [vmem:[%s4364_s4 + $0x8] sm:$0xff]  ;;  %v48_v1 = vlaneseq  ;;  %vm66_vm0 = vcmask 64512   ;;  %v61_v2 = vld [vmem:[%s4364_s4 + $0x10] sm:$0xff]  ;;  %v45_v5 = vld [vmem:[%s4364_s4] sm:$0x3]  ;;  %v4367_v7 = vmov 0  }
  0x14   :  { %2584 = vmatprep.subr.mxu0 %v60_v0  ;;  %2593 = vmatprep.mubr.msk.f32.mxu1 %vm66_vm0, %v61_v2  ;;  %v65_v4 = vld [vmem:[%s4364_s4 + $0x30] sm:$0xff]  ;;  %v63_v6 = vld [vmem:[%s4364_s4 + $0x20] sm:$0xf]  ;;  %v47_v12 = vld [vmem:[%s4360_s0 + $0x8] sm:$0xff]  ;;  %s4422_s15 = smov 16   ;;  %v4397_v20 = vmov 1  }
  0x15   :  { %2585 = vmatpush3.msra.mxu0 %v60_v0  ;;  %v2916_v3 = vshrl.u32 %v48_v1, 7  ;;  %2692 = vset.pattern.permute.xlu1 %v4367_v7  ;;  %v46_v11 = vld [vmem:[%s4360_s0] sm:$0xff]  ;;  %v64_v19 = vld [vmem:[%s4364_s4 + $0x28] sm:$0xff]  ;;  %v62_v23 = vld [vmem:[%s4364_s4 + $0x18] sm:$0xff]  ;;  %v4393_v24 = vmov 17   ;;  %v4395_v25 = vmov 16  }
  0x16   :  { %2691 = vset.pattern.permute.xlu0 %v4367_v7  ;;  %171 = vperm.xlu1 %2692, %v65_v4   ;;  %v4391_v33 = vmov 18   ;;  %v4381_v34 = vmov 22   ;;  %v4387_v36 = vmov 19   ;;  %v4383_v37 = vmov 21   ;;  %s4417_s19 = smov 112   ;;  %s3082_s20 = sld [smem:[#allocation2 + $0x1]] }
  0x17   :  { %v2931_v8 = vsub.s32 0, %v2916_v3  ;;  %v2934_v9 = vsub.s32 1, %v2916_v3  ;;  %v2937_v10 = vsub.s32 3, %v2916_v3  ;;  %v4389_v38 = vmov 20   ;;  %s3086_s21 = sld [smem:[#allocation2]] }
  0x18   :  { %v4372_v39 = vmov 24   ;;  %v4379_v41 = vmov 25   ;;  %v4371_v43 = vmov 27   ;;  %v4375_v44 = vmov 28   ;;  %s3088_s22 = sld [smem:[#allocation2 + $0x11]] }
  0x19   :  { %4461 = vst [vmem:[#allocation8_spill] sm:$0xff] %v2931_v8  ;;  %4462 = vst [vmem:[#allocation9_spill] sm:$0xff] %v2934_v9  ;;  %v51_v13 = vrot.slane %v45_v5, %v2931_v8  ;;  %v57_v14 = vrot.slane %v45_v5, %v2934_v9  ;;  %v157_v15 = vrot.slane %v63_v6, %v2934_v9  ;;  %v4370_v45 = vmov 30   ;;  %s3092_s23 = sld [smem:[#allocation2 + $0x2]] }
  0x1a   :  { %4463 = vst [vmem:[#allocation10_spill] sm:$0xff] %v2937_v10  ;;  %v278_v18 = vrot.slane %v63_v6, %v2937_v10  ;;  %2693 = vset.pattern.permute.xlu1 %v4397_v20  ;;  %v151_v26 = vrot.slane %v63_v6, %v2931_v8  ;;  %v4385_v46 = vmov 23   ;;  %v4377_v48 = vmov 26   ;;  %s3094_s24 = sld [smem:[#allocation2 + $0x10]] }
  0x1b   :  { %v52_v16 = vmul.f32 %v51_v13, %v46_v11  ;;  %v53_v17 = vmul.f32 %v51_v13, %v47_v12  ;;  %159 = vrot.lane.b32.xlu0 %v157_v15, %s4422_s15  ;;  %256 = vperm.xlu1 %2693, %v64_v19   ;;  %v4373_v49 = vmov 29   ;;  %v4368_v51 = vmov 31   ;;  %s3101_s27 = sld [smem:[#allocation2 + $0x6]] }
  0x1c   :  { %vm265_vm1 = vcmask 130048   ;;  %s3103_s5 = sld [smem:[#allocation2 + $0x3]]  ;;  %vm2860_vm2 = vmmov 0   ;;  %vm2401_vm3 = vcmask 9216  }
  0x1d   :  { %v58_v21 = vadd.f32 %v57_v14, %v52_v16  ;;  %v59_v22 = vadd.f32 %v57_v14, %v53_v17  ;;  %s3107_s28 = sld [smem:[#allocation2 + $0x12]] }
  0x1e   :  { %s3112_s29 = sld [smem:[#allocation2 + $0x16]] }
  0x1f   :  { %2586 = vmatprep.mubr.msk.f32.mxu0 %vm66_vm0, %v58_v21  ;;  %280 = vrot.lane.b32.xlu0 %v278_v18, %s4422_s15  ;;  %s3127_s30 = sld [smem:[#allocation2 + $0x50]] }
  0x20   :  { %2587 = vmatmul.mubr.msk.f32.vlgmr.msra.gmra.mxu0 %vm66_vm0, %v59_v22  ;;  %2589 = vmatprep.subr.msk.mxu1 %vm66_vm0, %v59_v22  ;;  %s3136_s7 = sld [smem:[#allocation2 + $0x5]] }
  0x21   :  { %2590 = vmatpush3.xpose.msk.msra.mxu1 %vm66_vm0, %v59_v22  ;;  %2696 = vset.pattern.permute.xlu1 %v4393_v24  ;;  %s3164_s10 = sld [smem:[#allocation2 + $0x13]] }
  0x22   :  { %2591 = vmatprep.subr.msk.mxu1 %vm66_vm0, %v58_v21  ;;  %s3192_s11 = sld [smem:[#allocation2 + $0x7]] }
  0x23   :  { %166 = vperm.xlu0 %2691, %v64_v19   ;;  %s3203_s12 = sld [smem:[#allocation2 + $0x8]] }
  0x24   :  { %s3209_s13 = sld [smem:[#allocation2 + $0x9]] }
  0x25   :  { %2592 = vmatpush3.xpose.msk.msra.mxu1 %vm66_vm0, %v58_v21  ;;  %s3240_s14 = sld [smem:[#allocation2 + $0x14]] }
  0x26   :  { %s3256_s16 = sld [smem:[#allocation2 + $0xa]] }
  0x27   :  { %2694 = vset.pattern.permute.xlu0 %v4397_v20  ;;  %s3263_s17 = sld [smem:[#allocation2 + $0xb]] }
  0x28   :  { %2594 = vmatmul.mubr.msk.f32.vlgmr.msra.gmra.mxu1 %vm66_vm0, %v62_v23  ;;  %260 = vperm.xlu0 %2694, %v65_v4   ;;  %s3268_s0 = sld [smem:[#allocation2 + $0xc]] }
  0x29   :  { %s3281_s18 = sld [smem:[#allocation2 + $0x19]] }
  0x2a   :  { %s3290_s25 = sld [smem:[#allocation2 + $0xd]] }
  0x2b   :  { %s3303_s26 = sld [smem:[#allocation2 + $0xe]] }
  0x2c   :  { %2695 = vset.pattern.permute.xlu0 %v4395_v25  ;;  %s3307_s8 = sld [smem:[#allocation2 + $0x17]] }
  0x2d   :  { %s3318_s9 = sld [smem:[#allocation2 + $0xf]] }
  0x2e   :  { %s3352_s15 = sld [smem:[#allocation2 + $0x1a]] }
  0x2f   :  { %s3358_s6 = sld [smem:[#allocation2 + $0x1b]] }
  0x30   :  { %s3360_s3 = sld [smem:[#allocation2 + $0x1c]] }
  0x31   :  { %4471 = sst [smem:[#allocation16_spill]] %s3303_s26 }
  0x32   :  { %s3380_s4 = sld [smem:[#allocation2 + $0x1d]] }
  0x8d   :  { %v160_v27 = vpop.permute.xlu0 %159 }
  0x91   :  { %v281_v40 = vpop.permute.xlu0 %280  ;;  %v172_v50 = vpop.permute.xlu1 %171 }
  0x96   :  { %v257_v52 = vpop.permute.xlu1 %256 }
  0x9e   :  { %v167_v6 = vpop.permute.xlu0 %166 }
  0xa3   :  { %v261_v13 = vpop.permute.xlu0 %260 }
  0xe0   :  { %v2588_v28 = vpop.f32.mrf.mxu0 }
  0xe1   :  { %v153_v29 = vadd.f32 %v2588_v28, %v151_v26  ;;  %v2969_v30 = vadd.f32 %v2588_v28, %v160_v27 }
  0xe2   :  { %v139_v31 = vpop.f32.mrf.mxu0 }
  0xe3   :  { %v152_v32 = vadd.f32 %v151_v26, %v139_v31  ;;  %348 = vperm.xlu1 %2696, %v2969_v30   ;;  %320 = vperm.xlu0 %2695, %v2969_v30   ;;  %v2977_v35 = vadd.f32 %v160_v27, %v139_v31  ;;  %v284_v42 = vmul.f32 %v281_v40, %v2969_v30 }
  0xe4   :  { %2596 = vmatprep.subr.mxu0 %v153_v29 }
  0xe5   :  { %2597 = vmatpush3.msra.mxu0 %v153_v29  ;;  %v283_v47 = vmul.f32 %v281_v40, %v2977_v35 }
  0xe6   :  { %2598 = vmatprep.subr.mxu0 %v152_v32 }
  0xe7   :  { %2599 = vmatpush3.msra.mxu0 %v152_v32  ;;  %2697 = vset.pattern.permute.xlu1 %v4391_v33 }
  0xe8   :  { %2701 = vset.pattern.permute.xlu0 %v4381_v34  ;;  %376 = vperm.xlu1 %2697, %v2969_v30   ;;  %v2595_v11 = vpop.f32.mrf.mxu1 }
  0xe9   :  { %488 = vperm.xlu0 %2701, %v2969_v30   ;;  %v3064_v14 = vadd.f32 %v2595_v11, %v172_v50  ;;  %v3131_v11 = vsub.s32 2, %v2916_v3 }
  0xea   :  { %v246_v12 = vpop.f32.mrf.mxu1 }
  0xeb   :  { %v3066_v15 = vadd.f32 %v246_v12, %v167_v6  ;;  %v264_v19 = vmul.f32 %v261_v13, %v3064_v14  ;;  %v4402_v6 = vstv %s3082_s20  ;;  %4464 = vst [vmem:[#allocation11_spill] sm:$0xff] %v3131_v11  ;;  %v3134_v12 = vsub.s32 6, %v2916_v3 }
  0xec   :  { %2698 = vset.pattern.permute.xlu1 %v4387_v36 }
  0xed   :  { %2707 = vset.pattern.permute.xlu0 %v4383_v37  ;;  %404 = vperm.xlu1 %2698, %v2969_v30   ;;  %v263_v18 = vmul.f32 %v257_v52, %v3066_v15  ;;  %v267_v23 = vsel %vm265_vm1, %v264_v19, 0.0  ;;  %v3143_v19 = vsub.s32 5, %v2916_v3 }
  0xee   :  { %456 = vperm.xlu0 %2707, %v2977_v35  }
  0xef   :  { %v266_v22 = vsel %vm265_vm1, %v263_v18, 0.0 }
  0xf0   :  { %v268_v27 = vadd.f32 %v267_v23, %v266_v22 }
  0xf1   :  { %2699 = vset.pattern.permute.xlu1 %v4389_v38 }
  0xf2   :  { %2710 = vset.pattern.permute.xlu0 %v4372_v39  ;;  %432 = vperm.xlu1 %2699, %v2969_v30   ;;  %v269_v29 = vrot.slane %v268_v27, 4 }
  0xf3   :  { %540 = vperm.xlu0 %2710, %v2977_v35  }
  0xf4   :  { %v270_v31 = vadd.f32 %v269_v29, %v268_v27  ;;  %v3150_v27 = vld [vmem:[%s4361_s1] sm:$0xff]   ;;  %s3180_s1 = sld [smem:[#allocation2 + $0x15]] }
  0xf6   :  { %2700 = vset.pattern.permute.xlu1 %v4383_v37  ;;  %v271_v40 = vrot.slane %v270_v31, 2 }
  0xf7   :  { %2713 = vset.pattern.permute.xlu0 %v4379_v41  ;;  %460 = vperm.xlu1 %2700, %v2969_v30  }
  0xf8   :  { %572 = vperm.xlu0 %2713, %v2969_v30  }
  0xfb   :  { %289 = vrot.lane.b32.xlu1 %v284_v42, %s4417_s19  ;;  %v3099_v42 = vld [vmem:[%s4362_s2] sm:$0xff]   ;;  %s3121_s2 = sld [smem:[#allocation2 + $0x4]] }
  0xfc   :  { %2715 = vset.pattern.permute.xlu0 %v4371_v43  ;;  %2702 = vset.pattern.permute.xlu1 %v4395_v25  ;;  %v3110_v50 = vunpack.c.h.bf16 %v3099_v42 }
  0xfd   :  { %624 = vperm.xlu0 %2715, %v2977_v35  }
  0xff   :  { %315 = vperm.xlu1 %2702, %v2977_v35  }
 0x101   :  { %2718 = vset.pattern.permute.xlu0 %v4375_v44 }
 0x102   :  { %656 = vperm.xlu0 %2718, %v2969_v30  }
 0x103   :  { %2703 = vset.pattern.permute.xlu1 %v4393_v24 }
 0x104   :  { %344 = vperm.xlu1 %2703, %v2977_v35  }
 0x106   :  { %2720 = vset.pattern.permute.xlu0 %v4370_v45 }
 0x108   :  { %2704 = vset.pattern.permute.xlu1 %v4391_v33  ;;  %v4404_v33 = vstv %s3121_s2 }
 0x109   :  { %372 = vperm.xlu1 %2704, %v2977_v35  }
 0x10d   :  { %2705 = vset.pattern.permute.xlu1 %v4387_v36 }
 0x10e   :  { %400 = vperm.xlu1 %2705, %v2977_v35  }
 0x112   :  { %2706 = vset.pattern.permute.xlu1 %v4389_v38 }
 0x113   :  { %428 = vperm.xlu1 %2706, %v2977_v35  }
 0x117   :  { %2708 = vset.pattern.permute.xlu1 %v4381_v34 }
 0x118   :  { %484 = vperm.xlu1 %2708, %v2977_v35  }
 0x11c   :  { %2709 = vset.pattern.permute.xlu1 %v4385_v46 }
 0x11d   :  { %512 = vperm.xlu1 %2709, %v2977_v35  }
 0x121   :  { %287 = vrot.lane.b32.xlu1 %v283_v47, %s4417_s19  ;;  %s3322_s19 = sld [smem:[#allocation2 + $0x18]] }
 0x125   :  { %516 = vperm.xlu1 %2709, %v2969_v30  }
 0x127   :  { %4474 = sst [smem:[#allocation17_spill]] %s3322_s19 }
 0x129   :  { %2711 = vset.pattern.permute.xlu1 %v4372_v39 }
 0x12a   :  { %544 = vperm.xlu1 %2711, %v2969_v30  }
 0x12e   :  { %2712 = vset.pattern.permute.xlu1 %v4379_v41 }
 0x12f   :  { %568 = vperm.xlu1 %2712, %v2977_v35  }
 0x133   :  { %2714 = vset.pattern.permute.xlu1 %v4377_v48  ;;  %v3183_v48 = vunpack.c.h.bf16 %v3150_v27 }
 0x134   :  { %596 = vperm.xlu1 %2714, %v2977_v35  }
 0x135   :  { %4467 = vst [vmem:[#allocation14_spill] sm:$0xff] %v3183_v48 }
 0x138   :  { %600 = vperm.xlu1 %2714, %v2969_v30  }
 0x13c   :  { %2716 = vset.pattern.permute.xlu1 %v4371_v43  ;;  %v3167_v43 = vsub.s32 4, %v2916_v3 }
 0x13d   :  { %628 = vperm.xlu1 %2716, %v2969_v30  }
 0x13e   :  { %4466 = vst [vmem:[#allocation13_spill] sm:$0xff] %v3167_v43  ;;  %v3200_v38 = vrot.slane %v3066_v15, %v3167_v43 }
 0x141   :  { %2717 = vset.pattern.permute.xlu1 %v4375_v44  ;;  %v3177_v44 = vrot.slane %v3066_v15, %v2937_v10 }
 0x142   :  { %652 = vperm.xlu1 %2717, %v2977_v35  }
 0x146   :  { %2719 = vset.pattern.permute.xlu1 %v4373_v49  ;;  %v3250_v49 = vrot.slane %v3064_v14, %v2937_v10 }
 0x147   :  { %680 = vperm.xlu1 %2719, %v2977_v35  }
 0x14b   :  { %684 = vperm.xlu1 %2719, %v2969_v30  }
 0x14f   :  { %2721 = vset.pattern.permute.xlu1 %v4370_v45  ;;  %v356_v45 = vmul.f32 %v3110_v50, %v4402_v6 }
 0x150   :  { %712 = vperm.xlu1 %2721, %v2969_v30  }
 0x154   :  { %2722 = vset.pattern.permute.xlu1 %v4368_v51 }
 0x15e   :  { %v3032_v53 = vpop.permute.xlu1 %348  ;;  %v321_v16 = vpop.permute.xlu0 %320 }
 0x163   :  { %v3034_v54 = vpop.permute.xlu1 %376 }
 0x164   :  { %v3072_v21 = vpop.permute.xlu0 %488 }
 0x168   :  { %v3036_v55 = vpop.permute.xlu1 %404 }
 0x169   :  { %v3078_v28 = vpop.permute.xlu0 %456 }
 0x16d   :  { %v3038_v56 = vpop.permute.xlu1 %432 }
 0x16e   :  { %v3084_v32 = vpop.permute.xlu0 %540  ;;  %v436_v25 = vadd.f32 %v3038_v56, %v3200_v38 }
 0x172   :  { %v3040_v57 = vpop.permute.xlu1 %460 }
 0x173   :  { %v3105_v47 = vpop.permute.xlu0 %572 }
 0x176   :  { %v290_v58 = vpop.permute.xlu1 %289 }
 0x177   :  { %v296_v59 = vsel %vm265_vm1, %v290_v58, 0.0  ;;  %v272_v58 = vadd.f32 %v271_v40, %v270_v31  ;;  %v3155_v31 = vrot.slane %v3066_v15, %v3131_v11  ;;  %v4401_v40 = vstv %s3092_s23 }
 0x178   :  { %297 = vadd.xlane.f32.xlu0 %v296_v59  ;;  %v3118_v59 = vrot.slane %v3066_v15, %v2931_v8  ;;  %v3145_v22 = vpop.permute.xlu0 %624 }
 0x179   :  { %4465 = vst [vmem:[#allocation12_spill] sm:$0xff] %v3145_v22  ;;  %v273_v23 = vrot.slane %v272_v58, 1  ;;  %v380_v36 = vadd.f32 %v3034_v54, %v3155_v31  ;;  %v408_v54 = vadd.f32 %v3036_v55, %v3177_v44  ;;  %v440_v55 = vmul.f32 %v3110_v50, %v4404_v33 }
 0x17a   :  { %v3043_v60 = vpop.permute.xlu1 %315  ;;  %v324_v29 = vadd.f32 %v321_v16, %v3118_v59  ;;  %v3170_v16 = vsub.s32 7, %v2916_v3  ;;  %v384_v3 = vmul.f32 %v3110_v50, %v4401_v40 }
 0x17b   :  { %v3194_v37 = vadd.f32 %v273_v23, %v272_v58  ;;  %v4412_v23 = vstv %s3136_s7 }
 0x17d   :  { %v3211_v58 = vpop.permute.xlu0 %656  ;;  %v300_v40 = vadd.f32 %v3183_v48, %v3194_v37 }
 0x17f   :  { %v3045_v61 = vpop.permute.xlu1 %344 }
 0x184   :  { %v3047_v62 = vpop.permute.xlu1 %372 }
 0x189   :  { %v3049_v63 = vpop.permute.xlu1 %400 }
 0x18e   :  { %708 = vperm.xlu0 %2720, %v2977_v35   ;;  %v3052_v0 = vpop.permute.xlu1 %428 }
 0x192   :  { %2723 = vset.pattern.permute.xlu0 %v4368_v51 }
 0x193   :  { %740 = vperm.xlu0 %2723, %v2969_v30   ;;  %v3056_v1 = vpop.permute.xlu1 %484 }
 0x197   :  { %2724 = vset.pattern.permute.xlu0 %v4367_v7 }
 0x198   :  { %v3059_v2 = vpop.permute.xlu1 %512 }
 0x19c   :  { %v288_v4 = vpop.permute.xlu1 %287 }
 0x19d   :  { %v293_v5 = vsel %vm265_vm1, %v288_v4, 0.0  ;;  %v4403_v4 = vstv %s3086_s21 }
 0x19e   :  { %294 = vadd.xlane.f32.xlu1 %v293_v5  ;;  %v3125_v5 = vrot.slane %v3066_v15, %v2934_v9  ;;  %v328_v18 = vmul.f32 %v3110_v50, %v4403_v4  ;;  %v386_v4 = vadd.f32 %v384_v3, %v380_v36  ;;  %v3254_v36 = vrot.slane %v3064_v14, %v3167_v43 }
 0x19f   :  { %v468_v3 = vmul.f32 %v3110_v50, %v4412_v23  ;;  %v4469_v43 = vstv %s3094_s24  ;;  %v442_v23 = vadd.f32 %v440_v55, %v436_v25 }
 0x1a0   :  { %v3068_v17 = vpop.permute.xlu1 %516  ;;  %v352_v51 = vadd.f32 %v3032_v53, %v3125_v5  ;;  %v4400_v53 = vstv %s3103_s5  ;;  %v330_v46 = vadd.f32 %v328_v18, %v324_v29  ;;  %v4405_v18 = vstv %s3127_s30 }
 0x1a1   :  { %v412_v20 = vmul.f32 %v3110_v50, %v4400_v53  ;;  %v3219_v29 = vrot.slane %v3064_v14, %v2931_v8  ;;  %v306_v41 = vmul.f32 %v3110_v50, %v4405_v18  ;;  %v389_v8 = vmax.f32 %v386_v4, 0.0 }
 0x1a2   :  { %v358_v24 = vadd.f32 %v356_v45, %v352_v51  ;;  %v3223_v45 = vrot.slane %v3064_v14, %v2934_v9  ;;  %v3227_v51 = vrot.slane %v3066_v15, %v3134_v12  ;;  %v333_v6 = vmax.f32 %v330_v46, 0.0 }
 0x1a3   :  { %v414_v56 = vadd.f32 %v412_v20, %v408_v54  ;;  %v3272_v20 = vrot.slane %v3066_v15, %v3170_v16  ;;  %v4421_v54 = vstv %s3192_s11  ;;  %v4470_v9 = vstv %s3088_s22 }
 0x1a4   :  { %v361_v13 = vmax.f32 %v358_v24, 0.0  ;;  %v492_v33 = vadd.f32 %v3072_v21, %v3227_v51  ;;  %v524_v21 = vmul.f32 %v3110_v50, %v4421_v54  ;;  %v3297_v4 = vrot.slane %v3064_v14, %v3131_v11 }
 0x1a5   :  { %v3076_v26 = vpop.permute.xlu1 %544  ;;  %v520_v25 = vadd.f32 %v3068_v17, %v3272_v20  ;;  %v4472_v17 = vstv %s3107_s28  ;;  %v576_v55 = vadd.f32 %v3105_v47, %v3223_v45 }
 0x1aa   :  { %v3080_v30 = vpop.permute.xlu1 %568 }
 0x1af   :  { %736 = vperm.xlu1 %2722, %v2977_v35   ;;  %v3090_v35 = vpop.permute.xlu1 %596 }
 0x1b3   :  { %2725 = vset.pattern.permute.xlu1 %v4367_v7  ;;  %v3114_v52 = vpop.permute.xlu1 %600  ;;  %v4399_v7 = vstv %s3101_s27 }
 0x1b4   :  { %v496_v34 = vmul.f32 %v3110_v50, %v4399_v7  ;;  %v3231_v7 = vrot.slane %v3066_v15, %v3143_v19  ;;  %v417_v15 = vmax.f32 %v414_v56, 0.0 }
 0x1b6   :  { %v464_v24 = vadd.f32 %v3040_v57, %v3231_v7  ;;  %v336_v57 = vmul.f32 %v4469_v43, %v333_v6  ;;  %v3301_v6 = vrot.slane %v3064_v14, %v3143_v19 }
 0x1b8   :  { %v3172_v39 = vpop.permute.xlu1 %628  ;;  %v470_v22 = vadd.f32 %v468_v3, %v464_v24  ;;  %v4427_v24 = vstv %s3256_s16 }
 0x1b9   :  { %v608_v47 = vmul.f32 %v3110_v50, %v4427_v24 }
 0x1ba   :  { %v473_v3 = vmax.f32 %v470_v22, 0.0  ;;  %v604_v22 = vadd.f32 %v3114_v52, %v3297_v4  ;;  %v632_v52 = vadd.f32 %v3172_v39, %v3250_v49 }
 0x1bd   :  { %v3236_v53 = vpop.permute.xlu1 %652 }
 0x1be   :  { %4468 = vst [vmem:[#allocation15_spill] sm:$0xff] %v3236_v53  ;;  %v364_v53 = vmul.f32 %v4470_v9, %v361_v13  ;;  %v392_v13 = vmul.f32 %v4472_v17, %v389_v8  ;;  %v4473_v8 = vstv %s3164_s10 }
 0x1c2   :  { %v3286_v48 = vpop.permute.xlu1 %680 }
 0x201   :  { %v298_v46 = vpop.xlane.xlu0 %297 }
 0x202   :  { %v302_v18 = vadd.f32 %v300_v40, %v298_v46  ;;  %v4420_v40 = vstv %s3203_s12  ;;  %v4419_v46 = vstv %s3209_s13 }
 0x203   :  { %v552_v43 = vmul.f32 %v3110_v50, %v4420_v40  ;;  %v580_v56 = vmul.f32 %v3110_v50, %v4419_v46  ;;  %v685_v46 = vpop.permute.xlu1 %684 }
 0x204   :  { %v308_v10 = vadd.f32 %v306_v41, %v302_v18  ;;  %v498_v41 = vadd.f32 %v496_v34, %v492_v33  ;;  %v445_v18 = vmax.f32 %v442_v23, 0.0  ;;  %v4426_v34 = vstv %s3240_s14 }
 0x205   :  { %v420_v23 = vmul.f32 %v4473_v8, %v417_v15  ;;  %v4433_v15 = vstv %s3281_s18 }
 0x206   :  { %v338_v9 = vadd.f32 %v336_v57, %v308_v10  ;;  %v548_v10 = vadd.f32 %v3076_v26, %v3219_v29  ;;  %v526_v57 = vadd.f32 %v524_v21, %v520_v25  ;;  %v501_v26 = vmax.f32 %v498_v41, 0.0 }
 0x207   :  { %v448_v40 = vmul.f32 %v4426_v34, %v445_v18  ;;  %v582_v25 = vadd.f32 %v580_v56, %v576_v55  ;;  %v4475_v18 = vstv %s3180_s1  ;;  %v660_v55 = vadd.f32 %v3211_v58, %v3254_v36 }
 0x208   :  { %v366_v33 = vadd.f32 %v364_v53, %v338_v9  ;;  %v4425_v53 = vstv %s3263_s17  ;;  %v4424_v9 = vstv %s3268_s0  ;;  %v554_v54 = vadd.f32 %v552_v43, %v548_v10 }
 0x209   :  { %v636_v41 = vmul.f32 %v3110_v50, %v4425_v53  ;;  %v476_v8 = vmul.f32 %v4475_v18, %v473_v3  ;;  %v529_v43 = vmax.f32 %v526_v57, 0.0  ;;  %v664_v56 = vmul.f32 %v3110_v50, %v4424_v9  ;;  %v713_v53 = vpop.permute.xlu1 %712 }
 0x20a   :  { %v394_v17 = vadd.f32 %v392_v13, %v366_v33  ;;  %v3339_v13 = vrot.slane %v3064_v14, %v3134_v12  ;;  %v3341_v33 = vpop.permute.xlu0 %708  ;;  %v4476_v3 = vstv %s3112_s29  ;;  %v557_v39 = vmax.f32 %v554_v54, 0.0 }
 0x20b   :  { %v504_v57 = vmul.f32 %v4476_v3, %v501_v26  ;;  %v585_v18 = vmax.f32 %v582_v25, 0.0  ;;  %v530_v58 = vstv %s3307_s8  ;;  %v746_v34 = vstv %s3318_s9  ;;  %s3732_s8 = sld [smem:[#allocation2 + $0x51]] }
 0x20c   :  { %v422_v21 = vadd.f32 %v420_v23, %v394_v17  ;;  %v4428_v23 = vstv %s3290_s25  ;;  %v718_v17 = vstv %s3303_s26  ;;  %v532_v24 = vmul.f32 %v530_v58, %v529_v43  ;;  %s3385_s26 = sld [smem:[#allocation2 + $0x1e]] }
 0x20d   :  { %v692_v9 = vmul.f32 %v3110_v50, %v4428_v23  ;;  %v638_v26 = vadd.f32 %v636_v41, %v632_v52  ;;  %v688_v3 = vadd.f32 %v685_v46, %v3301_v6  ;;  %v720_v25 = vmul.f32 %v3110_v50, %v718_v17  ;;  %s3738_s9 = sld [smem:[#allocation2 + $0x25]] }
 0x20e   :  { %v450_v10 = vadd.f32 %v448_v40, %v422_v21  ;;  %v610_v40 = vadd.f32 %v608_v47, %v604_v22  ;;  %v558_v47 = vstv %s3322_s19  ;;  %v666_v22 = vadd.f32 %v664_v56, %v660_v55  ;;  %s3392_s19 = sld [smem:[#allocation2 + $0x1f]] }
 0x20f   :  { %v560_v23 = vmul.f32 %v558_v47, %v557_v39  ;;  %v716_v46 = vadd.f32 %v713_v53, %v3339_v13  ;;  %v588_v52 = vmul.f32 %v4433_v15, %v585_v18  ;;  %v641_v55 = vmax.f32 %v638_v26, 0.0 }
 0x210   :  { %v478_v21 = vadd.f32 %v476_v8, %v450_v10  ;;  %v3376_v8 = vrot.slane %v3064_v14, %v3170_v16  ;;  %v741_v10 = vpop.permute.xlu0 %740  ;;  %v613_v43 = vmax.f32 %v610_v40, 0.0  ;;  %v748_v14 = vmul.f32 %v3110_v50, %v746_v34 }
 0x211   :  { %v694_v56 = vadd.f32 %v692_v9, %v688_v3  ;;  %v614_v40 = vstv %s3352_s15  ;;  %v669_v53 = vmax.f32 %v666_v22, 0.0  ;;  %v670_v15 = vstv %s3360_s3  ;;  %s3777_s3 = sld [smem:[#allocation2 + $0x32]] }
 0x212   :  { %v506_v54 = vadd.f32 %v504_v57, %v478_v21  ;;  %v744_v57 = vadd.f32 %v741_v10, %v3376_v8  ;;  %v722_v21 = vadd.f32 %v720_v25, %v716_v46  ;;  %v3401_v10 = vunpack.c.l.bf16 %v3099_v42  ;;  %s3800_s15 = sld [smem:[#allocation2 + $0x28]] }
 0x213   :  { %v697_v26 = vmax.f32 %v694_v56, 0.0  ;;  %v672_v22 = vmul.f32 %v670_v15, %v669_v53  ;;  %v323_v25 = vadd.f32 %v3043_v60, %v3118_v59  ;;  %v4477_v46 = vstv %s3086_s21  ;;  %s3763_s21 = sld [smem:[#allocation2 + $0x34]] }
 0x214   :  { %v534_v41 = vadd.f32 %v532_v24, %v506_v54  ;;  %v616_v24 = vmul.f32 %v614_v40, %v613_v43  ;;  %v642_v54 = vstv %s3358_s6  ;;  %v725_v43 = vmax.f32 %v722_v21, 0.0  ;;  %s4504_s6 = sld [smem:[#allocation19_spill]] }
 0x215   :  { %v644_v9 = vmul.f32 %v642_v54, %v641_v55  ;;  %v698_v55 = vstv %s3380_s4  ;;  %v726_v56 = vstv %s3385_s26  ;;  %v351_v53 = vadd.f32 %v3045_v61, %v3125_v5  ;;  %s3730_s26 = sld [smem:[#allocation2 + $0x27]] }
 0x216   :  { %v562_v39 = vadd.f32 %v560_v23, %v534_v41  ;;  %v750_v23 = vadd.f32 %v748_v14, %v744_v57  ;;  %v700_v14 = vmul.f32 %v698_v55, %v697_v26  ;;  %v728_v59 = vmul.f32 %v726_v56, %v725_v43  ;;  %s3785_s4 = sld [smem:[#allocation2 + $0x33]] }
 0x217   :  { %v379_v26 = vadd.f32 %v3047_v62, %v3155_v31  ;;  %v4480_v43 = vstv %s3103_s5  ;;  %v4481_v62 = vstv %s3121_s2  ;;  %s4508_s5 = smov 16   ;;  %s3900_s2 = sld [smem:[#allocation2 + $0x2e]] }
 0x218   :  { %v590_v18 = vadd.f32 %v588_v52, %v562_v39  ;;  %v327_v52 = vmul.f32 %v3401_v10, %v4477_v46  ;;  %v753_v57 = vmax.f32 %v750_v23, 0.0  ;;  %v754_v39 = vstv %s3392_s19  ;;  %s3809_s19 = sld [smem:[#allocation2 + $0x29]] }
 0x219   :  { %v4479_v23 = vstv %s3092_s23  ;;  %v439_v31 = vmul.f32 %v3401_v10, %v4481_v62  ;;  %s3846_s23 = sld [smem:[#allocation2 + $0x35]] }
 0x21a   :  { %v618_v3 = vadd.f32 %v616_v24, %v590_v18  ;;  %v4478_v24 = vstv %s3082_s20  ;;  %v329_v18 = vadd.f32 %v327_v52, %v323_v25  ;;  %v756_v61 = vmul.f32 %v754_v39, %v753_v57  ;;  %s3753_s20 = sld [smem:[#allocation2 + $0x26]] }
 0x21b   :  { %v355_v21 = vmul.f32 %v3401_v10, %v4478_v24  ;;  %v411_v25 = vmul.f32 %v3401_v10, %v4480_v43  ;;  %v435_v57 = vadd.f32 %v3052_v0, %v3200_v38  ;;  %v4483_v24 = vstv %s3136_s7  ;;  %s3919_s7 = sld [smem:[#allocation2 + $0x39]] }
 0x21c   :  { %v646_v41 = vadd.f32 %v644_v9, %v618_v3  ;;  %v3423_v9 = vunpack.c.l.bf16 %v3150_v27  ;;  %v383_v3 = vmul.f32 %v3401_v10, %v4479_v23  ;;  %v332_v46 = vmax.f32 %v329_v18, 0.0 }
 0x21d   :  { %v357_v5 = vadd.f32 %v355_v21, %v351_v53  ;;  %v463_v53 = vadd.f32 %v3078_v28, %v3231_v7  ;;  %v467_v21 = vmul.f32 %v3401_v10, %v4483_v24  ;;  %v4484_v0 = vstv %s3094_s24  ;;  %s3855_s24 = sld [smem:[#allocation2 + $0x2b]] }
 0x21e   :  { %v674_v42 = vadd.f32 %v672_v22, %v646_v41  ;;  %v407_v41 = vadd.f32 %v3049_v63, %v3177_v44  ;;  %v299_v52 = vadd.f32 %v3423_v9, %v3194_v37  ;;  %v335_v18 = vmul.f32 %v4484_v0, %v332_v46 }
 0x21f   :  { %v360_v37 = vmax.f32 %v357_v5, 0.0  ;;  %v491_v7 = vadd.f32 %v3056_v1, %v3227_v51  ;;  %v4486_v43 = vstv %s3192_s11  ;;  %v519_v46 = vadd.f32 %v3059_v2, %v3272_v20  ;;  %s3954_s11 = sld [smem:[#allocation2 + $0x3c]] }
 0x220   :  { %v702_v60 = vadd.f32 %v700_v14, %v674_v42  ;;  %v385_v14 = vadd.f32 %v383_v3, %v379_v26  ;;  %v4482_v42 = vstv %s3127_s30  ;;  %v4485_v26 = vstv %s3101_s27  ;;  %s3859_s27 = sld [smem:[#allocation2 + $0x37]] }
 0x221   :  { %v305_v44 = vmul.f32 %v3401_v10, %v4482_v42  ;;  %v495_v23 = vmul.f32 %v3401_v10, %v4485_v26  ;;  %v523_v5 = vmul.f32 %v3401_v10, %v4486_v43  ;;  %v4489_v51 = vstv %s3107_s28  ;;  %s3876_s28 = sld [smem:[#allocation2 + $0x36]] }
 0x222   :  { %v730_v22 = vadd.f32 %v728_v59, %v702_v60  ;;  %v413_v59 = vadd.f32 %v411_v25, %v407_v41  ;;  %v388_v3 = vmax.f32 %v385_v14, 0.0  ;;  %v4487_v41 = vstv %s3088_s22  ;;  %s3813_s22 = sld [smem:[#allocation2 + $0x2a]] }
 0x223   :  { %v363_v25 = vmul.f32 %v4487_v41, %v360_v37  ;;  %v4488_v14 = vstv %s3203_s12  ;;  %v4490_v24 = vstv %s3209_s13  ;;  %v4491_v2 = vstv %s3164_s10  ;;  %s4520_s12 = smov 112   ;;  %s3705_s13 = sld [smem:[#allocation2 + $0x20]] }
 0x224   :  { %v3437_v27 = vadd.f32 %v756_v61, %v730_v22  ;;  %v441_v22 = vadd.f32 %v439_v31, %v435_v57  ;;  %v469_v61 = vadd.f32 %v467_v21, %v463_v53  ;;  %v416_v62 = vmax.f32 %v413_v59, 0.0  ;;  %s3912_s30 = sld [smem:[#allocation2 + $0x38]] }
 0x225   :  { %v547_v31 = vadd.f32 %v3084_v32, %v3219_v29  ;;  %v551_v1 = vmul.f32 %v3401_v10, %v4488_v14  ;;  %v391_v57 = vmul.f32 %v4489_v51, %v388_v3  ;;  %v579_v21 = vmul.f32 %v3401_v10, %v4490_v24  ;;  %s3922_s10 = sld [smem:[#allocation2 + $0x3a]] }
 0x226   :  { %v762_v63 = vsel %vm265_vm1, %v3437_v27, -inf  ;;  %v444_v42 = vmax.f32 %v441_v22, 0.0  ;;  %v472_v53 = vmax.f32 %v469_v61, 0.0  ;;  %v419_v20 = vmul.f32 %v4491_v2, %v416_v62  ;;  %v4494_v22 = vld [vmem:[#allocation12_spill] sm:$0xff] }
 0x227   :  { %v295_v60 = vpop.xlane.xlu1 %294  ;;  %763 = vmax.xlane.f32.xlu0 %v762_v63  ;;  %v575_v32 = vadd.f32 %v3080_v30, %v3223_v45  ;;  %v553_v37 = vadd.f32 %v551_v1, %v547_v31  ;;  %v4492_v59 = vstv %s3256_s16  ;;  %v4493_v0 = vstv %s3240_s14  ;;  %v4501_v31 = vld [vmem:[#allocation15_spill] sm:$0xff]  ;;  %s3709_s14 = sld [smem:[#allocation2 + $0x30]] }
 0x228   :  { %v301_v38 = vadd.f32 %v299_v52, %v295_v60  ;;  %v525_v60 = vadd.f32 %v523_v5, %v519_v46  ;;  %v4496_v45 = vstv %s3180_s1  ;;  %v4499_v62 = vstv %s3268_s0  ;;  %s3711_s16 = sld [smem:[#allocation2 + $0x21]] }
 0x229   :  { %v475_v61 = vmul.f32 %v4496_v45, %v472_v53  ;;  %v581_v5 = vadd.f32 %v579_v21, %v575_v32  ;;  %v663_v46 = vmul.f32 %v3401_v10, %v4499_v62  ;;  %v4502_v51 = vstv %s3290_s25  ;;  %s3715_s0 = sld [smem:[#allocation2 + $0x22]] }
 0x22a   :  { %v307_v28 = vadd.f32 %v305_v44, %v301_v38  ;;  %v497_v44 = vadd.f32 %v495_v23, %v491_v7  ;;  %v607_v38 = vmul.f32 %v3401_v10, %v4492_v59  ;;  %v603_v23 = vadd.f32 %v3090_v35, %v3297_v4  ;;  %s3721_s25 = sld [smem:[#allocation2 + $0x23]] }
 0x22b   :  { %v631_v7 = vadd.f32 %v4494_v22, %v3250_v49  ;;  %v528_v43 = vmax.f32 %v525_v60, 0.0  ;;  %v4500_v35 = vstv %s3112_s29  ;;  %v659_v49 = vadd.f32 %v4501_v31, %v3254_v36  ;;  %v737_v21 = vpop.permute.xlu1 %736  ;;  %s3883_s29 = sld [smem:[#allocation2 + $0x2d]] }
 0x22c   :  { %v337_v52 = vadd.f32 %v335_v18, %v307_v28  ;;  %v447_v18 = vmul.f32 %v4493_v0, %v444_v42  ;;  %v500_v26 = vmax.f32 %v497_v44, 0.0  ;;  %v4495_v28 = vstv %s3263_s17  ;;  %s3713_s17 = sld [smem:[#allocation2 + $0x24]] }
 0x22d   :  { %v635_v30 = vmul.f32 %v3401_v10, %v4495_v28  ;;  %v531_v42 = vmul.f32 %v530_v58, %v528_v43  ;;  %v584_v44 = vmax.f32 %v581_v5, 0.0  ;;  %v719_v36 = vmul.f32 %v3401_v10, %v718_v17  ;;  %s3943_s1 = sld [smem:[#allocation2 + $0x3b]] }
 0x22e   :  { %v365_v63 = vadd.f32 %v363_v25, %v337_v52  ;;  %v556_v25 = vmax.f32 %v553_v37, 0.0  ;;  %v503_v4 = vmul.f32 %v4500_v35, %v500_v26  ;;  %v609_v52 = vadd.f32 %v607_v38, %v603_v23 }
 0x22f   :  { %v637_v1 = vadd.f32 %v635_v30, %v631_v7  ;;  %v715_v60 = vadd.f32 %v3341_v33, %v3339_v13  ;;  %v743_v37 = vadd.f32 %v737_v21, %v3376_v8 }
 0x230   :  { %v393_v29 = vadd.f32 %v391_v57, %v365_v63  ;;  %v691_v57 = vmul.f32 %v3401_v10, %v4502_v51  ;;  %v687_v63 = vadd.f32 %v3286_v48, %v3301_v6  ;;  %v559_v24 = vmul.f32 %v558_v47, %v556_v25 }
 0x231   :  { %v612_v2 = vmax.f32 %v609_v52, 0.0  ;;  %v640_v32 = vmax.f32 %v637_v1, 0.0  ;;  %v4503_v48 = vstv %s3281_s18  ;;  %v721_v0 = vadd.f32 %v719_v36, %v715_v60  ;;  %v4507_v36 = vld [vmem:[#allocation10_spill] sm:$0xff]  ;;  %s3719_s18 = sld [smem:[#allocation2 + $0x31]] }
 0x232   :  { %v421_v3 = vadd.f32 %v419_v20, %v393_v29  ;;  %v665_v20 = vadd.f32 %v663_v46, %v659_v49  ;;  %v747_v29 = vmul.f32 %v3401_v10, %v746_v34  ;;  %v587_v6 = vmul.f32 %v4503_v48, %v584_v44  ;;  %v3552_v44 = vld [vmem:[%s4504_s6 + $0x58] sm:$0xf] }
 0x233   :  { %v693_v47 = vadd.f32 %v691_v57, %v687_v63  ;;  %v615_v59 = vmul.f32 %v614_v40, %v612_v2  ;;  %v643_v33 = vmul.f32 %v642_v54, %v640_v32  ;;  %v873_v57 = vld [vmem:[%s4504_s6 + $0x40] sm:$0xff]  ;;  %4505 = vst [vmem:[#allocation12_spill] sm:$0xff] %v3552_v44  ;;  %v874_v63 = vld [vmem:[%s4504_s6 + $0x48] sm:$0xff]  ;;  %v1089_v21 = vrot.slane %v3552_v44, %v4507_v36 }
 0x234   :  { %v449_v41 = vadd.f32 %v447_v18, %v421_v3  ;;  %v668_v38 = vmax.f32 %v665_v20, 0.0  ;;  %v749_v26 = vadd.f32 %v747_v29, %v743_v37  ;;  %v724_v3 = vmax.f32 %v721_v0, 0.0  ;;  %2603 = vmatprep.subr.mxu0 %v873_v57  ;;  %2614 = vmatprep.mubr.msk.f32.mxu1 %vm265_vm1, %v874_v63  ;;  %v877_v2 = vld [vmem:[%s4504_s6 + $0x60] sm:$0xff]  ;;  %v878_v20 = vld [vmem:[%s4504_s6 + $0x68] sm:$0xff]  ;;  %v875_v0 = vld [vmem:[%s4504_s6 + $0x50] sm:$0xff] }
 0x235   :  { %v696_v18 = vmax.f32 %v693_v47, 0.0  ;;  %v4509_v60 = vmov 1   ;;  %v4511_v32 = vmov 17   ;;  %v2801_v29 = vld [vmem:[%s4504_s6 + $0x20] sm:$0xf] }
 0x236   :  { %v477_v14 = vadd.f32 %v475_v61, %v449_v41  ;;  %v671_v34 = vmul.f32 %v670_v15, %v668_v38  ;;  %v752_v8 = vmax.f32 %v749_v26, 0.0  ;;  %v727_v30 = vmul.f32 %v726_v56, %v724_v3 }
 0x237   :  { %v699_v7 = vmul.f32 %v698_v55, %v696_v18  ;;  %v788_v48 = vrot.slane %v2801_v29, %v3131_v11  ;;  %v4528_v29 = vmov 0  }
 0x238   :  { %v505_v53 = vadd.f32 %v503_v4, %v477_v14  ;;  %v755_v61 = vmul.f32 %v754_v39, %v752_v8  ;;  %v4514_v8 = vmov 20  }
 0x23a   :  { %v533_v58 = vadd.f32 %v531_v42, %v505_v53  ;;  %v872_v42 = vld [vmem:[%s4504_s6 + $0x38] sm:$0xff]  ;;  %v4506_v53 = vld [vmem:[#allocation9_spill] sm:$0xff]  ;;  %s3969_s6 = sld [smem:[#allocation2 + $0x3e]] }
 0x23c   :  { %v561_v17 = vadd.f32 %v559_v24, %v533_v58  ;;  %v969_v24 = vrot.slane %v3552_v44, %v4506_v53  ;;  %v4510_v58 = vmov 16  }
 0x23e   :  { %v589_v13 = vadd.f32 %v587_v6, %v561_v17 }
 0x240   :  { %v617_v23 = vadd.f32 %v615_v59, %v589_v13  ;;  %v4512_v13 = vld [vmem:[#allocation8_spill] sm:$0xff] }
 0x242   :  { %v645_v22 = vadd.f32 %v643_v33, %v617_v23  ;;  %v963_v33 = vrot.slane %v3552_v44, %v4512_v13  ;;  %v4448_v44 = vstv %s3813_s22 }
 0x244   :  { %v673_v28 = vadd.f32 %v671_v34, %v645_v22 }
 0x246   :  { %v701_v40 = vadd.f32 %v699_v7, %v673_v28  ;;  %v4513_v7 = vmov 18   ;;  %v4515_v28 = vmov 19  }
 0x248   :  { %v729_v45 = vadd.f32 %v727_v30, %v701_v40  ;;  %v4516_v30 = vmov 23  }
 0x24a   :  { %v757_v43 = vadd.f32 %v755_v61, %v729_v45  ;;  %v4517_v45 = vmov 21   ;;  %v4518_v61 = vmov 22  }
 0x24c   :  { %v759_v54 = vsel %vm265_vm1, %v757_v43, -inf }
 0x24d   :  { %760 = vmax.xlane.f32.xlu1 %v759_v54  ;;  %v4519_v54 = vmov 25  }
 0x2b0   :  { %v764_v5 = vpop.xlane.xlu0 %763 }
 0x2b1   :  { %v766_v41 = vsub.f32 %v3437_v27, %v764_v5 }
 0x2b3   :  { %v769_v15 = vmul.f32 1.442695, %v766_v41  ;;  %v4521_v41 = vmov 26  }
 0x2b5   :  { %2773 = vpow2.f32 %v769_v15  ;;  %v4522_v15 = vmov 28  }
 0x2c2   :  { %v2774_v25 = vpop.eup %2773 }
 0x2c3   :  { %v774_v55 = vsel %vm265_vm1, %v2774_v25, 0.0 }
 0x2c4   :  { %775 = vadd.xlane.f32.xlu0 %v774_v55 }
 0x2d6   :  { %v761_v62 = vpop.xlane.xlu1 %760 }
 0x2d7   :  { %v765_v46 = vsub.f32 %v757_v43, %v761_v62  ;;  %v4524_v62 = vmov 24  }
 0x2d9   :  { %v767_v56 = vmul.f32 1.442695, %v765_v46  ;;  %v4525_v46 = vmov 27  }
 0x2da   :  { %1091 = vrot.lane.b32.xlu0 %v1089_v21, %s4508_s5 }
 0x2db   :  { %2775 = vpow2.f32 %v767_v56  ;;  %v4526_v56 = vmov 30  }
 0x2de   :  { %978 = vperm.xlu0 %2724, %v877_v2  }
 0x2e2   :  { %2727 = vset.pattern.permute.xlu0 %v4509_v60 }
 0x2e3   :  { %1072 = vperm.xlu0 %2727, %v878_v20  }
 0x2e7   :  { %2728 = vset.pattern.permute.xlu0 %v4510_v58 }
 0x2e8   :  { %v2776_v35 = vpop.eup %2775 }
 0x2e9   :  { %v771_v39 = vsel %vm265_vm1, %v2776_v35, 0.0 }
 0x2ea   :  { %772 = vadd.xlane.f32.xlu1 %v771_v39 }
 0x2fb   :  { %971 = vrot.lane.b32.xlu1 %v969_v24, %s4508_s5  ;;  %s3869_s5 = sld [smem:[#allocation2 + $0x2c]] }
 0x2ff   :  { %983 = vperm.xlu1 %2725, %v878_v20  }
 0x303   :  { %2726 = vset.pattern.permute.xlu1 %v4509_v60 }
 0x304   :  { %1068 = vperm.xlu1 %2726, %v877_v2  }
 0x308   :  { %2729 = vset.pattern.permute.xlu1 %v4511_v32 }
 0x34d   :  { %v776_v4 = vpop.xlane.xlu0 %775 }
 0x34e   :  { %v778_v52 = vmax.f32 %v776_v4, 1e-20 }
 0x350   :  { %2777 = vrcp.f32 %v778_v52 }
 0x351   :  { %v1092_v43 = vpop.permute.xlu0 %1091 }
 0x35d   :  { %v2778_v27 = vpop.eup %2777 }
 0x35e   :  { %v784_v51 = vmul.f32 %v2778_v27, %v2774_v25  ;;  %v4523_v25 = vmov 29  }
 0x373   :  { %v773_v31 = vpop.xlane.xlu1 %772 }
 0x374   :  { %v777_v49 = vmax.f32 %v773_v31, 1e-20 }
 0x376   :  { %2779 = vrcp.f32 %v777_v49 }
 0x377   :  { %v972_v18 = vpop.permute.xlu1 %971 }
 0x37b   :  { %v984_v39 = vpop.permute.xlu1 %983 }
 0x37f   :  { %v1069_v4 = vpop.permute.xlu1 %1068 }
 0x383   :  { %v2780_v14 = vpop.eup %2779 }
 0x384   :  { %v783_v1 = vmul.f32 %v2780_v14, %v2776_v35  ;;  %v4527_v35 = vmov 31  }
 0x386   :  { %2600 = vmatprep.mubr.msk.f32.mxu0 %vm265_vm1, %v783_v1 }
 0x387   :  { %2601 = vmatmul.mubr.msk.f32.vlgmr.msra.gmra.mxu0 %vm265_vm1, %v784_v51 }
 0x388   :  { %2604 = vmatpush3.msra.mxu0 %v873_v57 }
 0x389   :  { %2605 = vmatprep.subr.mxu0 %v872_v42 }
 0x38a   :  { %2606 = vmatpush3.msra.mxu0 %v872_v42 }
 0x447   :  { %v2602_v6 = vpop.f32.mrf.mxu0 }
 0x448   :  { %v867_v47 = vadd.f32 %v2602_v6, %v788_v48 }
 0x449   :  { %v861_v37 = vpop.f32.mrf.mxu0 }
 0x44a   :  { %v871_v17 = vmax.f32 %v867_v47, 0.0  ;;  %v862_v59 = vadd.f32 %v861_v37, %v788_v48  ;;  %v979_v48 = vpop.permute.xlu0 %978 }
 0x44c   :  { %v870_v38 = vmax.f32 %v862_v59, 0.0  ;;  %2610 = vmatprep.subr.msk.mxu1 %vm265_vm1, %v871_v17 }
 0x44d   :  { %2611 = vmatpush3.xpose.msk.msra.mxu1 %vm265_vm1, %v871_v17 }
 0x44e   :  { %2607 = vmatprep.mubr.msk.f32.mxu0 %vm265_vm1, %v870_v38  ;;  %2612 = vmatprep.subr.msk.mxu1 %vm265_vm1, %v870_v38  ;;  %v1073_v47 = vpop.permute.xlu0 %1072 }
 0x44f   :  { %2608 = vmatmul.mubr.msk.f32.vlgmr.msra.gmra.mxu0 %vm265_vm1, %v871_v17 }
 0x451   :  { %2613 = vmatpush3.xpose.msk.msra.mxu1 %vm265_vm1, %v870_v38 }
 0x454   :  { %2615 = vmatmul.mubr.msk.f32.vlgmr.msra.gmra.mxu1 %vm265_vm1, %v875_v0 }
 0x50f   :  { %v2609_v26 = vpop.f32.mrf.mxu0 }
 0x510   :  { %v965_v23 = vadd.f32 %v2609_v26, %v963_v33  ;;  %v3590_v34 = vadd.f32 %v2609_v26, %v972_v18 }
 0x511   :  { %v951_v3 = vpop.f32.mrf.mxu0 }
 0x512   :  { %v964_v22 = vadd.f32 %v963_v33, %v951_v3  ;;  %2617 = vmatprep.subr.mxu0 %v965_v23  ;;  %1159 = vperm.xlu1 %2729, %v3590_v34   ;;  %v3602_v40 = vadd.f32 %v972_v18, %v951_v3  ;;  %v1095_v5 = vmul.f32 %v1092_v43, %v3590_v34 }
 0x513   :  { %1131 = vperm.xlu0 %2728, %v3590_v34   ;;  %2618 = vmatpush3.msra.mxu0 %v965_v23 }
 0x514   :  { %2619 = vmatprep.subr.mxu0 %v964_v22  ;;  %v1094_v55 = vmul.f32 %v1092_v43, %v3602_v40  ;;  %v2616_v6 = vpop.f32.mrf.mxu1 }
 0x515   :  { %2620 = vmatpush3.msra.mxu0 %v964_v22  ;;  %v3685_v17 = vadd.f32 %v2616_v6, %v984_v39  ;;  %v4529_v6 = vld [vmem:[#allocation13_spill] sm:$0xff] }
 0x516   :  { %2730 = vset.pattern.permute.xlu1 %v4513_v7  ;;  %v1058_v37 = vpop.f32.mrf.mxu1 }
 0x517   :  { %2732 = vset.pattern.permute.xlu0 %v4514_v8  ;;  %1187 = vperm.xlu1 %2730, %v3590_v34   ;;  %v3687_v59 = vadd.f32 %v1058_v37, %v979_v48  ;;  %v1076_v0 = vmul.f32 %v1073_v47, %v3685_v17 }
 0x518   :  { %1243 = vperm.xlu0 %2732, %v3590_v34  }
 0x519   :  { %v1075_v33 = vmul.f32 %v1069_v4, %v3687_v59  ;;  %v1078_v26 = vsel %vm265_vm1, %v1076_v0, 0.0  ;;  %v4436_v4 = vstv %s3715_s0  ;;  %v3772_v47 = vrot.slane %v3687_v59, %v4529_v6 }
 0x51a   :  { %v1195_v0 = vmul.f32 %v3110_v50, %v4436_v4  ;;  %v4530_v4 = vld [vmem:[#allocation14_spill] sm:$0xff]  ;;  %v3836_v48 = vrot.slane %v3687_v59, %v3170_v16 }
 0x51b   :  { %2731 = vset.pattern.permute.xlu1 %v4515_v28  ;;  %v1077_v23 = vsel %vm265_vm1, %v1075_v33, 0.0 }
 0x51c   :  { %2735 = vset.pattern.permute.xlu0 %v4516_v30  ;;  %1215 = vperm.xlu1 %2731, %v3590_v34   ;;  %v1079_v3 = vadd.f32 %v1078_v26, %v1077_v23  ;;  %v3840_v23 = vrot.slane %v3687_v59, %v3134_v12 }
 0x51d   :  { %1327 = vperm.xlu0 %2735, %v3590_v34  }
 0x520   :  { %2733 = vset.pattern.permute.xlu1 %v4517_v45 }
 0x521   :  { %2742 = vset.pattern.permute.xlu0 %v4518_v61  ;;  %1271 = vperm.xlu1 %2733, %v3590_v34  }
 0x522   :  { %1295 = vperm.xlu0 %2742, %v3602_v40  }
 0x525   :  { %2734 = vset.pattern.permute.xlu1 %v4518_v61 }
 0x526   :  { %2745 = vset.pattern.permute.xlu0 %v4519_v54  ;;  %1299 = vperm.xlu1 %2734, %v3590_v34  }
 0x527   :  { %1379 = vperm.xlu0 %2745, %v3602_v40  }
 0x52a   :  { %1100 = vrot.lane.b32.xlu1 %v1095_v5, %s4520_s12  ;;  %v4438_v5 = vstv %s3705_s13 }
 0x52b   :  { %2748 = vset.pattern.permute.xlu0 %v4521_v41  ;;  %2736 = vset.pattern.permute.xlu1 %v4510_v58 }
 0x52c   :  { %1411 = vperm.xlu0 %2748, %v3590_v34  }
 0x52e   :  { %1126 = vperm.xlu1 %2736, %v3602_v40  }
 0x530   :  { %2750 = vset.pattern.permute.xlu0 %v4522_v15 }
 0x531   :  { %1463 = vperm.xlu0 %2750, %v3602_v40  }
 0x532   :  { %2737 = vset.pattern.permute.xlu1 %v4511_v32 }
 0x533   :  { %1155 = vperm.xlu1 %2737, %v3602_v40  }
 0x535   :  { %2753 = vset.pattern.permute.xlu0 %v4523_v25 }
 0x537   :  { %2738 = vset.pattern.permute.xlu1 %v4513_v7 }
 0x538   :  { %1183 = vperm.xlu1 %2738, %v3602_v40  }
 0x53c   :  { %2739 = vset.pattern.permute.xlu1 %v4515_v28 }
 0x53d   :  { %1211 = vperm.xlu1 %2739, %v3602_v40  }
 0x541   :  { %2740 = vset.pattern.permute.xlu1 %v4514_v8  ;;  %v1080_v8 = vrot.slane %v1079_v3, 4 }
 0x542   :  { %1239 = vperm.xlu1 %2740, %v3602_v40  }
 0x546   :  { %2741 = vset.pattern.permute.xlu1 %v4517_v45 }
 0x547   :  { %1267 = vperm.xlu1 %2741, %v3602_v40  }
 0x54b   :  { %2743 = vset.pattern.permute.xlu1 %v4516_v30  ;;  %v1081_v30 = vadd.f32 %v1080_v8, %v1079_v3  ;;  %v3792_v3 = vrot.slane %v3687_v59, %v3143_v19  ;;  %v3796_v8 = vrot.slane %v3685_v17, %v4506_v53 }
 0x54c   :  { %1323 = vperm.xlu1 %2743, %v3602_v40  }
 0x54d   :  { %v1082_v45 = vrot.slane %v1081_v30, 2 }
 0x550   :  { %1098 = vrot.lane.b32.xlu1 %v1094_v55, %s4520_s12  ;;  %v4437_v55 = vstv %s3711_s16  ;;  %s3965_s12 = sld [smem:[#allocation2 + $0x3d]] }
 0x551   :  { %2744 = vset.pattern.permute.xlu1 %v4524_v62 }
 0x554   :  { %1351 = vperm.xlu1 %2744, %v3602_v40  }
 0x558   :  { %1355 = vperm.xlu1 %2744, %v3590_v34  }
 0x55c   :  { %2746 = vset.pattern.permute.xlu1 %v4519_v54  ;;  %v3727_v54 = vrot.slane %v3687_v59, %v4512_v13 }
 0x55d   :  { %1383 = vperm.xlu1 %2746, %v3590_v34  }
 0x561   :  { %2747 = vset.pattern.permute.xlu1 %v4521_v41  ;;  %v1083_v41 = vadd.f32 %v1082_v45, %v1081_v30  ;;  %v4439_v45 = vstv %s3732_s8 }
 0x562   :  { %1407 = vperm.xlu1 %2747, %v3602_v40  }
 0x563   :  { %v1084_v39 = vrot.slane %v1083_v41, 1 }
 0x565   :  { %v3787_v26 = vadd.f32 %v1084_v39, %v1083_v41 }
 0x566   :  { %2749 = vset.pattern.permute.xlu1 %v4525_v46 }
 0x567   :  { %1435 = vperm.xlu1 %2749, %v3602_v40  }
 0x56b   :  { %1439 = vperm.xlu1 %2749, %v3590_v34  }
 0x56f   :  { %2751 = vset.pattern.permute.xlu1 %v4522_v15  ;;  %v3736_v15 = vrot.slane %v3687_v59, %v4506_v53 }
 0x570   :  { %1467 = vperm.xlu1 %2751, %v3590_v34  }
 0x574   :  { %2752 = vset.pattern.permute.xlu1 %v4523_v25  ;;  %v1139_v25 = vmul.f32 %v3110_v50, %v4438_v5  ;;  %v1117_v5 = vmul.f32 %v3110_v50, %v4439_v45 }
 0x575   :  { %1491 = vperm.xlu1 %2752, %v3602_v40  }
 0x579   :  { %2754 = vset.pattern.permute.xlu1 %v4526_v56  ;;  %v4434_v56 = vstv %s3713_s17 }
 0x57a   :  { %1519 = vperm.xlu1 %2754, %v3602_v40   ;;  %v1251_v37 = vmul.f32 %v3110_v50, %v4434_v56  ;;  %v3817_v56 = vrot.slane %v3685_v17, %v3131_v11 }
 0x57e   :  { %1523 = vperm.xlu1 %2754, %v3590_v34  }
 0x582   :  { %2756 = vset.pattern.permute.xlu1 %v4527_v35 }
 0x58d   :  { %v3653_v52 = vpop.permute.xlu1 %1159 }
 0x58e   :  { %v1132_v38 = vpop.permute.xlu0 %1131 }
 0x58f   :  { %v1135_v46 = vadd.f32 %v1132_v38, %v3727_v54 }
 0x591   :  { %v1141_v38 = vadd.f32 %v1139_v25, %v1135_v46  ;;  %v4445_v46 = vstv %s3738_s9 }
 0x592   :  { %v3655_v31 = vpop.permute.xlu1 %1187 }
 0x593   :  { %v3693_v18 = vpop.permute.xlu0 %1243 }
 0x594   :  { %v1247_v39 = vadd.f32 %v3693_v18, %v3772_v47 }
 0x597   :  { %v3657_v49 = vpop.permute.xlu1 %1215 }
 0x598   :  { %v3699_v22 = vpop.permute.xlu0 %1327 }
 0x59c   :  { %v3659_v27 = vpop.permute.xlu1 %1271 }
 0x59d   :  { %v3703_v28 = vpop.permute.xlu0 %1295  ;;  %v1275_v45 = vadd.f32 %v3659_v27, %v3792_v3 }
 0x5a1   :  { %v3661_v14 = vpop.permute.xlu1 %1299 }
 0x5a2   :  { %v3717_v61 = vpop.permute.xlu0 %1379  ;;  %v1303_v27 = vadd.f32 %v3661_v14, %v3840_v23 }
 0x5a5   :  { %v1101_v1 = vpop.permute.xlu1 %1100 }
 0x5a6   :  { %v1107_v51 = vsel %vm265_vm1, %v1101_v1, 0.0 }
 0x5a7   :  { %1108 = vadd.xlane.f32.xlu0 %v1107_v51  ;;  %v3744_v62 = vpop.permute.xlu0 %1411  ;;  %v4446_v51 = vstv %s3753_s20 }
 0x5a9   :  { %v3664_v57 = vpop.permute.xlu1 %1126 }
 0x5ac   :  { %v3798_v30 = vpop.permute.xlu0 %1463 }
 0x5ae   :  { %v3666_v42 = vpop.permute.xlu1 %1155 }
 0x5b3   :  { %v3668_v63 = vpop.permute.xlu1 %1183 }
 0x5b8   :  { %v3670_v24 = vpop.permute.xlu1 %1211 }
 0x5bd   :  { %1495 = vperm.xlu0 %2753, %v3590_v34   ;;  %v3673_v21 = vpop.permute.xlu1 %1239 }
 0x5c1   :  { %2755 = vset.pattern.permute.xlu0 %v4527_v35  ;;  %v3750_v35 = vrot.slane %v3687_v59, %v3131_v11  ;;  %v1307_v11 = vmul.f32 %v3110_v50, %v4446_v51 }
 0x5c2   :  { %1547 = vperm.xlu0 %2755, %v3602_v40   ;;  %v3677_v2 = vpop.permute.xlu1 %1267 }
 0x5c3   :  { %v1191_v33 = vadd.f32 %v3655_v31, %v3750_v35 }
 0x5c5   :  { %v1197_v18 = vadd.f32 %v1195_v0, %v1191_v33 }
 0x5c6   :  { %2758 = vset.pattern.permute.xlu0 %v4509_v60 }
 0x5c7   :  { %v3680_v20 = vpop.permute.xlu1 %1323 }
 0x5cb   :  { %v1099_v58 = vpop.permute.xlu1 %1098 }
 0x5cc   :  { %v1104_v32 = vsel %vm265_vm1, %v1099_v58, 0.0  ;;  %v1167_v58 = vmul.f32 %v3110_v50, %v4437_v55  ;;  %v1111_v55 = vadd.f32 %v4530_v4, %v3787_v26 }
 0x5cd   :  { %1105 = vadd.xlane.f32.xlu1 %v1104_v32  ;;  %v1163_v32 = vadd.f32 %v3653_v52, %v3736_v15  ;;  %v4435_v52 = vstv %s3721_s25 }
 0x5ce   :  { %v1223_v41 = vmul.f32 %v3110_v50, %v4435_v52  ;;  %v1144_v52 = vmax.f32 %v1141_v38, 0.0  ;;  %v1279_v38 = vmul.f32 %v3110_v50, %v4445_v46  ;;  %v4531_v46 = vstv %s3709_s14 }
 0x5cf   :  { %v3689_v60 = vpop.permute.xlu1 %1351  ;;  %v1169_v31 = vadd.f32 %v1167_v58, %v1163_v32  ;;  %v3821_v58 = vrot.slane %v3685_v17, %v4529_v6 }
 0x5d0   :  { %v1281_v14 = vadd.f32 %v1279_v38, %v1275_v45 }
 0x5d1   :  { %v1172_v33 = vmax.f32 %v1169_v31, 0.0  ;;  %v1147_v31 = vmul.f32 %v4531_v46, %v1144_v52  ;;  %v4450_v52 = vstv %s3800_s15 }
 0x5de   :  { %1551 = vperm.xlu1 %2756, %v3590_v34   ;;  %v3697_v34 = vpop.permute.xlu1 %1355 }
 0x5e2   :  { %2757 = vset.pattern.permute.xlu1 %v4528_v29  ;;  %v3701_v7 = vpop.permute.xlu1 %1383  ;;  %v3767_v29 = vrot.slane %v3687_v59, %v4507_v36  ;;  %v1253_v59 = vadd.f32 %v1251_v37, %v1247_v39  ;;  %v1331_v39 = vadd.f32 %v3699_v22, %v3836_v48  ;;  %v1363_v22 = vmul.f32 %v3110_v50, %v4450_v52 }
 0x5e4   :  { %v1219_v25 = vadd.f32 %v3657_v49, %v3767_v29  ;;  %v3825_v49 = vrot.slane %v3685_v17, %v4512_v13 }
 0x5e6   :  { %v3707_v40 = vpop.permute.xlu1 %1407  ;;  %v1225_v4 = vadd.f32 %v1223_v41, %v1219_v25  ;;  %v1200_v41 = vmax.f32 %v1197_v18, 0.0  ;;  %v4532_v25 = vstv %s3730_s26  ;;  %v4534_v18 = vstv %s3719_s18 }
 0x5e7   :  { %v1335_v37 = vmul.f32 %v3110_v50, %v4532_v25  ;;  %v1175_v51 = vmul.f32 %v4534_v18, %v1172_v33  ;;  %v4449_v25 = vstv %s3809_s19  ;;  %v4537_v18 = vstv %s3763_s21 }
 0x5e8   :  { %v1228_v13 = vmax.f32 %v1225_v4, 0.0  ;;  %v1359_v4 = vadd.f32 %v3697_v34, %v3825_v49  ;;  %v1391_v33 = vmul.f32 %v3110_v50, %v4449_v25  ;;  %v1284_v34 = vmax.f32 %v1281_v14, 0.0 }
 0x5e9   :  { %v1337_v38 = vadd.f32 %v1335_v37, %v1331_v39  ;;  %v1419_v37 = vmul.f32 %v3110_v50, %v4448_v44  ;;  %v1415_v39 = vadd.f32 %v3744_v62, %v3817_v56  ;;  %v4453_v62 = vstv %s3869_s5 }
 0x5ea   :  { %v3723_v43 = vpop.permute.xlu1 %1435 }
 0x5ee   :  { %v3755_v1 = vpop.permute.xlu1 %1439 }
 0x5f2   :  { %v3827_v32 = vpop.permute.xlu1 %1467 }
 0x5f6   :  { %v3872_v46 = vpop.permute.xlu1 %1491 }
 0x5f7   :  { %4533 = vst [vmem:[#allocation15_spill] sm:$0xff] %v3872_v46  ;;  %v1309_v46 = vadd.f32 %v1307_v11, %v1303_v27  ;;  %v4536_v11 = vstv %s3785_s4 }
 0x630   :  { %v1109_v0 = vpop.xlane.xlu0 %1108 }
 0x631   :  { %v1113_v6 = vadd.f32 %v1111_v55, %v1109_v0  ;;  %v4535_v0 = vstv %s3777_s3 }
 0x632   :  { %v1203_v53 = vmul.f32 %v4535_v0, %v1200_v41  ;;  %v1231_v41 = vmul.f32 %v4536_v11, %v1228_v13  ;;  %v4451_v0 = vstv %s3855_s24  ;;  %v3915_v13 = vpop.permute.xlu1 %1519  ;;  %v1340_v11 = vmax.f32 %v1337_v38, 0.0 }
 0x633   :  { %v1119_v55 = vadd.f32 %v1117_v5, %v1113_v6  ;;  %v1256_v6 = vmax.f32 %v1253_v59, 0.0  ;;  %v3894_v59 = vrot.slane %v3685_v17, %v4507_v36  ;;  %v1447_v44 = vmul.f32 %v3110_v50, %v4451_v0 }
 0x634   :  { %v1475_v38 = vmul.f32 %v3110_v50, %v4453_v62 }
 0x635   :  { %v1149_v5 = vadd.f32 %v1147_v31, %v1119_v55  ;;  %v3898_v31 = vrot.slane %v3685_v17, %v3143_v19  ;;  %v1285_v55 = vstv %s3846_s23  ;;  %v1259_v14 = vmul.f32 %v4537_v18, %v1256_v6  ;;  %s4198_s23 = sld [smem:[#allocation2 + $0x43]] }
 0x636   :  { %v1287_v25 = vmul.f32 %v1285_v55, %v1284_v34  ;;  %v1443_v18 = vadd.f32 %v3755_v1, %v3894_v59 }
 0x637   :  { %v1177_v45 = vadd.f32 %v1175_v51, %v1149_v5  ;;  %v1387_v51 = vadd.f32 %v3701_v7, %v3796_v8  ;;  %v1365_v7 = vadd.f32 %v1363_v22, %v1359_v4  ;;  %v1313_v22 = vstv %s3876_s28  ;;  %s4211_s28 = sld [smem:[#allocation2 + $0x48]] }
 0x638   :  { %v1421_v4 = vadd.f32 %v1419_v37, %v1415_v39  ;;  %v1529_v37 = vstv %s3900_s2  ;;  %v1524_v39 = vpop.permute.xlu1 %1523  ;;  %s4224_s2 = sld [smem:[#allocation2 + $0x4a]] }
 0x639   :  { %v1205_v27 = vadd.f32 %v1203_v53, %v1177_v45  ;;  %v1312_v53 = vmax.f32 %v1309_v46, 0.0  ;;  %v4452_v45 = vstv %s3859_s27  ;;  %v1393_v6 = vadd.f32 %v1391_v33, %v1387_v51 }
 0x63a   :  { %v1368_v0 = vmax.f32 %v1365_v7, 0.0  ;;  %v1471_v33 = vadd.f32 %v3827_v32, %v3821_v58  ;;  %v1343_v1 = vmul.f32 %v4452_v45, %v1340_v11  ;;  %v3947_v51 = vrot.slane %v3685_v17, %v3134_v12 }
 0x63b   :  { %v1233_v5 = vadd.f32 %v1231_v41, %v1205_v27  ;;  %v4454_v41 = vstv %s3883_s29  ;;  %v1496_v27 = vpop.permute.xlu0 %1495  ;;  %v1315_v52 = vmul.f32 %v1313_v22, %v1312_v53  ;;  %v1396_v53 = vmax.f32 %v1393_v6, 0.0 }
 0x63c   :  { %v1449_v32 = vadd.f32 %v1447_v44, %v1443_v18  ;;  %v4457_v11 = vstv %s3912_s30  ;;  %v1477_v62 = vadd.f32 %v1475_v38, %v1471_v33  ;;  %v4456_v44 = vstv %s3919_s7 }
 0x63d   :  { %v1261_v46 = vadd.f32 %v1259_v14, %v1233_v5  ;;  %v1503_v14 = vmul.f32 %v3110_v50, %v4454_v41  ;;  %v1424_v5 = vmax.f32 %v1421_v4, 0.0  ;;  %v1371_v45 = vmul.f32 %v4457_v11, %v1368_v0 }
 0x63e   :  { %v1527_v41 = vadd.f32 %v1524_v39, %v3947_v51  ;;  %v1399_v18 = vmul.f32 %v4456_v44, %v1396_v53  ;;  %v1452_v4 = vmax.f32 %v1449_v32, 0.0  ;;  %v1480_v38 = vmax.f32 %v1477_v62, 0.0 }
 0x63f   :  { %v1289_v34 = vadd.f32 %v1287_v25, %v1261_v46  ;;  %v1499_v25 = vadd.f32 %v1496_v27, %v3898_v31  ;;  %v1531_v46 = vmul.f32 %v3110_v50, %v1529_v37  ;;  %v1453_v39 = vstv %s3943_s1  ;;  %s4267_s1 = sld [smem:[#allocation2 + $0x4d]] }
 0x640   :  { %v1481_v44 = vstv %s3954_s11  ;;  %v4538_v11 = vstv %s3705_s13  ;;  %s3995_s13 = sld [smem:[#allocation2 + $0x2f]] }
 0x641   :  { %v1317_v7 = vadd.f32 %v1315_v52, %v1289_v34  ;;  %v1425_v52 = vstv %s3922_s10  ;;  %v1505_v27 = vadd.f32 %v1503_v14, %v1499_v25  ;;  %v1533_v33 = vadd.f32 %v1531_v46, %v1527_v41  ;;  %s4262_s10 = sld [smem:[#allocation2 + $0x4c]] }
 0x642   :  { %v1427_v0 = vmul.f32 %v1425_v52, %v1424_v5  ;;  %v1138_v62 = vmul.f32 %v3401_v10, %v4538_v11  ;;  %v1134_v41 = vadd.f32 %v3664_v57, %v3727_v54  ;;  %v4540_v57 = vstv %s3715_s0  ;;  %s4274_s11 = sld [smem:[#allocation2 + $0x4e]] }
 0x643   :  { %v1345_v6 = vadd.f32 %v1343_v1, %v1317_v7  ;;  %v1455_v7 = vmul.f32 %v1453_v39, %v1452_v4  ;;  %v1508_v53 = vmax.f32 %v1505_v27, 0.0  ;;  %v1536_v14 = vmax.f32 %v1533_v33, 0.0 }
 0x644   :  { %v1162_v27 = vadd.f32 %v3666_v42, %v3736_v15  ;;  %v1140_v11 = vadd.f32 %v1138_v62, %v1134_v41  ;;  %v1194_v54 = vmul.f32 %v3401_v10, %v4540_v57  ;;  %v1190_v33 = vadd.f32 %v3668_v63, %v3750_v35 }
 0x645   :  { %v1373_v34 = vadd.f32 %v1371_v45, %v1345_v6  ;;  %v1483_v45 = vmul.f32 %v1481_v44, %v1480_v38  ;;  %v1509_v6 = vstv %s3965_s12  ;;  %v1218_v15 = vadd.f32 %v3670_v24, %v3767_v29  ;;  %s2530_s12 = sld [smem:[#allocation2 + $0x47]] }
 0x646   :  { %v1511_v5 = vmul.f32 %v1509_v6, %v1508_v53  ;;  %v4541_v53 = vstv %s3721_s25  ;;  %v1196_v62 = vadd.f32 %v1194_v54, %v1190_v33  ;;  %v1110_v63 = vadd.f32 %v3423_v9, %v3787_v26 }
 0x647   :  { %v1401_v1 = vadd.f32 %v1399_v18, %v1373_v34  ;;  %v4539_v18 = vstv %s3711_s16  ;;  %v1537_v34 = vstv %s3969_s6  ;;  %v1222_v42 = vmul.f32 %v3401_v10, %v4541_v53  ;;  %s4032_s16 = sld [smem:[#allocation2 + $0x3f]] }
 0x648   :  { %v1166_v4 = vmul.f32 %v3401_v10, %v4539_v18  ;;  %v4543_v35 = vstv %s3732_s8  ;;  %v1274_v29 = vadd.f32 %v3677_v2, %v3792_v3  ;;  %v1302_v26 = vadd.f32 %v3703_v28, %v3840_v23  ;;  %s2861_s8 = smov 8  }
 0x649   :  { %v1429_v32 = vadd.f32 %v1427_v0, %v1401_v1  ;;  %v1539_v0 = vmul.f32 %v1537_v34, %v1536_v14  ;;  %v1246_v14 = vadd.f32 %v3673_v21, %v3772_v47  ;;  %v1116_v41 = vmul.f32 %v3401_v10, %v4543_v35 }
 0x64a   :  { %v4545_v47 = vstv %s3753_s20  ;;  %v4546_v2 = vstv %s3709_s14  ;;  %v1199_v57 = vmax.f32 %v1196_v62, 0.0  ;;  %v4548_v53 = vstv %s3730_s26 }
 0x64b   :  { %v1457_v25 = vadd.f32 %v1455_v7, %v1429_v32  ;;  %v1168_v7 = vadd.f32 %v1166_v4, %v1162_v27  ;;  %v4542_v32 = vstv %s3713_s17  ;;  %v1306_v18 = vmul.f32 %v3401_v10, %v4545_v47  ;;  %s4562_s17 = sld [smem:[#allocation19_spill]] }
 0x64c   :  { %v1224_v4 = vadd.f32 %v1222_v42, %v1218_v15 }
 0x64d   :  { %v1485_v46 = vadd.f32 %v1483_v45, %v1457_v25  ;;  %v1250_v45 = vmul.f32 %v3401_v10, %v4542_v32  ;;  %v1143_v25 = vmax.f32 %v1140_v11, 0.0  ;;  %v1557_v11 = vstv %s3995_s13  ;;  %s4321_s13 = sld [smem:[#allocation2 + $0x4f]] }
 0x64e   :  { %v1559_v33 = vmul.f32 %v3110_v50, %v1557_v11  ;;  %v1227_v15 = vmax.f32 %v1224_v4, 0.0  ;;  %v1330_v32 = vadd.f32 %v3680_v20, %v3836_v48  ;;  %v1386_v48 = vadd.f32 %v3717_v61, %v3796_v8 }
 0x64f   :  { %v1513_v38 = vadd.f32 %v1511_v5, %v1485_v46  ;;  %v1171_v5 = vmax.f32 %v1168_v7, 0.0  ;;  %v4544_v46 = vstv %s3738_s9  ;;  %v1146_v3 = vmul.f32 %v4546_v2, %v1143_v25 }
 0x650   :  { %v1278_v24 = vmul.f32 %v3401_v10, %v4544_v46  ;;  %v4547_v7 = vstv %s3719_s18  ;;  %v1308_v25 = vadd.f32 %v1306_v18, %v1302_v26  ;;  %v1358_v46 = vadd.f32 %v3689_v60, %v3825_v49  ;;  %s4569_s18 = sld [smem:[#allocation18_spill]] }
 0x651   :  { %v1541_v1 = vadd.f32 %v1539_v0, %v1513_v38  ;;  %v1252_v0 = vadd.f32 %v1250_v45, %v1246_v14  ;;  %v4029_v38 = vrot.slane %v3685_v17, %v3170_v16  ;;  %v1174_v28 = vmul.f32 %v4547_v7, %v1171_v5 }
 0x652   :  { %v1280_v23 = vadd.f32 %v1278_v24, %v1274_v29  ;;  %v1334_v17 = vmul.f32 %v3401_v10, %v4548_v53  ;;  %v4552_v18 = vstv %s3785_s4  ;;  %v1311_v2 = vmax.f32 %v1308_v25, 0.0  ;;  %s2865_s4 = smov 120  }
 0x653   :  { %v1255_v62 = vmax.f32 %v1252_v0, 0.0  ;;  %v1230_v4 = vmul.f32 %v4552_v18, %v1227_v15  ;;  %v4554_v49 = vstv %s3813_s22  ;;  %v1414_v61 = vadd.f32 %v3707_v40, %v3817_v56  ;;  %s4194_s22 = sld [smem:[#allocation2 + $0x42]] }
 0x654   :  { %v1283_v47 = vmax.f32 %v1280_v23, 0.0  ;;  %v4555_v53 = vstv %s3855_s24  ;;  %v1442_v15 = vadd.f32 %v3723_v43, %v3894_v59  ;;  %v4556_v40 = vstv %s3869_s5  ;;  %s4201_s24 = sld [smem:[#allocation2 + $0x52]] }
 0x655   :  { %v1474_v56 = vmul.f32 %v3401_v10, %v4556_v40  ;;  %v4557_v59 = vstv %s3883_s29  ;;  %v1526_v18 = vadd.f32 %v3915_v13, %v3947_v51  ;;  %s4206_s5 = sld [smem:[#allocation2 + $0x45]] }
 0x656   :  { %v1106_v21 = vpop.xlane.xlu1 %1105  ;;  %v1286_v23 = vmul.f32 %v1285_v55, %v1283_v47  ;;  %v1470_v55 = vadd.f32 %v3798_v30, %v3821_v58  ;;  %s4217_s29 = sld [smem:[#allocation2 + $0x49]] }
 0x657   :  { %v1112_v27 = vadd.f32 %v1110_v63, %v1106_v21  ;;  %v4549_v63 = vstv %s3800_s15  ;;  %v4551_v21 = vstv %s3809_s19  ;;  %s4190_s15 = sld [smem:[#allocation2 + $0x40]] }
 0x658   :  { %v1362_v35 = vmul.f32 %v3401_v10, %v4549_v63  ;;  %v1390_v20 = vmul.f32 %v3401_v10, %v4551_v21  ;;  %v1476_v58 = vadd.f32 %v1474_v56, %v1470_v55  ;;  %v1548_v21 = vpop.permute.xlu0 %1547  ;;  %s4192_s19 = sld [smem:[#allocation2 + $0x41]] }
 0x659   :  { %v1118_v54 = vadd.f32 %v1116_v41, %v1112_v27  ;;  %v4550_v41 = vstv %s3777_s3  ;;  %v1336_v27 = vadd.f32 %v1334_v17, %v1330_v32  ;;  %v1446_v17 = vmul.f32 %v3401_v10, %v4555_v53 }
 0x65a   :  { %v1552_v42 = vpop.permute.xlu1 %1551  ;;  %v1202_v5 = vmul.f32 %v4550_v41, %v1199_v57  ;;  %v1418_v57 = vmul.f32 %v3401_v10, %v4554_v49 }
 0x65b   :  { %v1148_v45 = vadd.f32 %v1146_v3, %v1118_v54  ;;  %v1555_v14 = vadd.f32 %v1552_v42, %v4029_v38  ;;  %v4553_v3 = vstv %s3763_s21  ;;  %v1565_v54 = vstv %s4032_s16 }
 0x65c   :  { %v1258_v60 = vmul.f32 %v4553_v3, %v1255_v62  ;;  %v1339_v42 = vmax.f32 %v1336_v27, 0.0  ;;  %v1420_v62 = vadd.f32 %v1418_v57, %v1414_v61  ;;  %v4561_v27 = vstv %s3919_s7  ;;  %s4255_s7 = sld [smem:[#allocation2 + $0x4b]] }
 0x65d   :  { %v1176_v24 = vadd.f32 %v1174_v28, %v1148_v45  ;;  %v1561_v29 = vadd.f32 %v1559_v33, %v1555_v14  ;;  %v1364_v33 = vadd.f32 %v1362_v35, %v1358_v46  ;;  %v1392_v28 = vadd.f32 %v1390_v20, %v1386_v48  ;;  %v4559_v46 = vld [vmem:[#allocation15_spill] sm:$0xff] }
 0x65e   :  { %v1314_v14 = vmul.f32 %v1313_v22, %v1311_v2  ;;  %v4558_v22 = vstv %s3859_s27  ;;  %v4560_v20 = vstv %s3912_s30  ;;  %v1423_v47 = vmax.f32 %v1420_v62, 0.0  ;;  %s4203_s27 = sld [smem:[#allocation2 + $0x44]] }
 0x65f   :  { %v1204_v26 = vadd.f32 %v1202_v5, %v1176_v24  ;;  %v1564_v0 = vmax.f32 %v1561_v29, 0.0  ;;  %v1367_v25 = vmax.f32 %v1364_v33, 0.0  ;;  %v1395_v43 = vmax.f32 %v1392_v28, 0.0  ;;  %s4246_s30 = sld [smem:[#allocation2 + $0x46]] }
 0x660   :  { %v1342_v41 = vmul.f32 %v4558_v22, %v1339_v42  ;;  %v1448_v5 = vadd.f32 %v1446_v17, %v1442_v15  ;;  %v1498_v24 = vadd.f32 %v4559_v46, %v3898_v31  ;;  %v1530_v29 = vmul.f32 %v3401_v10, %v1529_v37 }
 0x661   :  { %v1232_v8 = vadd.f32 %v1230_v4, %v1204_v26  ;;  %v1567_v7 = vmul.f32 %v1565_v54, %v1564_v0  ;;  %v1370_v48 = vmul.f32 %v4560_v20, %v1367_v25  ;;  %v1398_v26 = vmul.f32 %v4561_v27, %v1395_v43  ;;  %v1687_v20 = vld [vmem:[%s4562_s17 + $0x90] sm:$0xff] }
 0x662   :  { %v1558_v31 = vmul.f32 %v3401_v10, %v1557_v11  ;;  %v1451_v0 = vmax.f32 %v1448_v5, 0.0  ;;  %v1554_v37 = vadd.f32 %v1548_v21, %v4029_v38  ;;  %v1426_v49 = vmul.f32 %v1425_v52, %v1423_v47  ;;  %v1684_v5 = vld [vmem:[%s4562_s17 + $0x78] sm:$0xff]  ;;  %v4565_v47 = vld [vmem:[#allocation12_spill] sm:$0xff] }
 0x663   :  { %v1260_v32 = vadd.f32 %v1258_v60, %v1232_v8  ;;  %v1569_v45 = vadd.f32 %v1567_v7, %v1541_v1  ;;  %v1502_v1 = vmul.f32 %v3401_v10, %v4557_v59  ;;  %v1479_v60 = vmax.f32 %v1476_v58, 0.0  ;;  %2624 = vmatprep.subr.mxu0 %v1684_v5  ;;  %v4563_v58 = vld [vmem:[#allocation9_spill] sm:$0xff] }
 0x664   :  { %v1532_v57 = vadd.f32 %v1530_v29, %v1526_v18  ;;  %v1454_v13 = vmul.f32 %v1453_v39, %v1451_v0  ;;  %v1560_v61 = vadd.f32 %v1558_v31, %v1554_v37  ;;  %v2859_v46 = vmov 0.0   ;;  %v1685_v37 = vld [vmem:[%s4562_s17 + $0x80] sm:$0xff] }
 0x665   :  { %v1288_v63 = vadd.f32 %v1286_v23, %v1260_v32  ;;  %v1573_v35 = vsel %vm265_vm1, %v1569_v45, -inf  ;;  %v1504_v2 = vadd.f32 %v1502_v1, %v1498_v24  ;;  %v1482_v7 = vmul.f32 %v1481_v44, %v1479_v60  ;;  %2631 = vmatprep.subr.mxu1 %v2859_v46  ;;  %v1683_v24 = vld [vmem:[%s4562_s17 + $0x70] sm:$0xff]  ;;  %2635 = vmatprep.mubr.msk.f32.mxu1 %vm2860_vm2, %v2859_v46 }
 0x666   :  { %1574 = vmax.xlane.f32.xlu0 %v1573_v35  ;;  %v1535_v11 = vmax.f32 %v1532_v57, 0.0  ;;  %v1563_v53 = vmax.f32 %v1560_v61, 0.0  ;;  %v2863_v60 = vmov 8  }
 0x667   :  { %v1316_v30 = vadd.f32 %v1314_v14, %v1288_v63  ;;  %v1507_v51 = vmax.f32 %v1504_v2, 0.0 }
 0x668   :  { %v1538_v17 = vmul.f32 %v1537_v34, %v1535_v11  ;;  %v1566_v15 = vmul.f32 %v1565_v54, %v1563_v53 }
 0x669   :  { %v1344_v4 = vadd.f32 %v1342_v41, %v1316_v30  ;;  %v1510_v23 = vmul.f32 %v1509_v6, %v1507_v51  ;;  %v4129_v30 = vld [vmem:[%s4562_s17 + $0x88] sm:$0xf] }
 0x66a   :  { %v1778_v29 = vrot.slane %v4129_v30, %v4563_v58  ;;  %v1878_v21 = vrot.slane %v4129_v30, %v4507_v36 }
 0x66b   :  { %v1372_v3 = vadd.f32 %v1370_v48, %v1344_v4  ;;  %v4564_v48 = vld [vmem:[#allocation11_spill] sm:$0xff] }
 0x66c   :  { %v1599_v18 = vrot.slane %v4565_v47, %v4564_v48 }
 0x66d   :  { %v1400_v33 = vadd.f32 %v1398_v26, %v1372_v3  ;;  %v2862_v3 = vmov 9  }
 0x66f   :  { %v1428_v8 = vadd.f32 %v1426_v49, %v1400_v33  ;;  %v4566_v49 = vld [vmem:[#allocation8_spill] sm:$0xff] }
 0x670   :  { %v1772_v57 = vrot.slane %v4129_v30, %v4566_v49 }
 0x671   :  { %v1456_v28 = vadd.f32 %v1454_v13, %v1428_v8 }
 0x673   :  { %v1484_v38 = vadd.f32 %v1482_v7, %v1456_v28 }
 0x675   :  { %v1512_v42 = vadd.f32 %v1510_v23, %v1484_v38  ;;  %v2864_v38 = vmov 10  }
 0x677   :  { %v1540_v52 = vadd.f32 %v1538_v17, %v1512_v42  ;;  %v2866_v17 = vmov 13  }
 0x679   :  { %v1568_v32 = vadd.f32 %v1566_v15, %v1540_v52  ;;  %v2867_v15 = vmov 14   ;;  %v2868_v52 = vmov 11  }
 0x67b   :  { %v1570_v14 = vsel %vm265_vm1, %v1568_v32, -inf }
 0x67c   :  { %1571 = vmax.xlane.f32.xlu1 %v1570_v14  ;;  %v2869_v14 = vmov 12  }
 0x6ef   :  { %v1575_v39 = vpop.xlane.xlu0 %1574 }
 0x6f0   :  { %v1577_v40 = vsub.f32 %v1569_v45, %v1575_v39  ;;  %v2870_v39 = vmov 15  }
 0x6f2   :  { %v1580_v56 = vmul.f32 1.442695, %v1577_v40 }
 0x6f4   :  { %2781 = vpow2.f32 %v1580_v56 }
 0x701   :  { %v2782_v44 = vpop.eup %2781 }
 0x702   :  { %v1585_v55 = vsel %vm265_vm1, %v2782_v44, 0.0 }
 0x703   :  { %1586 = vadd.xlane.f32.xlu1 %v1585_v55 }
 0x705   :  { %v1572_v6 = vpop.xlane.xlu1 %1571 }
 0x706   :  { %v1576_v25 = vsub.f32 %v1568_v32, %v1572_v6 }
 0x708   :  { %v1578_v62 = vmul.f32 1.442695, %v1576_v25 }
 0x70a   :  { %2783 = vpow2.f32 %v1578_v62 }
 0x714   :  { %1880 = vrot.lane.b32.xlu1 %v1878_v21, %s2861_s8 }
 0x717   :  { %v2784_v34 = vpop.eup %2783 }
 0x718   :  { %v1582_v54 = vsel %vm265_vm1, %v2784_v34, 0.0  ;;  %1787 = vperm.xlu1 %2757, %v1687_v20  }
 0x719   :  { %1583 = vadd.xlane.f32.xlu0 %v1582_v54 }
 0x71c   :  { %2760 = vset.pattern.permute.xlu1 %v2862_v3 }
 0x72f   :  { %1780 = vrot.lane.b32.xlu0 %v1778_v29, %s2861_s8  ;;  %s2871_s8 = smov [#allocation5]  }
 0x730   :  { %s2420_s9 = sshll.u32 %s2871_s8, 4  ;;  %s2421_s9 = int_to_ptr.vmem [resolvable:$true] %s2420_s9 }
 0x731   :  { %p2819_p6 = scmp.lt.s32.totalorder %s2421_s9, %s2421_s9 }
 0x733   :  { %1864 = vperm.xlu0 %2758, %v1687_v20  }
 0x737   :  { %2759 = vset.pattern.permute.xlu0 %v2863_v60 }
 0x78c   :  { %v1587_v63 = vpop.xlane.xlu1 %1586 }
 0x78d   :  { %v1589_v35 = vmax.f32 %v1587_v63, 1e-20 }
 0x78f   :  { %2785 = vrcp.f32 %v1589_v35 }
 0x790   :  { %v1881_v11 = vpop.permute.xlu1 %1880 }
 0x794   :  { %v1788_v40 = vpop.permute.xlu1 %1787 }
 0x79c   :  { %v2786_v45 = vpop.eup %2785 }
 0x79d   :  { %v1595_v41 = vmul.f32 %v2786_v45, %v2782_v44 }
 0x7a2   :  { %v1584_v43 = vpop.xlane.xlu0 %1583 }
 0x7a3   :  { %v1588_v59 = vmax.f32 %v1584_v43, 1e-20 }
 0x7a5   :  { %2787 = vrcp.f32 %v1588_v59 }
 0x7a6   :  { %v1781_v33 = vpop.permute.xlu0 %1780 }
 0x7ae   :  { %v1865_v44 = vpop.permute.xlu0 %1864 }
 0x7b2   :  { %v2788_v1 = vpop.eup %2787 }
 0x7b3   :  { %v1594_v22 = vmul.f32 %v2788_v1, %v2784_v34 }
 0x7b5   :  { %2621 = vmatprep.mubr.msk.f32.mxu0 %vm265_vm1, %v1594_v22 }
 0x7b6   :  { %2622 = vmatmul.mubr.msk.f32.vlgmr.msra.gmra.mxu0 %vm265_vm1, %v1595_v41 }
 0x7b7   :  { %2625 = vmatpush3.msra.mxu0 %v1684_v5 }
 0x7b8   :  { %2626 = vmatprep.subr.mxu0 %v1683_v24 }
 0x7b9   :  { %2627 = vmatpush3.msra.mxu0 %v1683_v24 }
 0x876   :  { %v2623_v4 = vpop.f32.mrf.mxu0 }
 0x877   :  { %v1678_v27 = vadd.f32 %v2623_v4, %v1599_v18 }
 0x878   :  { %v1672_v26 = vpop.f32.mrf.mxu0 }
 0x879   :  { %v1682_v31 = vmax.f32 %v1678_v27, 0.0  ;;  %v1673_v0 = vadd.f32 %v1672_v26, %v1599_v18 }
 0x87b   :  { %v1681_v2 = vmax.f32 %v1673_v0, 0.0  ;;  %2632 = vmatpush3.xpose.msk.msra.mxu1 %vm265_vm1, %v1682_v31 }
 0x87c   :  { %2633 = vmatprep.subr.mxu1 %v2859_v46 }
 0x87d   :  { %2628 = vmatprep.mubr.msk.f32.mxu0 %vm265_vm1, %v1681_v2 }
 0x87e   :  { %2629 = vmatmul.mubr.msk.f32.vlgmr.msra.gmra.mxu0 %vm265_vm1, %v1682_v31 }
 0x87f   :  { %2634 = vmatpush3.xpose.msk.msra.mxu1 %vm265_vm1, %v1681_v2 }
 0x880   :  { %2652 = vmatprep.subr.mxu1 %v2859_v46 }
 0x882   :  { %2636 = vmatmul.mubr.msk.f32.vlgmr.msra.gmra.mxu1 %vm265_vm1, %v1685_v37 }
 0x883   :  { %2654 = vmatprep.mubr.msk.f32.mxu1 %vm2860_vm2, %v2859_v46 }
 0x93e   :  { %v2630_v13 = vpop.f32.mrf.mxu0 }
 0x93f   :  { %v1774_v51 = vadd.f32 %v2630_v13, %v1772_v57  ;;  %v4156_v61 = vadd.f32 %v2630_v13, %v1781_v33 }
 0x940   :  { %v1760_v8 = vpop.f32.mrf.mxu0 }
 0x941   :  { %v1773_v7 = vadd.f32 %v1772_v57, %v1760_v8  ;;  %1948 = vperm.xlu1 %2760, %v4156_v61   ;;  %1920 = vperm.xlu0 %2759, %v4156_v61   ;;  %v1884_v23 = vmul.f32 %v1881_v11, %v4156_v61  ;;  %v1783_v42 = vadd.f32 %v1781_v33, %v1760_v8  ;;  %v1982_v33 = vstv %s4194_s22 }
 0x942   :  { %2638 = vmatprep.subr.mxu0 %v1774_v51  ;;  %v1859_v28 = vpop.f32.mrf.mxu1 }
 0x943   :  { %2639 = vmatpush3.msra.mxu0 %v1774_v51  ;;  %v1883_v32 = vmul.f32 %v1881_v11, %v1783_v42  ;;  %v4166_v56 = vadd.f32 %v1859_v28, %v1788_v40  ;;  %v2010_v28 = vstv %s4198_s23 }
 0x944   :  { %2640 = vmatprep.subr.mxu0 %v1773_v7  ;;  %v2637_v53 = vpop.f32.mrf.mxu1 }
 0x945   :  { %2641 = vmatpush3.msra.mxu0 %v1773_v7  ;;  %2761 = vset.pattern.permute.xlu1 %v2864_v38  ;;  %v1912_v55 = vrot.slane %v4166_v56, %v4566_v49  ;;  %v1942_v6 = vrot.slane %v4166_v56, %v4563_v58  ;;  %v1970_v35 = vrot.slane %v4166_v56, %v4564_v48 }
 0x946   :  { %1889 = vrot.lane.b32.xlu0 %v1884_v23, %s2865_s4  ;;  %1976 = vperm.xlu1 %2761, %v4156_v61   ;;  %v1998_v29 = vrot.slane %v4166_v56, %v4507_v36  ;;  %v1867_v4 = vmul.f32 %v1865_v44, %v4166_v56  ;;  %v1984_v7 = vmul.f32 %v3110_v50, %v1982_v33  ;;  %v4567_v23 = vld [vmem:[#allocation13_spill] sm:$0xff]  ;;  %v4568_v44 = vld [vmem:[#allocation14_spill] sm:$0xff] }
 0x947   :  { %2767 = vset.pattern.permute.xlu0 %v2866_v17  ;;  %2645 = vmatprep.subr.mxu0 %v2859_v46  ;;  %v4231_v53 = vrot.slane %v4166_v56, %v4567_v23 }
 0x948   :  { %v1868_v27 = vsel %vm265_vm1, %v1867_v4, 0.0 }
 0x949   :  { %v1869_v26 = vrot.slane %v1868_v27, 4 }
 0x94a   :  { %2056 = vperm.xlu0 %2767, %v1783_v42   ;;  %2762 = vset.pattern.permute.xlu1 %v2863_v60  ;;  %v1954_v60 = vstv %s4192_s19 }
 0x94b   :  { %1915 = vperm.xlu1 %2762, %v1783_v42   ;;  %v1870_v31 = vadd.f32 %v1869_v26, %v1868_v27  ;;  %v1956_v51 = vmul.f32 %v3110_v50, %v1954_v60 }
 0x94d   :  { %v1871_v0 = vrot.slane %v1870_v31, 2 }
 0x94e   :  { %2770 = vset.pattern.permute.xlu0 %v2867_v15 }
 0x94f   :  { %2763 = vset.pattern.permute.xlu1 %v2862_v3  ;;  %v1872_v2 = vadd.f32 %v1871_v0, %v1870_v31  ;;  %v1926_v3 = vstv %s4190_s15  ;;  %v2082_v31 = vrot.slane %v4166_v56, %v3134_v12 }
 0x950   :  { %1944 = vperm.xlu1 %2763, %v1783_v42   ;;  %v1928_v57 = vmul.f32 %v3110_v50, %v1926_v3 }
 0x951   :  { %v1873_v49 = vrot.slane %v1872_v2, 1 }
 0x954   :  { %2764 = vset.pattern.permute.xlu1 %v2864_v38  ;;  %v1904_v38 = vstv %s4201_s24 }
 0x955   :  { %1972 = vperm.xlu1 %2764, %v1783_v42  }
 0x959   :  { %2765 = vset.pattern.permute.xlu1 %v2868_v52  ;;  %v2038_v52 = vstv %s4203_s27 }
 0x95a   :  { %2000 = vperm.xlu1 %2765, %v1783_v42  }
 0x95e   :  { %1887 = vrot.lane.b32.xlu1 %v1883_v32, %s2865_s4  ;;  %v2066_v32 = vstv %s4206_s5 }
 0x962   :  { %2004 = vperm.xlu1 %2765, %v4156_v61  }
 0x966   :  { %2766 = vset.pattern.permute.xlu1 %v2869_v14  ;;  %v4241_v14 = vrot.slane %v4166_v56, %v3143_v19  ;;  %v1906_v19 = vmul.f32 %v3110_v50, %v1904_v38 }
 0x967   :  { %2028 = vperm.xlu1 %2766, %v1783_v42  }
 0x96b   :  { %2032 = vperm.xlu1 %2766, %v4156_v61  }
 0x96f   :  { %2768 = vset.pattern.permute.xlu1 %v2866_v17 }
 0x970   :  { %2060 = vperm.xlu1 %2768, %v4156_v61  }
 0x974   :  { %2769 = vset.pattern.permute.xlu1 %v2867_v15 }
 0x975   :  { %2084 = vperm.xlu1 %2769, %v1783_v42  }
 0x979   :  { %2771 = vset.pattern.permute.xlu1 %v2870_v39 }
 0x97a   :  { %2112 = vperm.xlu1 %2771, %v1783_v42   ;;  %v2012_v42 = vmul.f32 %v3110_v50, %v2010_v28 }
 0x9bc   :  { %v1921_v25 = vpop.permute.xlu0 %1920  ;;  %v1949_v62 = vpop.permute.xlu1 %1948 }
 0x9bd   :  { %v1924_v34 = vadd.f32 %v1921_v25, %v1912_v55  ;;  %v1952_v54 = vadd.f32 %v1949_v62, %v1942_v6 }
 0x9bf   :  { %v1930_v8 = vadd.f32 %v1928_v57, %v1924_v34  ;;  %v1958_v17 = vadd.f32 %v1956_v51, %v1952_v54  ;;  %v1934_v34 = vstv %s4211_s28  ;;  %v2068_v54 = vmul.f32 %v3110_v50, %v2066_v32 }
 0x9c0   :  { %v1890_v63 = vpop.permute.xlu0 %1889 }
 0x9c1   :  { %v1977_v43 = vpop.permute.xlu1 %1976  ;;  %v1896_v59 = vsel %vm66_vm0, %v1890_v63, 0.0 }
 0x9c2   :  { %v1980_v45 = vadd.f32 %v1977_v43, %v1970_v35  ;;  %1897 = vadd.xlane.f32.xlu0 %v1896_v59 }
 0x9c4   :  { %v1986_v25 = vadd.f32 %v1984_v7, %v1980_v45 }
 0x9c5   :  { %v4226_v11 = vpop.permute.xlu0 %2056 }
 0x9c6   :  { %v1916_v1 = vpop.permute.xlu1 %1915 }
 0x9c7   :  { %v4175_v22 = vadd.f32 %v1916_v1, %v1912_v55  ;;  %v1962_v1 = vstv %s4217_s29 }
 0x9cb   :  { %v1945_v41 = vpop.permute.xlu1 %1944 }
 0x9cc   :  { %v4177_v5 = vadd.f32 %v1945_v41, %v1942_v6  ;;  %v1933_v6 = vmax.f32 %v1930_v8, 0.0 }
 0x9ce   :  { %v1936_v41 = vmul.f32 %v1934_v34, %v1933_v6 }
 0x9d0   :  { %v1973_v24 = vpop.permute.xlu1 %1972 }
 0x9d1   :  { %v4179_v58 = vadd.f32 %v1973_v24, %v1970_v35  ;;  %v1961_v35 = vmax.f32 %v1958_v17, 0.0  ;;  %v1989_v24 = vmax.f32 %v1986_v25, 0.0  ;;  %v2046_v17 = vstv %s4262_s10 }
 0x9d2   :  { %v2102_v25 = vstv %s4274_s11 }
 0x9d5   :  { %v2001_v21 = vpop.permute.xlu1 %2000 }
 0x9d6   :  { %v4183_v20 = vadd.f32 %v2001_v21, %v1998_v29 }
 0x9d8   :  { %2088 = vperm.xlu0 %2770, %v4156_v61  }
 0x9d9   :  { %v1888_v47 = vpop.permute.xlu1 %1887 }
 0x9da   :  { %v1893_v18 = vsel %vm66_vm0, %v1888_v47, 0.0  ;;  %v1990_v47 = vstv %s4224_s2 }
 0x9db   :  { %1894 = vadd.xlane.f32.xlu1 %v1893_v18  ;;  %v1964_v18 = vmul.f32 %v1962_v1, %v1961_v35  ;;  %v1992_v0 = vmul.f32 %v1990_v47, %v1989_v24  ;;  %v1955_v35 = vmul.f32 %v3401_v10, %v1954_v60  ;;  %v2039_v60 = vmul.f32 %v3401_v10, %v2038_v52 }
 0x9dc   :  { %2772 = vset.pattern.permute.xlu0 %v2870_v39  ;;  %v2040_v39 = vmul.f32 %v3110_v50, %v2038_v52 }
 0x9dd   :  { %v2005_v36 = vpop.permute.xlu1 %2004 }
 0x9de   :  { %v2008_v15 = vadd.f32 %v2005_v36, %v1998_v29  ;;  %v2094_v36 = vstv %s4246_s30 }
 0x9df   :  { %v2096_v57 = vmul.f32 %v3110_v50, %v2094_v36 }
 0x9e0   :  { %v2014_v43 = vadd.f32 %v2012_v42, %v2008_v15 }
 0x9e2   :  { %v4196_v37 = vpop.permute.xlu1 %2028  ;;  %v2017_v4 = vmax.f32 %v2014_v43, 0.0 }
 0x9e6   :  { %v2033_v13 = vpop.permute.xlu1 %2032 }
 0x9e7   :  { %v2036_v62 = vadd.f32 %v2033_v13, %v4231_v53  ;;  %v2018_v13 = vstv %s4255_s7 }
 0x9e8   :  { %v2020_v8 = vmul.f32 %v2018_v13, %v2017_v4 }
 0x9e9   :  { %v2042_v29 = vadd.f32 %v2040_v39, %v2036_v62  ;;  %v1927_v62 = vmul.f32 %v3401_v10, %v1926_v3  ;;  %v2011_v3 = vmul.f32 %v3401_v10, %v2010_v28  ;;  %v2063_v28 = vadd.f32 %v4226_v11, %v4241_v14 }
 0x9eb   :  { %v2061_v40 = vpop.permute.xlu1 %2060  ;;  %v2013_v52 = vadd.f32 %v2011_v3, %v4183_v20 }
 0x9ec   :  { %2116 = vperm.xlu1 %2771, %v4156_v61   ;;  %v4219_v61 = vadd.f32 %v1873_v49, %v1872_v2  ;;  %v2064_v59 = vadd.f32 %v2061_v40, %v4241_v14  ;;  %v2045_v2 = vmax.f32 %v2042_v29, 0.0  ;;  %v2074_v40 = vstv %s4267_s1 }
 0x9ee   :  { %v1900_v55 = vadd.f32 %v4568_v44, %v4219_v61  ;;  %v2070_v27 = vadd.f32 %v2068_v54, %v2064_v59  ;;  %v2048_v42 = vmul.f32 %v2046_v17, %v2045_v2  ;;  %v1929_v59 = vadd.f32 %v1927_v62, %v4175_v22 }
 0x9ef   :  { %v1899_v22 = vadd.f32 %v3423_v9, %v4219_v61  ;;  %v2095_v9 = vmul.f32 %v3401_v10, %v2094_v36  ;;  %v2110_v61 = vrot.slane %v4166_v56, %v3170_v16 }
 0x9f0   :  { %v2073_v7 = vmax.f32 %v2070_v27, 0.0  ;;  %v1932_v29 = vmax.f32 %v1929_v59, 0.0  ;;  %v2122_v27 = vstv %s2530_s12 }
 0x9f1   :  { %v2124_v14 = vmul.f32 %v3110_v50, %v2122_v27 }
 0x9f2   :  { %v2076_v44 = vmul.f32 %v2074_v40, %v2073_v7 }
 0xa4b   :  { %v1898_v63 = vpop.xlane.xlu0 %1897 }
 0xa4c   :  { %v1902_v45 = vadd.f32 %v1900_v55, %v1898_v63 }
 0xa4e   :  { %v1908_v21 = vadd.f32 %v1906_v19, %v1902_v45  ;;  %v2085_v19 = vpop.permute.xlu1 %2084  ;;  %v1983_v45 = vmul.f32 %v3401_v10, %v1982_v33  ;;  %v2067_v33 = vmul.f32 %v3401_v10, %v2066_v32 }
 0xa4f   :  { %v2091_v11 = vadd.f32 %v2085_v19, %v2082_v31 }
 0xa50   :  { %v1938_v26 = vadd.f32 %v1936_v41, %v1908_v21  ;;  %v1957_v41 = vadd.f32 %v1955_v35, %v4177_v5  ;;  %v1985_v21 = vadd.f32 %v1983_v45, %v4179_v58  ;;  %v1905_v5 = vmul.f32 %v3401_v10, %v1904_v38 }
 0xa51   :  { %v2069_v20 = vadd.f32 %v2067_v33, %v2063_v28 }
 0xa52   :  { %v1966_v49 = vadd.f32 %v1964_v18, %v1938_v26  ;;  %v2113_v24 = vpop.permute.xlu1 %2112  ;;  %v2035_v18 = vadd.f32 %v4196_v37, %v4231_v53  ;;  %v1960_v58 = vmax.f32 %v1957_v41, 0.0  ;;  %v1935_v37 = vmul.f32 %v1934_v34, %v1932_v29 }
 0xa53   :  { %v2089_v51 = vpop.permute.xlu0 %2088  ;;  %v1988_v53 = vmax.f32 %v1985_v21, 0.0  ;;  %v2123_v34 = vmul.f32 %v3401_v10, %v2122_v27  ;;  %v2119_v36 = vadd.f32 %v2113_v24, %v2110_v61 }
 0xa54   :  { %v1994_v23 = vadd.f32 %v1992_v0, %v1966_v49  ;;  %v2092_v12 = vadd.f32 %v2089_v51, %v2082_v31  ;;  %v2041_v38 = vadd.f32 %v2039_v60, %v2035_v18  ;;  %v1963_v0 = vmul.f32 %v1962_v1, %v1960_v58 }
 0xa55   :  { %v2016_v49 = vmax.f32 %v2013_v52, 0.0  ;;  %v1991_v16 = vmul.f32 %v1990_v47, %v1988_v53 }
 0xa56   :  { %v2022_v15 = vadd.f32 %v2020_v8, %v1994_v23  ;;  %v2098_v39 = vadd.f32 %v2096_v57, %v2092_v12  ;;  %v2044_v56 = vmax.f32 %v2041_v38, 0.0  ;;  %v2097_v8 = vadd.f32 %v2095_v9, %v2091_v11 }
 0xa57   :  { %v2072_v23 = vmax.f32 %v2069_v20, 0.0  ;;  %v2019_v50 = vmul.f32 %v2018_v13, %v2016_v49  ;;  %v2125_v12 = vadd.f32 %v2123_v34, %v2119_v36 }
 0xa58   :  { %v2101_v55 = vmax.f32 %v2098_v39, 0.0  ;;  %v2050_v6 = vadd.f32 %v2048_v42, %v2022_v15  ;;  %v2130_v15 = vstv %s4321_s13  ;;  %v2047_v10 = vmul.f32 %v2046_v17, %v2044_v56 }
 0xa59   :  { %v2100_v39 = vmax.f32 %v2097_v8, 0.0  ;;  %v2128_v62 = vmax.f32 %v2125_v12, 0.0 }
 0xa5a   :  { %v2104_v54 = vmul.f32 %v2102_v25, %v2101_v55  ;;  %v2078_v63 = vadd.f32 %v2076_v44, %v2050_v6  ;;  %v2075_v6 = vmul.f32 %v2074_v40, %v2072_v23 }
 0xa5b   :  { %v2103_v47 = vmul.f32 %v2102_v25, %v2100_v39  ;;  %v2131_v45 = vmul.f32 %v2130_v15, %v2128_v62 }
 0xa5c   :  { %v2106_v43 = vadd.f32 %v2104_v54, %v2078_v63 }
 0xa64   :  { %v1895_v4 = vpop.xlane.xlu1 %1894 }
 0xa65   :  { %v1901_v26 = vadd.f32 %v1899_v22, %v1895_v4 }
 0xa67   :  { %v1907_v32 = vadd.f32 %v1905_v5, %v1901_v26  ;;  %v2248_v26 = vld [vmem:[%s4562_s17 + $0x98] sm:$0xff] }
 0xa68   :  { %v2117_v2 = vpop.permute.xlu1 %2116  ;;  %2653 = vmatpush3.msra.mxu1 %v2248_v26 }
 0xa69   :  { %v1937_v57 = vadd.f32 %v1935_v37, %v1907_v32  ;;  %v2120_v51 = vadd.f32 %v2117_v2, %v2110_v61  ;;  %v2164_v37 = vrot.slane %v4129_v30, %v4564_v48  ;;  %v2535_v48 = vld [vmem:[%s4562_s17 + $0xa0] ss:$0 sm:$0xff]  ;;  %s2814_s17 = scalar_lea.vmem %s2421_s9, 32 }
 0xa6a   :  { %p2815_p5 = scmp.ne.s32.totalorder %s2421_s9, %s2814_s17  ;;  %p2820_p7 = scmp.lt.s32.totalorder %s2814_s17, %s2814_s17 }
 0xa6b   :  { %v1965_v31 = vadd.f32 %v1963_v0, %v1937_v57  ;;  %v2126_v7 = vadd.f32 %v2124_v14, %v2120_v51  ;;  %v2250_v14 = vld [vmem:[%s4569_s18] sm:$0x3] }
 0xa6c   :  { %p2821_p8 = por %p2820_p7, %p2819_p6 }
 0xa6d   :  { %v1993_v42 = vadd.f32 %v1991_v16, %v1965_v31  ;;  %v2129_v1 = vmax.f32 %v2126_v7, 0.0 }
 0xa6e   :  { %p2822_p9 = pnand %p2821_p8, %p2815_p5 }
 0xa6f   :  { %v2132_v44 = vmul.f32 %v2130_v15, %v2129_v1  ;;  %v2021_v55 = vadd.f32 %v2019_v50, %v1993_v42 }
 0xa71   :  { %v2134_v19 = vadd.f32 %v2132_v44, %v2106_v43  ;;  %v2049_v54 = vadd.f32 %v2047_v10, %v2021_v55 }
 0xa73   :  { %v2138_v63 = vsel %vm265_vm1, %v2134_v19, -inf  ;;  %v2077_v35 = vadd.f32 %v2075_v6, %v2049_v54 }
 0xa74   :  { %2139 = vmax.xlane.f32.xlu1 %v2138_v63 }
 0xa75   :  { %v2105_v59 = vadd.f32 %v2103_v47, %v2077_v35 }
 0xa77   :  { %v2133_v13 = vadd.f32 %v2131_v45, %v2105_v59 }
 0xa79   :  { %v2135_v41 = vsel %vm265_vm1, %v2133_v13, -inf }
 0xa7a   :  { %2136 = vmax.xlane.f32.xlu0 %v2135_v41 }
 0xafd   :  { %v2140_v24 = vpop.xlane.xlu1 %2139 }
 0xafe   :  { %v2142_v17 = vsub.f32 %v2134_v19, %v2140_v24 }
 0xb00   :  { %v2145_v21 = vmul.f32 1.442695, %v2142_v17 }
 0xb03   :  { %v2137_v3 = vpop.xlane.xlu0 %2136 }
 0xb04   :  { %v2141_v29 = vsub.f32 %v2133_v13, %v2137_v3 }
 0xb06   :  { %v2143_v40 = vmul.f32 1.442695, %v2141_v29 }
 0xb08   :  { %2789 = vpow2.f32 %v2143_v40 }
 0xb09   :  { %2791 = vpow2.f32 %v2145_v21 }
 0xb15   :  { %v2790_v43 = vpop.eup %2789 }
 0xb16   :  { %v2147_v25 = vsel %vm265_vm1, %v2790_v43, 0.0  ;;  %v2792_v60 = vpop.eup %2791 }
 0xb17   :  { %2148 = vadd.xlane.f32.xlu0 %v2147_v25  ;;  %v2150_v18 = vsel %vm265_vm1, %v2792_v60, 0.0 }
 0xb1b   :  { %2151 = vadd.xlane.f32.xlu0 %v2150_v18 }
 0xba0   :  { %v2149_v22 = vpop.xlane.xlu0 %2148 }
 0xba1   :  { %v2153_v5 = vmax.f32 %v2149_v22, 1e-20 }
 0xba3   :  { %2793 = vrcp.f32 %v2153_v5 }
 0xba4   :  { %v2152_v33 = vpop.xlane.xlu0 %2151 }
 0xba5   :  { %v2154_v28 = vmax.f32 %v2152_v33, 1e-20 }
 0xba7   :  { %2795 = vrcp.f32 %v2154_v28 }
 0xbb0   :  { %v2794_v58 = vpop.eup %2793 }
 0xbb1   :  { %v2159_v4 = vmul.f32 %v2794_v58, %v2790_v43 }
 0xbb3   :  { %2642 = vmatprep.mubr.msk.f32.mxu0 %vm265_vm1, %v2159_v4 }
 0xbb4   :  { %v2796_v52 = vpop.eup %2795 }
 0xbb5   :  { %v2160_v27 = vmul.f32 %v2796_v52, %v2792_v60 }
 0xbb7   :  { %2643 = vmatmul.mubr.msk.f32.vlgmr.msra.gmra.mxu0 %vm265_vm1, %v2160_v27 }
 0xbb8   :  { %2649 = vmatprep.mubr.msk.f32.mxu0 %vm2860_vm2, %v2859_v46 }
 0xc77   :  { %v2644_v53 = vpop.f32.mrf.mxu0 }
 0xc78   :  { %v2243_v9 = vadd.f32 %v2644_v53, %v2164_v37 }
 0xc79   :  { %v2237_v61 = vpop.f32.mrf.mxu0 }
 0xc7a   :  { %v2247_v38 = vmax.f32 %v2243_v9, 0.0  ;;  %v2238_v11 = vadd.f32 %v2237_v61, %v2164_v37 }
 0xc7c   :  { %v2246_v32 = vmax.f32 %v2238_v11, 0.0  ;;  %2646 = vmatpush3.msra.mxu0 %v2247_v38 }
 0xc7d   :  { %2647 = vmatprep.subr.mxu0 %v2859_v46 }
 0xc7e   :  { %2648 = vmatpush3.msra.mxu0 %v2246_v32 }
 0xc7f   :  { %2650 = vmatmul.mubr.msk.f32.vlgmr.msra.gmra.mxu0 %vm265_vm1, %v2250_v14 }
 0xd3f   :  { %v2320_v20 = vpop.f32.mrf.mxu0 }
 0xd40   :  { %2655 = vmatmul.mubr.msk.f32.vlgmr.msra.gmra.mxu1 %vm66_vm0, %v2320_v20 }
 0xd41   :  { %v2651_v30 = vpop.f32.mrf.mxu0 }
 0xe00   :  { %v2397_v0 = vpop.f32.mrf.mxu1 }
 0xe01   :  { %v2398_v34 = vadd.f32 %v2535_v48, %v2397_v0 }
 0xe02   :  { %v2656_v2 = vpop.f32.mrf.mxu1 }
 0xe03   :  { %v2402_v49 = vsel %vm2401_vm3, %v2398_v34, -inf }
 0xe04   :  { %2403 = vmax.xlane.f32.xlu1 %v2402_v49 }
 0xe8d   :  { %v2404_v36 = vpop.xlane.xlu1 %2403 }
 0xe8e   :  { %v2405_v46 = vsub.f32 %v2398_v34, %v2404_v36 }
 0xe90   :  { %v2406_v57 = vmul.f32 1.442695, %v2405_v46 }
 0xe92   :  { %2797 = vpow2.f32 %v2406_v57 }
 0xe9f   :  { %v2798_v51 = vpop.eup %2797 }
 0xea0   :  { %v2408_v16 = vsel %vm2401_vm3, %v2798_v51, 0.0 }
 0xea1   :  { %2409 = vadd.xlane.f32.xlu0 %v2408_v16 }
 0xf2a   :  { %v2410_v56 = vpop.xlane.xlu0 %2409 }
 0xf2b   :  { %2799 = vrcp.f32 %v2410_v56 }
 0xf38   :  { %v2800_v8 = vpop.eup %2799 }
 0xf39   :  { %v2412_v31 = vmul.f32 %v2800_v8, %v2798_v51 }
 0xf3b   :  { %2413 = vst.msk [vmem:[#allocation5] sm:$0x3] %vm2401_vm3, %v2412_v31 }
 0xf3c   :  { %2825 = shalt.err (!%p2822_p9)
}
 0xf3d   :  { %s4570_s3 = sld [smem:[#allocation20_spill]] }
 0xf43   :  { %2423 = dma.vmem_to_hbm [thread:$0]  %s2421_s9, 32, %s4570_s3, [#allocation3]  }
 0xf44   :  { %2836 = dma.done.wait [#allocation3], 32  }
 0xf45   :  { %2837 = vsyncadd [#allocation3], 4294967264 }
 0xf46   :  { %2427 = vsyncpa [#allocation3], 1 }
 0xf47   :  { %2428 = vsyncpa [#allocation4], 1 }

</bundles_post_ra>
